<compile_context>
chip_gen: v6e
topology: v6e:2x2x1
jax: 0.10.0
libtpu: 0.0.40
codegen_flags: <defaults>
</compile_context>

<pallas_src>
import functools

import jax
import jax.numpy as jnp
from jax.experimental import pallas as pl
from jax.experimental.pallas import tpu as pltpu


# ---------------------------------------------------------------------------
# Kernel
# ---------------------------------------------------------------------------
def _biaffine_kernel(x1_ref, x2t_ref, u_ref, o_ref, *,
                     bt, o_blk, seq, h_pad, compute_dtype, lane_dense):
    """One grid step: `bt` batch rows x `o_blk` biaffine heads.

    x1_ref : (bt*S, H_pad)            [x1 | 1 | 0-pad] rows, compute dtype
    x2t_ref: (bt, H_pad, S)           [x2 | 1 | 0-pad]^T per batch row
    u_ref  : (1, H_pad, o_blk*H_pad)  zero-padded U heads, side by side (lanes)
    o_ref  : (bt, S, o_blk*S) if lane_dense else (bt, o_blk, S, S)
    """
    x1 = x1_ref[...]                                               # (bt*S, H_pad)

    # Stage 1: one wide MXU matmul across all heads in the group.
    # M = bt*S, K = H_pad, N = o_blk*H_pad (K and per-head N are 128-aligned).
    tmp = jnp.dot(x1, u_ref[0], preferred_element_type=jnp.float32)

    # Stage 2: per (batch row, head) (S, H_pad) @ (H_pad, S) matmul.  Head
    # slices start at multiples of H_pad (multiples of 128) so they are free,
    # lane-aligned views of the f32 intermediate; the compute-dtype cast is
    # done per slice so no second full-width copy of `tmp` is materialized.
    for b in range(bt):
        x2t = x2t_ref[b]                                           # (H_pad, S)
        r0 = b * seq
        for h in range(o_blk):
            lhs = tmp[r0:r0 + seq, h * h_pad:(h + 1) * h_pad].astype(compute_dtype)
            out = jnp.dot(lhs, x2t, preferred_element_type=jnp.float32)   # (S, S)
            if lane_dense:
                # Heads concatenated along the lane axis of the output block.
                o_ref[b, :, h * seq:(h + 1) * seq] = out.astype(o_ref.dtype)
            else:
                o_ref[b, h] = out.astype(o_ref.dtype)


# ---------------------------------------------------------------------------
# Block-size / VMEM-budget selection
# ---------------------------------------------------------------------------
def _round_up(x, m):
    return (x + m - 1) // m * m


def _divisors(n):
    return [d for d in range(1, n + 1) if n % d == 0]


def _vmem_budget_bytes():
    """Per-generation scoped-VMEM limit and tile budget (v7x 64 MiB, v5e/v6e 128 MiB)."""
    cap = 64 * 1024 * 1024                       # conservative (v7x-sized) fallback
    try:
        info = pltpu.get_tpu_info()
        cap = int(getattr(info, "vmem_capacity_bytes", cap) or cap)
    except Exception:
        pass
    vmem_limit = min(cap * 3 // 4, 96 * 1024 * 1024)
    # Budget tiles to half the scoped limit: headroom for compiler scratch and
    # for the fallback path where the U block ends up double-buffered.
    return vmem_limit // 2, vmem_limit


def _choose_blocks(B, S, H_pad, O, cbytes, out_bytes, budget_bytes, lane_dense,
                   max_unroll=64):
    """Pick (o_block, batch_block) maximizing MXU fill within the VMEM budget."""

    def working_set(o_blk, bt):
        m, n = bt * S, o_blk * H_pad
        ws = 2 * m * H_pad * cbytes                  # x1 block (double-buffered)
        ws += 2 * bt * H_pad * S * cbytes            # x2^T block (double-buffered)
        ws += n * H_pad * cbytes                     # U group block (single-buffered)
        ws += 2 * m * o_blk * S * out_bytes          # output block (double-buffered)
        ws += m * n * 4                              # stage-1 f32 intermediate
        ws += S * H_pad * (4 + cbytes) + S * S * 4   # per-head temporaries
        return ws

    def search(unroll_cap):
        best, best_score = None, None
        for o_blk in _divisors(O):
            # Lane-dense output blocks must either cover all heads or land on a
            # 128-lane boundary (the (8,128) BlockSpec rule).
            if lane_dense and not (o_blk == O or (o_blk * S) % 128 == 0):
                continue
            for bt in _divisors(B):
                if bt != B and (bt * S) % 8 != 0:
                    continue
                if unroll_cap is not None and o_blk * bt > unroll_cap:
                    continue
                if working_set(o_blk, bt) > budget_bytes:
                    continue
                m, n = bt * S, o_blk * H_pad
                # Prefer: fill MXU M up to 256, wide stage-1 N, 256-multiple N,
                # then larger o_block (fewer x re-fetches), then larger M.
                score = (min(m, 256), min(n, 1024), int(n % 256 == 0), o_blk, m)
                if best_score is None or score > best_score:
                    best, best_score = (o_blk, bt), score
        return best

    best = search(max_unroll) or search(None)
    if best is None:
        raise ValueError(
            "Biaffine Pallas kernel: no (o_block, batch_block) tiling fits the "
            f"{budget_bytes / 2**20:.1f} MiB VMEM budget for B={B}, S={S}, "
            f"H_pad={H_pad}, O={O}; reduce seq_len/hidden_size or raise the budget.")
    return best


# ---------------------------------------------------------------------------
# Wrapper
# ---------------------------------------------------------------------------
def biaffine_forward(inputs1, inputs2, U1, tag_size, rel_num, *,
                     compute_dtype=jnp.bfloat16, out_dtype=jnp.float32,
                     o_block=None, batch_block=None):
    """Pallas TPU implementation of Biaffine.forward.

    inputs1, inputs2: [B, S, H] float32
    U1:               [tag_size*rel_num, H+1, H+1] float32
    returns:          [B, tag_size, rel_num, S, S] in `out_dtype`

    compute_dtype=jnp.bfloat16 is the MXU fast path (f32 accumulation).
    compute_dtype=jnp.float32 reproduces the reference exactly (the stage-1
    intermediate is otherwise rounded to bf16 before the second matmul).
    """
    B, S, H = inputs1.shape
    O = tag_size * rel_num
    Hp = H + 1
    assert U1.shape == (O, Hp, Hp), U1.shape
    assert inputs2.shape == (B, S, H), inputs2.shape

    # Pad the (H+1)-augmented feature dim to a lane-aligned width.  The "ones"
    # column rides in the padding, so the biaffine bias terms need no separate
    # handling in the kernel, and per-head slices start on 128-lane boundaries.
    H_pad = _round_up(Hp, 128)
    lane_dense = (S % 128) != 0

    cbytes = jnp.dtype(compute_dtype).itemsize
    obytes = jnp.dtype(out_dtype).itemsize
    budget, vmem_limit = _vmem_budget_bytes()

    if o_block is None or batch_block is None:
        o_auto, b_auto = _choose_blocks(B, S, H_pad, O, cbytes, obytes, budget,
                                        lane_dense)
        o_block = o_block or o_auto
        batch_block = batch_block or b_auto
    assert O % o_block == 0 and B % batch_block == 0
    num_og, num_bg = O // o_block, B // batch_block

    # ---- wrapper-side packing (plain XLA ops, outside the kernel) ----------
    def augment(x):
        parts = [x.astype(jnp.float32), jnp.ones((B, S, 1), jnp.float32)]
        if H_pad > Hp:
            parts.append(jnp.zeros((B, S, H_pad - Hp), jnp.float32))
        return jnp.concatenate(parts, axis=-1)                    # (B, S, H_pad)

    x1p = augment(inputs1).reshape(B * S, H_pad).astype(compute_dtype)
    x2pt = augment(inputs2).transpose(0, 2, 1).astype(compute_dtype)   # (B, H_pad, S)

    u_pad = jnp.pad(U1.astype(jnp.float32),
                    ((0, 0), (0, H_pad - Hp), (0, H_pad - Hp)))
    u_grp = (u_pad.transpose(1, 0, 2)                       # (H_pad, O, H_pad)
                  .reshape(H_pad, num_og, o_block * H_pad)
                  .transpose(1, 0, 2)                       # (num_og, H_pad, o_block*H_pad)
                  .astype(compute_dtype))

    kernel = functools.partial(
        _biaffine_kernel, bt=batch_block, o_blk=o_block, seq=S, h_pad=H_pad,
        compute_dtype=compute_dtype, lane_dense=lane_dense)

    flops = 2 * B * O * S * H_pad * (H_pad + S)
    bytes_accessed = (O * H_pad * H_pad * cbytes             # U streamed once (resident/group)
                      + num_og * 2 * B * S * H_pad * cbytes  # x1/x2 re-fetched per O-group
                      + B * O * S * S * obytes)              # output written once
    cost = pl.CostEstimate(flops=int(flops), transcendentals=0,
                           bytes_accessed=int(bytes_accessed))

    if lane_dense:
        out_shape = jax.ShapeDtypeStruct((B, S, O * S), out_dtype)
        out_specs = pl.BlockSpec((batch_block, S, o_block * S),
                                 lambda og, bg: (bg, 0, og))
    else:
        out_shape = jax.ShapeDtypeStruct((B, O, S, S), out_dtype)
        out_specs = pl.BlockSpec((batch_block, o_block, S, S),
                                 lambda og, bg: (bg, og, 0, 0))

    def build(u_pipeline_mode):
        u_kwargs = {} if u_pipeline_mode is None else dict(pipeline_mode=u_pipeline_mode)
        return pl.pallas_call(
            kernel,
            out_shape=out_shape,
            grid_spec=pltpu.PrefetchScalarGridSpec(
                num_scalar_prefetch=0,
                # Batch is the innermost grid axis: the U group block keeps the
                # same block index across it and stays VMEM-resident.
                grid=(num_og, num_bg),
                in_specs=[
                    pl.BlockSpec((batch_block * S, H_pad), lambda og, bg: (bg, 0)),
                    pl.BlockSpec((batch_block, H_pad, S), lambda og, bg: (bg, 0, 0)),
                    pl.BlockSpec((1, H_pad, o_block * H_pad),
                                 lambda og, bg: (og, 0, 0), **u_kwargs),
                ],
                out_specs=out_specs),
            compiler_params=pltpu.CompilerParams(
                dimension_semantics=("parallel", "parallel"),
                vmem_limit_bytes=vmem_limit),
            cost_estimate=cost,
        )

    try:
        # The U block index only changes once per inner (batch) sweep, so a
        # single buffer suffices — frees VMEM for larger o_block / batch_block.
        out = jax.block_until_ready(build(pl.Buffered(1))(x1p, x2pt, u_grp))
    except Exception:
        # pipeline_mode / Buffered(1) unsupported on this jax version: fall
        # back to default double-buffering (correct, slightly more VMEM).
        out = build(None)(x1p, x2pt, u_grp)

    if lane_dense:
        out = out.reshape(B, S, O, S).transpose(0, 2, 1, 3)        # -> (B, O, S, S)
    return out.reshape(B, tag_size, rel_num, S, S)


def init_U1(key, hidden_size, tag_size, rel_num):
    """Deterministic xavier-normal-style init for U1 of shape (O, H+1, H+1)."""
    O = tag_size * rel_num
    Hp = hidden_size + 1
    fan_in = Hp * Hp
    fan_out = O * Hp
    std = (2.0 / (fan_in + fan_out)) ** 0.5
    return std * jax.random.normal(key, (O, Hp, Hp), dtype=jnp.float32)


if __name__ == "__main__":
    batch, seq_len, hidden_size, tag_size, rel_num = 2, 8, 32, 3, 4

    key = jax.random.PRNGKey(0)
    k_u, k_x1, k_x2 = jax.random.split(key, 3)

    U1 = init_U1(k_u, hidden_size, tag_size, rel_num)
    inputs1 = jax.random.normal(k_x1, (batch, seq_len, hidden_size), dtype=jnp.float32)
    inputs2 = jax.random.normal(k_x2, (batch, seq_len, hidden_size), dtype=jnp.float32)

    # Exact f32 reference (same semantics as the torch forward).
    ones = jnp.ones((batch, seq_len, 1), dtype=jnp.float32)
    x1a = jnp.concatenate([inputs1, ones], axis=-1)
    x2a = jnp.concatenate([inputs2, ones], axis=-1)
    ref = jnp.einsum('bxi,oij,byj->boxy', x1a, U1, x2a).reshape(
        batch, tag_size, rel_num, seq_len, seq_len)

    # 1) f32 kernel path: strict check of the padding / tiling / layout plumbing.
    out_f32 = jax.block_until_ready(
        biaffine_forward(inputs1, inputs2, U1, tag_size, rel_num,
                         compute_dtype=jnp.float32))
    assert out_f32.shape == ref.shape, (out_f32.shape, ref.shape)
    assert jnp.allclose(out_f32, ref, atol=1e-4, rtol=1e-4)

    # 2) bf16 fast path (MXU peak dtype, f32 accumulation): compare against a
    #    reference computed from bf16-rounded operands.
    out_bf16 = jax.block_until_ready(
        biaffine_forward(inputs1, inputs2, U1, tag_size, rel_num,
                         compute_dtype=jnp.bfloat16))
    ref_bf = jnp.einsum(
        'bxi,oij,byj->boxy',
        x1a.astype(jnp.bfloat16).astype(jnp.float32),
        U1.astype(jnp.bfloat16).astype(jnp.float32),
        x2a.astype(jnp.bfloat16).astype(jnp.float32)).reshape(ref.shape)
    assert jnp.allclose(out_bf16, ref_bf, atol=3e-2, rtol=3e-2)

    print("KERNEL_OK")
</pallas_src>

<mosaic_0001>
module attributes {stable_mosaic.version = 11 : i64} {
  func.func @_biaffine_kernel(%arg0: i32, %arg1: i32, %arg2: memref<16x128xf32, #tpu.memory_space<vmem>>, %arg3: memref<2x128x8xf32, #tpu.memory_space<vmem>>, %arg4: memref<1x128x1536xf32, #tpu.memory_space<vmem>>, %arg5: memref<2x8x96xf32, #tpu.memory_space<vmem>>) attributes {dimension_semantics = [#tpu.dimension_semantics<parallel>, #tpu.dimension_semantics<parallel>], iteration_bounds = array<i64: 1, 1>, scalar_prefetch = 0 : i64, scratch_operands = 0 : i64, tpu.core_type = #tpu.core_type<tc>, window_params = [{transform_indices = @transform_0, window_bounds = array<i64: 16, 128>}, {transform_indices = @transform_1, window_bounds = array<i64: 2, 128, 8>}, {pipeline_mode = #tpu.pipeline_mode<synchronous>, transform_indices = @transform_2, window_bounds = array<i64: 1, 128, 1536>}, {transform_indices = @transform_3, window_bounds = array<i64: 2, 8, 96>}]} {
    %c0 = arith.constant 0 : index
    %c0_0 = arith.constant 0 : index
    %0 = vector.load %arg2[%c0, %c0_0] : memref<16x128xf32, #tpu.memory_space<vmem>>, vector<16x128xf32>
    %c0_1 = arith.constant 0 : index
    %c0_2 = arith.constant 0 : index
    %c0_3 = arith.constant 0 : index
    %1 = vector.load %arg4[%c0_1, %c0_2, %c0_3] : memref<1x128x1536xf32, #tpu.memory_space<vmem>>, vector<1x128x1536xf32>
    %2 = vector.shape_cast %1 : vector<1x128x1536xf32> to vector<128x1536xf32>
    %cst = arith.constant dense<0.000000e+00> : vector<16x1536xf32>
    %3 = tpu.matmul %0, %2, %cst {dimension_numbers = #tpu.dot_dimension_numbers<[1], [0], [0], [1], [0, 0, 1, 1], [], []>} : vector<16x128xf32>, vector<128x1536xf32>, vector<16x1536xf32> -> vector<16x1536xf32>
    %c0_4 = arith.constant 0 : index
    %c0_5 = arith.constant 0 : index
    %c0_6 = arith.constant 0 : index
    %4 = vector.load %arg3[%c0_4, %c0_5, %c0_6] : memref<2x128x8xf32, #tpu.memory_space<vmem>>, vector<1x128x8xf32>
    %5 = vector.shape_cast %4 : vector<1x128x8xf32> to vector<128x8xf32>
    %6 = vector.extract_strided_slice %3 {offsets = [0, 0], sizes = [8, 128], strides = [1, 1]} : vector<16x1536xf32> to vector<8x128xf32>
    %cst_7 = arith.constant dense<0.000000e+00> : vector<8x8xf32>
    %7 = tpu.matmul %6, %5, %cst_7 {dimension_numbers = #tpu.dot_dimension_numbers<[1], [0], [0], [1], [0, 0, 1, 1], [], []>} : vector<8x128xf32>, vector<128x8xf32>, vector<8x8xf32> -> vector<8x8xf32>
    %c0_8 = arith.constant 0 : index
    %c0_9 = arith.constant 0 : index
    %c0_10 = arith.constant 0 : index
    %8 = vector.load %arg5[%c0_8, %c0_9, %c0_10] : memref<2x8x96xf32, #tpu.memory_space<vmem>>, vector<1x8x8xf32>
    %9 = vector.shape_cast %8 : vector<1x8x8xf32> to vector<8x8xf32>
    %10 = vector.shape_cast %7 : vector<8x8xf32> to vector<1x8x8xf32>
    tpu.vector_store %arg5[%c0_8, %c0_9, %c0_10], %10 {strides = array<i32>} : memref<2x8x96xf32, #tpu.memory_space<vmem>>, vector<1x8x8xf32>,
    %11 = vector.extract_strided_slice %3 {offsets = [0, 128], sizes = [8, 128], strides = [1, 1]} : vector<16x1536xf32> to vector<8x128xf32>
    %cst_11 = arith.constant dense<0.000000e+00> : vector<8x8xf32>
    %12 = tpu.matmul %11, %5, %cst_11 {dimension_numbers = #tpu.dot_dimension_numbers<[1], [0], [0], [1], [0, 0, 1, 1], [], []>} : vector<8x128xf32>, vector<128x8xf32>, vector<8x8xf32> -> vector<8x8xf32>
    %c0_12 = arith.constant 0 : index
    %c0_13 = arith.constant 0 : index
    %c8 = arith.constant 8 : index
    %13 = vector.load %arg5[%c0_12, %c0_13, %c8] : memref<2x8x96xf32, #tpu.memory_space<vmem>>, vector<1x8x8xf32>
    %14 = vector.shape_cast %13 : vector<1x8x8xf32> to vector<8x8xf32>
    %15 = vector.shape_cast %12 : vector<8x8xf32> to vector<1x8x8xf32>
    tpu.vector_store %arg5[%c0_12, %c0_13, %c8], %15 {strides = array<i32>} : memref<2x8x96xf32, #tpu.memory_space<vmem>>, vector<1x8x8xf32>,
    %16 = vector.extract_strided_slice %3 {offsets = [0, 256], sizes = [8, 128], strides = [1, 1]} : vector<16x1536xf32> to vector<8x128xf32>
    %cst_14 = arith.constant dense<0.000000e+00> : vector<8x8xf32>
    %17 = tpu.matmul %16, %5, %cst_14 {dimension_numbers = #tpu.dot_dimension_numbers<[1], [0], [0], [1], [0, 0, 1, 1], [], []>} : vector<8x128xf32>, vector<128x8xf32>, vector<8x8xf32> -> vector<8x8xf32>
    %c0_15 = arith.constant 0 : index
    %c0_16 = arith.constant 0 : index
    %c16 = arith.constant 16 : index
    %18 = vector.load %arg5[%c0_15, %c0_16, %c16] : memref<2x8x96xf32, #tpu.memory_space<vmem>>, vector<1x8x8xf32>
    %19 = vector.shape_cast %18 : vector<1x8x8xf32> to vector<8x8xf32>
    %20 = vector.shape_cast %17 : vector<8x8xf32> to vector<1x8x8xf32>
    tpu.vector_store %arg5[%c0_15, %c0_16, %c16], %20 {strides = array<i32>} : memref<2x8x96xf32, #tpu.memory_space<vmem>>, vector<1x8x8xf32>,
    %21 = vector.extract_strided_slice %3 {offsets = [0, 384], sizes = [8, 128], strides = [1, 1]} : vector<16x1536xf32> to vector<8x128xf32>
    %cst_17 = arith.constant dense<0.000000e+00> : vector<8x8xf32>
    %22 = tpu.matmul %21, %5, %cst_17 {dimension_numbers = #tpu.dot_dimension_numbers<[1], [0], [0], [1], [0, 0, 1, 1], [], []>} : vector<8x128xf32>, vector<128x8xf32>, vector<8x8xf32> -> vector<8x8xf32>
    %c0_18 = arith.constant 0 : index
    %c0_19 = arith.constant 0 : index
    %c24 = arith.constant 24 : index
    %23 = vector.load %arg5[%c0_18, %c0_19, %c24] : memref<2x8x96xf32, #tpu.memory_space<vmem>>, vector<1x8x8xf32>
    %24 = vector.shape_cast %23 : vector<1x8x8xf32> to vector<8x8xf32>
    %25 = vector.shape_cast %22 : vector<8x8xf32> to vector<1x8x8xf32>
    tpu.vector_store %arg5[%c0_18, %c0_19, %c24], %25 {strides = array<i32>} : memref<2x8x96xf32, #tpu.memory_space<vmem>>, vector<1x8x8xf32>,
    %26 = vector.extract_strided_slice %3 {offsets = [0, 512], sizes = [8, 128], strides = [1, 1]} : vector<16x1536xf32> to vector<8x128xf32>
    %cst_20 = arith.constant dense<0.000000e+00> : vector<8x8xf32>
    %27 = tpu.matmul %26, %5, %cst_20 {dimension_numbers = #tpu.dot_dimension_numbers<[1], [0], [0], [1], [0, 0, 1, 1], [], []>} : vector<8x128xf32>, vector<128x8xf32>, vector<8x8xf32> -> vector<8x8xf32>
    %c0_21 = arith.constant 0 : index
    %c0_22 = arith.constant 0 : index
    %c32 = arith.constant 32 : index
    %28 = vector.load %arg5[%c0_21, %c0_22, %c32] : memref<2x8x96xf32, #tpu.memory_space<vmem>>, vector<1x8x8xf32>
    %29 = vector.shape_cast %28 : vector<1x8x8xf32> to vector<8x8xf32>
    %30 = vector.shape_cast %27 : vector<8x8xf32> to vector<1x8x8xf32>
    tpu.vector_store %arg5[%c0_21, %c0_22, %c32], %30 {strides = array<i32>} : memref<2x8x96xf32, #tpu.memory_space<vmem>>, vector<1x8x8xf32>,
    %31 = vector.extract_strided_slice %3 {offsets = [0, 640], sizes = [8, 128], strides = [1, 1]} : vector<16x1536xf32> to vector<8x128xf32>
    %cst_23 = arith.constant dense<0.000000e+00> : vector<8x8xf32>
    %32 = tpu.matmul %31, %5, %cst_23 {dimension_numbers = #tpu.dot_dimension_numbers<[1], [0], [0], [1], [0, 0, 1, 1], [], []>} : vector<8x128xf32>, vector<128x8xf32>, vector<8x8xf32> -> vector<8x8xf32>
    %c0_24 = arith.constant 0 : index
    %c0_25 = arith.constant 0 : index
    %c40 = arith.constant 40 : index
    %33 = vector.load %arg5[%c0_24, %c0_25, %c40] : memref<2x8x96xf32, #tpu.memory_space<vmem>>, vector<1x8x8xf32>
    %34 = vector.shape_cast %33 : vector<1x8x8xf32> to vector<8x8xf32>
    %35 = vector.shape_cast %32 : vector<8x8xf32> to vector<1x8x8xf32>
    tpu.vector_store %arg5[%c0_24, %c0_25, %c40], %35 {strides = array<i32>} : memref<2x8x96xf32, #tpu.memory_space<vmem>>, vector<1x8x8xf32>,
    %36 = vector.extract_strided_slice %3 {offsets = [0, 768], sizes = [8, 128], strides = [1, 1]} : vector<16x1536xf32> to vector<8x128xf32>
    %cst_26 = arith.constant dense<0.000000e+00> : vector<8x8xf32>
    %37 = tpu.matmul %36, %5, %cst_26 {dimension_numbers = #tpu.dot_dimension_numbers<[1], [0], [0], [1], [0, 0, 1, 1], [], []>} : vector<8x128xf32>, vector<128x8xf32>, vector<8x8xf32> -> vector<8x8xf32>
    %c0_27 = arith.constant 0 : index
    %c0_28 = arith.constant 0 : index
    %c48 = arith.constant 48 : index
    %38 = vector.load %arg5[%c0_27, %c0_28, %c48] : memref<2x8x96xf32, #tpu.memory_space<vmem>>, vector<1x8x8xf32>
    %39 = vector.shape_cast %38 : vector<1x8x8xf32> to vector<8x8xf32>
    %40 = vector.shape_cast %37 : vector<8x8xf32> to vector<1x8x8xf32>
    tpu.vector_store %arg5[%c0_27, %c0_28, %c48], %40 {strides = array<i32>} : memref<2x8x96xf32, #tpu.memory_space<vmem>>, vector<1x8x8xf32>,
    %41 = vector.extract_strided_slice %3 {offsets = [0, 896], sizes = [8, 128], strides = [1, 1]} : vector<16x1536xf32> to vector<8x128xf32>
    %cst_29 = arith.constant dense<0.000000e+00> : vector<8x8xf32>
    %42 = tpu.matmul %41, %5, %cst_29 {dimension_numbers = #tpu.dot_dimension_numbers<[1], [0], [0], [1], [0, 0, 1, 1], [], []>} : vector<8x128xf32>, vector<128x8xf32>, vector<8x8xf32> -> vector<8x8xf32>
    %c0_30 = arith.constant 0 : index
    %c0_31 = arith.constant 0 : index
    %c56 = arith.constant 56 : index
    %43 = vector.load %arg5[%c0_30, %c0_31, %c56] : memref<2x8x96xf32, #tpu.memory_space<vmem>>, vector<1x8x8xf32>
    %44 = vector.shape_cast %43 : vector<1x8x8xf32> to vector<8x8xf32>
    %45 = vector.shape_cast %42 : vector<8x8xf32> to vector<1x8x8xf32>
    tpu.vector_store %arg5[%c0_30, %c0_31, %c56], %45 {strides = array<i32>} : memref<2x8x96xf32, #tpu.memory_space<vmem>>, vector<1x8x8xf32>,
    %46 = vector.extract_strided_slice %3 {offsets = [0, 1024], sizes = [8, 128], strides = [1, 1]} : vector<16x1536xf32> to vector<8x128xf32>
    %cst_32 = arith.constant dense<0.000000e+00> : vector<8x8xf32>
    %47 = tpu.matmul %46, %5, %cst_32 {dimension_numbers = #tpu.dot_dimension_numbers<[1], [0], [0], [1], [0, 0, 1, 1], [], []>} : vector<8x128xf32>, vector<128x8xf32>, vector<8x8xf32> -> vector<8x8xf32>
    %c0_33 = arith.constant 0 : index
    %c0_34 = arith.constant 0 : index
    %c64 = arith.constant 64 : index
    %48 = vector.load %arg5[%c0_33, %c0_34, %c64] : memref<2x8x96xf32, #tpu.memory_space<vmem>>, vector<1x8x8xf32>
    %49 = vector.shape_cast %48 : vector<1x8x8xf32> to vector<8x8xf32>
    %50 = vector.shape_cast %47 : vector<8x8xf32> to vector<1x8x8xf32>
    tpu.vector_store %arg5[%c0_33, %c0_34, %c64], %50 {strides = array<i32>} : memref<2x8x96xf32, #tpu.memory_space<vmem>>, vector<1x8x8xf32>,
    %51 = vector.extract_strided_slice %3 {offsets = [0, 1152], sizes = [8, 128], strides = [1, 1]} : vector<16x1536xf32> to vector<8x128xf32>
    %cst_35 = arith.constant dense<0.000000e+00> : vector<8x8xf32>
    %52 = tpu.matmul %51, %5, %cst_35 {dimension_numbers = #tpu.dot_dimension_numbers<[1], [0], [0], [1], [0, 0, 1, 1], [], []>} : vector<8x128xf32>, vector<128x8xf32>, vector<8x8xf32> -> vector<8x8xf32>
    %c0_36 = arith.constant 0 : index
    %c0_37 = arith.constant 0 : index
    %c72 = arith.constant 72 : index
    %53 = vector.load %arg5[%c0_36, %c0_37, %c72] : memref<2x8x96xf32, #tpu.memory_space<vmem>>, vector<1x8x8xf32>
    %54 = vector.shape_cast %53 : vector<1x8x8xf32> to vector<8x8xf32>
    %55 = vector.shape_cast %52 : vector<8x8xf32> to vector<1x8x8xf32>
    tpu.vector_store %arg5[%c0_36, %c0_37, %c72], %55 {strides = array<i32>} : memref<2x8x96xf32, #tpu.memory_space<vmem>>, vector<1x8x8xf32>,
    %56 = vector.extract_strided_slice %3 {offsets = [0, 1280], sizes = [8, 128], strides = [1, 1]} : vector<16x1536xf32> to vector<8x128xf32>
    %cst_38 = arith.constant dense<0.000000e+00> : vector<8x8xf32>
    %57 = tpu.matmul %56, %5, %cst_38 {dimension_numbers = #tpu.dot_dimension_numbers<[1], [0], [0], [1], [0, 0, 1, 1], [], []>} : vector<8x128xf32>, vector<128x8xf32>, vector<8x8xf32> -> vector<8x8xf32>
    %c0_39 = arith.constant 0 : index
    %c0_40 = arith.constant 0 : index
    %c80 = arith.constant 80 : index
    %58 = vector.load %arg5[%c0_39, %c0_40, %c80] : memref<2x8x96xf32, #tpu.memory_space<vmem>>, vector<1x8x8xf32>
    %59 = vector.shape_cast %58 : vector<1x8x8xf32> to vector<8x8xf32>
    %60 = vector.shape_cast %57 : vector<8x8xf32> to vector<1x8x8xf32>
    tpu.vector_store %arg5[%c0_39, %c0_40, %c80], %60 {strides = array<i32>} : memref<2x8x96xf32, #tpu.memory_space<vmem>>, vector<1x8x8xf32>,
    %61 = vector.extract_strided_slice %3 {offsets = [0, 1408], sizes = [8, 128], strides = [1, 1]} : vector<16x1536xf32> to vector<8x128xf32>
    %cst_41 = arith.constant dense<0.000000e+00> : vector<8x8xf32>
    %62 = tpu.matmul %61, %5, %cst_41 {dimension_numbers = #tpu.dot_dimension_numbers<[1], [0], [0], [1], [0, 0, 1, 1], [], []>} : vector<8x128xf32>, vector<128x8xf32>, vector<8x8xf32> -> vector<8x8xf32>
    %c0_42 = arith.constant 0 : index
    %c0_43 = arith.constant 0 : index
    %c88 = arith.constant 88 : index
    %63 = vector.load %arg5[%c0_42, %c0_43, %c88] : memref<2x8x96xf32, #tpu.memory_space<vmem>>, vector<1x8x8xf32>
    %64 = vector.shape_cast %63 : vector<1x8x8xf32> to vector<8x8xf32>
    %65 = vector.shape_cast %62 : vector<8x8xf32> to vector<1x8x8xf32>
    tpu.vector_store %arg5[%c0_42, %c0_43, %c88], %65 {strides = array<i32>} : memref<2x8x96xf32, #tpu.memory_space<vmem>>, vector<1x8x8xf32>,
    %c1 = arith.constant 1 : index
    %c0_44 = arith.constant 0 : index
    %c0_45 = arith.constant 0 : index
    %66 = vector.load %arg3[%c1, %c0_44, %c0_45] : memref<2x128x8xf32, #tpu.memory_space<vmem>>, vector<1x128x8xf32>
    %67 = vector.shape_cast %66 : vector<1x128x8xf32> to vector<128x8xf32>
    %68 = vector.extract_strided_slice %3 {offsets = [8, 0], sizes = [8, 128], strides = [1, 1]} : vector<16x1536xf32> to vector<8x128xf32>
    %cst_46 = arith.constant dense<0.000000e+00> : vector<8x8xf32>
    %69 = tpu.matmul %68, %67, %cst_46 {dimension_numbers = #tpu.dot_dimension_numbers<[1], [0], [0], [1], [0, 0, 1, 1], [], []>} : vector<8x128xf32>, vector<128x8xf32>, vector<8x8xf32> -> vector<8x8xf32>
    %c1_47 = arith.constant 1 : index
    %c0_48 = arith.constant 0 : index
    %c0_49 = arith.constant 0 : index
    %70 = vector.load %arg5[%c1_47, %c0_48, %c0_49] : memref<2x8x96xf32, #tpu.memory_space<vmem>>, vector<1x8x8xf32>
    %71 = vector.shape_cast %70 : vector<1x8x8xf32> to vector<8x8xf32>
    %72 = vector.shape_cast %69 : vector<8x8xf32> to vector<1x8x8xf32>
    tpu.vector_store %arg5[%c1_47, %c0_48, %c0_49], %72 {strides = array<i32>} : memref<2x8x96xf32, #tpu.memory_space<vmem>>, vector<1x8x8xf32>,
    %73 = vector.extract_strided_slice %3 {offsets = [8, 128], sizes = [8, 128], strides = [1, 1]} : vector<16x1536xf32> to vector<8x128xf32>
    %cst_50 = arith.constant dense<0.000000e+00> : vector<8x8xf32>
    %74 = tpu.matmul %73, %67, %cst_50 {dimension_numbers = #tpu.dot_dimension_numbers<[1], [0], [0], [1], [0, 0, 1, 1], [], []>} : vector<8x128xf32>, vector<128x8xf32>, vector<8x8xf32> -> vector<8x8xf32>
    %c1_51 = arith.constant 1 : index
    %c0_52 = arith.constant 0 : index
    %c8_53 = arith.constant 8 : index
    %75 = vector.load %arg5[%c1_51, %c0_52, %c8_53] : memref<2x8x96xf32, #tpu.memory_space<vmem>>, vector<1x8x8xf32>
    %76 = vector.shape_cast %75 : vector<1x8x8xf32> to vector<8x8xf32>
    %77 = vector.shape_cast %74 : vector<8x8xf32> to vector<1x8x8xf32>
    tpu.vector_store %arg5[%c1_51, %c0_52, %c8_53], %77 {strides = array<i32>} : memref<2x8x96xf32, #tpu.memory_space<vmem>>, vector<1x8x8xf32>,
    %78 = vector.extract_strided_slice %3 {offsets = [8, 256], sizes = [8, 128], strides = [1, 1]} : vector<16x1536xf32> to vector<8x128xf32>
    %cst_54 = arith.constant dense<0.000000e+00> : vector<8x8xf32>
    %79 = tpu.matmul %78, %67, %cst_54 {dimension_numbers = #tpu.dot_dimension_numbers<[1], [0], [0], [1], [0, 0, 1, 1], [], []>} : vector<8x128xf32>, vector<128x8xf32>, vector<8x8xf32> -> vector<8x8xf32>
    %c1_55 = arith.constant 1 : index
    %c0_56 = arith.constant 0 : index
    %c16_57 = arith.constant 16 : index
    %80 = vector.load %arg5[%c1_55, %c0_56, %c16_57] : memref<2x8x96xf32, #tpu.memory_space<vmem>>, vector<1x8x8xf32>
    %81 = vector.shape_cast %80 : vector<1x8x8xf32> to vector<8x8xf32>
    %82 = vector.shape_cast %79 : vector<8x8xf32> to vector<1x8x8xf32>
    tpu.vector_store %arg5[%c1_55, %c0_56, %c16_57], %82 {strides = array<i32>} : memref<2x8x96xf32, #tpu.memory_space<vmem>>, vector<1x8x8xf32>,
    %83 = vector.extract_strided_slice %3 {offsets = [8, 384], sizes = [8, 128], strides = [1, 1]} : vector<16x1536xf32> to vector<8x128xf32>
    %cst_58 = arith.constant dense<0.000000e+00> : vector<8x8xf32>
    %84 = tpu.matmul %83, %67, %cst_58 {dimension_numbers = #tpu.dot_dimension_numbers<[1], [0], [0], [1], [0, 0, 1, 1], [], []>} : vector<8x128xf32>, vector<128x8xf32>, vector<8x8xf32> -> vector<8x8xf32>
    %c1_59 = arith.constant 1 : index
    %c0_60 = arith.constant 0 : index
    %c24_61 = arith.constant 24 : index
    %85 = vector.load %arg5[%c1_59, %c0_60, %c24_61] : memref<2x8x96xf32, #tpu.memory_space<vmem>>, vector<1x8x8xf32>
    %86 = vector.shape_cast %85 : vector<1x8x8xf32> to vector<8x8xf32>
    %87 = vector.shape_cast %84 : vector<8x8xf32> to vector<1x8x8xf32>
    tpu.vector_store %arg5[%c1_59, %c0_60, %c24_61], %87 {strides = array<i32>} : memref<2x8x96xf32, #tpu.memory_space<vmem>>, vector<1x8x8xf32>,
    %88 = vector.extract_strided_slice %3 {offsets = [8, 512], sizes = [8, 128], strides = [1, 1]} : vector<16x1536xf32> to vector<8x128xf32>
    %cst_62 = arith.constant dense<0.000000e+00> : vector<8x8xf32>
    %89 = tpu.matmul %88, %67, %cst_62 {dimension_numbers = #tpu.dot_dimension_numbers<[1], [0], [0], [1], [0, 0, 1, 1], [], []>} : vector<8x128xf32>, vector<128x8xf32>, vector<8x8xf32> -> vector<8x8xf32>
    %c1_63 = arith.constant 1 : index
    %c0_64 = arith.constant 0 : index
    %c32_65 = arith.constant 32 : index
    %90 = vector.load %arg5[%c1_63, %c0_64, %c32_65] : memref<2x8x96xf32, #tpu.memory_space<vmem>>, vector<1x8x8xf32>
    %91 = vector.shape_cast %90 : vector<1x8x8xf32> to vector<8x8xf32>
    %92 = vector.shape_cast %89 : vector<8x8xf32> to vector<1x8x8xf32>
    tpu.vector_store %arg5[%c1_63, %c0_64, %c32_65], %92 {strides = array<i32>} : memref<2x8x96xf32, #tpu.memory_space<vmem>>, vector<1x8x8xf32>,
    %93 = vector.extract_strided_slice %3 {offsets = [8, 640], sizes = [8, 128], strides = [1, 1]} : vector<16x1536xf32> to vector<8x128xf32>
    %cst_66 = arith.constant dense<0.000000e+00> : vector<8x8xf32>
    %94 = tpu.matmul %93, %67, %cst_66 {dimension_numbers = #tpu.dot_dimension_numbers<[1], [0], [0], [1], [0, 0, 1, 1], [], []>} : vector<8x128xf32>, vector<128x8xf32>, vector<8x8xf32> -> vector<8x8xf32>
    %c1_67 = arith.constant 1 : index
    %c0_68 = arith.constant 0 : index
    %c40_69 = arith.constant 40 : index
    %95 = vector.load %arg5[%c1_67, %c0_68, %c40_69] : memref<2x8x96xf32, #tpu.memory_space<vmem>>, vector<1x8x8xf32>
    %96 = vector.shape_cast %95 : vector<1x8x8xf32> to vector<8x8xf32>
    %97 = vector.shape_cast %94 : vector<8x8xf32> to vector<1x8x8xf32>
    tpu.vector_store %arg5[%c1_67, %c0_68, %c40_69], %97 {strides = array<i32>} : memref<2x8x96xf32, #tpu.memory_space<vmem>>, vector<1x8x8xf32>,
    %98 = vector.extract_strided_slice %3 {offsets = [8, 768], sizes = [8, 128], strides = [1, 1]} : vector<16x1536xf32> to vector<8x128xf32>
    %cst_70 = arith.constant dense<0.000000e+00> : vector<8x8xf32>
    %99 = tpu.matmul %98, %67, %cst_70 {dimension_numbers = #tpu.dot_dimension_numbers<[1], [0], [0], [1], [0, 0, 1, 1], [], []>} : vector<8x128xf32>, vector<128x8xf32>, vector<8x8xf32> -> vector<8x8xf32>
    %c1_71 = arith.constant 1 : index
    %c0_72 = arith.constant 0 : index
    %c48_73 = arith.constant 48 : index
    %100 = vector.load %arg5[%c1_71, %c0_72, %c48_73] : memref<2x8x96xf32, #tpu.memory_space<vmem>>, vector<1x8x8xf32>
    %101 = vector.shape_cast %100 : vector<1x8x8xf32> to vector<8x8xf32>
    %102 = vector.shape_cast %99 : vector<8x8xf32> to vector<1x8x8xf32>
    tpu.vector_store %arg5[%c1_71, %c0_72, %c48_73], %102 {strides = array<i32>} : memref<2x8x96xf32, #tpu.memory_space<vmem>>, vector<1x8x8xf32>,
    %103 = vector.extract_strided_slice %3 {offsets = [8, 896], sizes = [8, 128], strides = [1, 1]} : vector<16x1536xf32> to vector<8x128xf32>
    %cst_74 = arith.constant dense<0.000000e+00> : vector<8x8xf32>
    %104 = tpu.matmul %103, %67, %cst_74 {dimension_numbers = #tpu.dot_dimension_numbers<[1], [0], [0], [1], [0, 0, 1, 1], [], []>} : vector<8x128xf32>, vector<128x8xf32>, vector<8x8xf32> -> vector<8x8xf32>
    %c1_75 = arith.constant 1 : index
    %c0_76 = arith.constant 0 : index
    %c56_77 = arith.constant 56 : index
    %105 = vector.load %arg5[%c1_75, %c0_76, %c56_77] : memref<2x8x96xf32, #tpu.memory_space<vmem>>, vector<1x8x8xf32>
    %106 = vector.shape_cast %105 : vector<1x8x8xf32> to vector<8x8xf32>
    %107 = vector.shape_cast %104 : vector<8x8xf32> to vector<1x8x8xf32>
    tpu.vector_store %arg5[%c1_75, %c0_76, %c56_77], %107 {strides = array<i32>} : memref<2x8x96xf32, #tpu.memory_space<vmem>>, vector<1x8x8xf32>,
    %108 = vector.extract_strided_slice %3 {offsets = [8, 1024], sizes = [8, 128], strides = [1, 1]} : vector<16x1536xf32> to vector<8x128xf32>
    %cst_78 = arith.constant dense<0.000000e+00> : vector<8x8xf32>
    %109 = tpu.matmul %108, %67, %cst_78 {dimension_numbers = #tpu.dot_dimension_numbers<[1], [0], [0], [1], [0, 0, 1, 1], [], []>} : vector<8x128xf32>, vector<128x8xf32>, vector<8x8xf32> -> vector<8x8xf32>
    %c1_79 = arith.constant 1 : index
    %c0_80 = arith.constant 0 : index
    %c64_81 = arith.constant 64 : index
    %110 = vector.load %arg5[%c1_79, %c0_80, %c64_81] : memref<2x8x96xf32, #tpu.memory_space<vmem>>, vector<1x8x8xf32>
    %111 = vector.shape_cast %110 : vector<1x8x8xf32> to vector<8x8xf32>
    %112 = vector.shape_cast %109 : vector<8x8xf32> to vector<1x8x8xf32>
    tpu.vector_store %arg5[%c1_79, %c0_80, %c64_81], %112 {strides = array<i32>} : memref<2x8x96xf32, #tpu.memory_space<vmem>>, vector<1x8x8xf32>,
    %113 = vector.extract_strided_slice %3 {offsets = [8, 1152], sizes = [8, 128], strides = [1, 1]} : vector<16x1536xf32> to vector<8x128xf32>
    %cst_82 = arith.constant dense<0.000000e+00> : vector<8x8xf32>
    %114 = tpu.matmul %113, %67, %cst_82 {dimension_numbers = #tpu.dot_dimension_numbers<[1], [0], [0], [1], [0, 0, 1, 1], [], []>} : vector<8x128xf32>, vector<128x8xf32>, vector<8x8xf32> -> vector<8x8xf32>
    %c1_83 = arith.constant 1 : index
    %c0_84 = arith.constant 0 : index
    %c72_85 = arith.constant 72 : index
    %115 = vector.load %arg5[%c1_83, %c0_84, %c72_85] : memref<2x8x96xf32, #tpu.memory_space<vmem>>, vector<1x8x8xf32>
    %116 = vector.shape_cast %115 : vector<1x8x8xf32> to vector<8x8xf32>
    %117 = vector.shape_cast %114 : vector<8x8xf32> to vector<1x8x8xf32>
    tpu.vector_store %arg5[%c1_83, %c0_84, %c72_85], %117 {strides = array<i32>} : memref<2x8x96xf32, #tpu.memory_space<vmem>>, vector<1x8x8xf32>,
    %118 = vector.extract_strided_slice %3 {offsets = [8, 1280], sizes = [8, 128], strides = [1, 1]} : vector<16x1536xf32> to vector<8x128xf32>
    %cst_86 = arith.constant dense<0.000000e+00> : vector<8x8xf32>
    %119 = tpu.matmul %118, %67, %cst_86 {dimension_numbers = #tpu.dot_dimension_numbers<[1], [0], [0], [1], [0, 0, 1, 1], [], []>} : vector<8x128xf32>, vector<128x8xf32>, vector<8x8xf32> -> vector<8x8xf32>
    %c1_87 = arith.constant 1 : index
    %c0_88 = arith.constant 0 : index
    %c80_89 = arith.constant 80 : index
    %120 = vector.load %arg5[%c1_87, %c0_88, %c80_89] : memref<2x8x96xf32, #tpu.memory_space<vmem>>, vector<1x8x8xf32>
    %121 = vector.shape_cast %120 : vector<1x8x8xf32> to vector<8x8xf32>
    %122 = vector.shape_cast %119 : vector<8x8xf32> to vector<1x8x8xf32>
    tpu.vector_store %arg5[%c1_87, %c0_88, %c80_89], %122 {strides = array<i32>} : memref<2x8x96xf32, #tpu.memory_space<vmem>>, vector<1x8x8xf32>,
    %123 = vector.extract_strided_slice %3 {offsets = [8, 1408], sizes = [8, 128], strides = [1, 1]} : vector<16x1536xf32> to vector<8x128xf32>
    %cst_90 = arith.constant dense<0.000000e+00> : vector<8x8xf32>
    %124 = tpu.matmul %123, %67, %cst_90 {dimension_numbers = #tpu.dot_dimension_numbers<[1], [0], [0], [1], [0, 0, 1, 1], [], []>} : vector<8x128xf32>, vector<128x8xf32>, vector<8x8xf32> -> vector<8x8xf32>
    %c1_91 = arith.constant 1 : index
    %c0_92 = arith.constant 0 : index
    %c88_93 = arith.constant 88 : index
    %125 = vector.load %arg5[%c1_91, %c0_92, %c88_93] : memref<2x8x96xf32, #tpu.memory_space<vmem>>, vector<1x8x8xf32>
    %126 = vector.shape_cast %125 : vector<1x8x8xf32> to vector<8x8xf32>
    %127 = vector.shape_cast %124 : vector<8x8xf32> to vector<1x8x8xf32>
    tpu.vector_store %arg5[%c1_91, %c0_92, %c88_93], %127 {strides = array<i32>} : memref<2x8x96xf32, #tpu.memory_space<vmem>>, vector<1x8x8xf32>,
    return
  }
  func.func @transform_0(%arg0: i32, %arg1: i32) -> (i32, i32) {
    %c0_i32 = arith.constant 0 : i32
    %c0_i32_0 = arith.constant 0 : i32
    return %arg1, %c0_i32 : i32, i32
  }
  func.func @transform_1(%arg0: i32, %arg1: i32) -> (i32, i32, i32) {
    %c0_i32 = arith.constant 0 : i32
    %c0_i32_0 = arith.constant 0 : i32
    %c0_i32_1 = arith.constant 0 : i32
    return %arg1, %c0_i32, %c0_i32_0 : i32, i32, i32
  }
  func.func @transform_2(%arg0: i32, %arg1: i32) -> (i32, i32, i32) {
    %c0_i32 = arith.constant 0 : i32
    %c0_i32_0 = arith.constant 0 : i32
    %c0_i32_1 = arith.constant 0 : i32
    return %arg0, %c0_i32, %c0_i32_0 : i32, i32, i32
  }
  func.func @transform_3(%arg0: i32, %arg1: i32) -> (i32, i32, i32) {
    %c0_i32 = arith.constant 0 : i32
    %c0_i32_0 = arith.constant 0 : i32
    return %arg1, %c0_i32, %arg0 : i32, i32, i32
  }
}

module attributes {stable_mosaic.version = 11 : i64} {
  func.func @_biaffine_kernel(%arg0: i32, %arg1: i32, %arg2: memref<16x128xf32, #tpu.memory_space<vmem>>, %arg3: memref<2x128x8xf32, #tpu.memory_space<vmem>>, %arg4: memref<1x128x1536xf32, #tpu.memory_space<vmem>>, %arg5: memref<2x8x96xf32, #tpu.memory_space<vmem>>) attributes {dimension_semantics = [#tpu.dimension_semantics<parallel>, #tpu.dimension_semantics<parallel>], iteration_bounds = array<i64: 1, 1>, scalar_prefetch = 0 : i64, scratch_operands = 0 : i64, tpu.core_type = #tpu.core_type<tc>, window_params = [{transform_indices = @transform_0, window_bounds = array<i64: 16, 128>}, {transform_indices = @transform_1, window_bounds = array<i64: 2, 128, 8>}, {transform_indices = @transform_2, window_bounds = array<i64: 1, 128, 1536>}, {transform_indices = @transform_3, window_bounds = array<i64: 2, 8, 96>}]} {
    %c0 = arith.constant 0 : index
    %c0_0 = arith.constant 0 : index
    %0 = vector.load %arg2[%c0, %c0_0] : memref<16x128xf32, #tpu.memory_space<vmem>>, vector<16x128xf32>
    %c0_1 = arith.constant 0 : index
    %c0_2 = arith.constant 0 : index
    %c0_3 = arith.constant 0 : index
    %1 = vector.load %arg4[%c0_1, %c0_2, %c0_3] : memref<1x128x1536xf32, #tpu.memory_space<vmem>>, vector<1x128x1536xf32>
    %2 = vector.shape_cast %1 : vector<1x128x1536xf32> to vector<128x1536xf32>
    %cst = arith.constant dense<0.000000e+00> : vector<16x1536xf32>
    %3 = tpu.matmul %0, %2, %cst {dimension_numbers = #tpu.dot_dimension_numbers<[1], [0], [0], [1], [0, 0, 1, 1], [], []>} : vector<16x128xf32>, vector<128x1536xf32>, vector<16x1536xf32> -> vector<16x1536xf32>
    %c0_4 = arith.constant 0 : index
    %c0_5 = arith.constant 0 : index
    %c0_6 = arith.constant 0 : index
    %4 = vector.load %arg3[%c0_4, %c0_5, %c0_6] : memref<2x128x8xf32, #tpu.memory_space<vmem>>, vector<1x128x8xf32>
    %5 = vector.shape_cast %4 : vector<1x128x8xf32> to vector<128x8xf32>
    %6 = vector.extract_strided_slice %3 {offsets = [0, 0], sizes = [8, 128], strides = [1, 1]} : vector<16x1536xf32> to vector<8x128xf32>
    %cst_7 = arith.constant dense<0.000000e+00> : vector<8x8xf32>
    %7 = tpu.matmul %6, %5, %cst_7 {dimension_numbers = #tpu.dot_dimension_numbers<[1], [0], [0], [1], [0, 0, 1, 1], [], []>} : vector<8x128xf32>, vector<128x8xf32>, vector<8x8xf32> -> vector<8x8xf32>
    %c0_8 = arith.constant 0 : index
    %c0_9 = arith.constant 0 : index
    %c0_10 = arith.constant 0 : index
    %8 = vector.load %arg5[%c0_8, %c0_9, %c0_10] : memref<2x8x96xf32, #tpu.memory_space<vmem>>, vector<1x8x8xf32>
    %9 = vector.shape_cast %8 : vector<1x8x8xf32> to vector<8x8xf32>
    %10 = vector.shape_cast %7 : vector<8x8xf32> to vector<1x8x8xf32>
    tpu.vector_store %arg5[%c0_8, %c0_9, %c0_10], %10 {strides = array<i32>} : memref<2x8x96xf32, #tpu.memory_space<vmem>>, vector<1x8x8xf32>,
    %11 = vector.extract_strided_slice %3 {offsets = [0, 128], sizes = [8, 128], strides = [1, 1]} : vector<16x1536xf32> to vector<8x128xf32>
    %cst_11 = arith.constant dense<0.000000e+00> : vector<8x8xf32>
    %12 = tpu.matmul %11, %5, %cst_11 {dimension_numbers = #tpu.dot_dimension_numbers<[1], [0], [0], [1], [0, 0, 1, 1], [], []>} : vector<8x128xf32>, vector<128x8xf32>, vector<8x8xf32> -> vector<8x8xf32>
    %c0_12 = arith.constant 0 : index
    %c0_13 = arith.constant 0 : index
    %c8 = arith.constant 8 : index
    %13 = vector.load %arg5[%c0_12, %c0_13, %c8] : memref<2x8x96xf32, #tpu.memory_space<vmem>>, vector<1x8x8xf32>
    %14 = vector.shape_cast %13 : vector<1x8x8xf32> to vector<8x8xf32>
    %15 = vector.shape_cast %12 : vector<8x8xf32> to vector<1x8x8xf32>
    tpu.vector_store %arg5[%c0_12, %c0_13, %c8], %15 {strides = array<i32>} : memref<2x8x96xf32, #tpu.memory_space<vmem>>, vector<1x8x8xf32>,
    %16 = vector.extract_strided_slice %3 {offsets = [0, 256], sizes = [8, 128], strides = [1, 1]} : vector<16x1536xf32> to vector<8x128xf32>
    %cst_14 = arith.constant dense<0.000000e+00> : vector<8x8xf32>
    %17 = tpu.matmul %16, %5, %cst_14 {dimension_numbers = #tpu.dot_dimension_numbers<[1], [0], [0], [1], [0, 0, 1, 1], [], []>} : vector<8x128xf32>, vector<128x8xf32>, vector<8x8xf32> -> vector<8x8xf32>
    %c0_15 = arith.constant 0 : index
    %c0_16 = arith.constant 0 : index
    %c16 = arith.constant 16 : index
    %18 = vector.load %arg5[%c0_15, %c0_16, %c16] : memref<2x8x96xf32, #tpu.memory_space<vmem>>, vector<1x8x8xf32>
    %19 = vector.shape_cast %18 : vector<1x8x8xf32> to vector<8x8xf32>
    %20 = vector.shape_cast %17 : vector<8x8xf32> to vector<1x8x8xf32>
    tpu.vector_store %arg5[%c0_15, %c0_16, %c16], %20 {strides = array<i32>} : memref<2x8x96xf32, #tpu.memory_space<vmem>>, vector<1x8x8xf32>,
    %21 = vector.extract_strided_slice %3 {offsets = [0, 384], sizes = [8, 128], strides = [1, 1]} : vector<16x1536xf32> to vector<8x128xf32>
    %cst_17 = arith.constant dense<0.000000e+00> : vector<8x8xf32>
    %22 = tpu.matmul %21, %5, %cst_17 {dimension_numbers = #tpu.dot_dimension_numbers<[1], [0], [0], [1], [0, 0, 1, 1], [], []>} : vector<8x128xf32>, vector<128x8xf32>, vector<8x8xf32> -> vector<8x8xf32>
    %c0_18 = arith.constant 0 : index
    %c0_19 = arith.constant 0 : index
    %c24 = arith.constant 24 : index
    %23 = vector.load %arg5[%c0_18, %c0_19, %c24] : memref<2x8x96xf32, #tpu.memory_space<vmem>>, vector<1x8x8xf32>
    %24 = vector.shape_cast %23 : vector<1x8x8xf32> to vector<8x8xf32>
    %25 = vector.shape_cast %22 : vector<8x8xf32> to vector<1x8x8xf32>
    tpu.vector_store %arg5[%c0_18, %c0_19, %c24], %25 {strides = array<i32>} : memref<2x8x96xf32, #tpu.memory_space<vmem>>, vector<1x8x8xf32>,
    %26 = vector.extract_strided_slice %3 {offsets = [0, 512], sizes = [8, 128], strides = [1, 1]} : vector<16x1536xf32> to vector<8x128xf32>
    %cst_20 = arith.constant dense<0.000000e+00> : vector<8x8xf32>
    %27 = tpu.matmul %26, %5, %cst_20 {dimension_numbers = #tpu.dot_dimension_numbers<[1], [0], [0], [1], [0, 0, 1, 1], [], []>} : vector<8x128xf32>, vector<128x8xf32>, vector<8x8xf32> -> vector<8x8xf32>
    %c0_21 = arith.constant 0 : index
    %c0_22 = arith.constant 0 : index
    %c32 = arith.constant 32 : index
    %28 = vector.load %arg5[%c0_21, %c0_22, %c32] : memref<2x8x96xf32, #tpu.memory_space<vmem>>, vector<1x8x8xf32>
    %29 = vector.shape_cast %28 : vector<1x8x8xf32> to vector<8x8xf32>
    %30 = vector.shape_cast %27 : vector<8x8xf32> to vector<1x8x8xf32>
    tpu.vector_store %arg5[%c0_21, %c0_22, %c32], %30 {strides = array<i32>} : memref<2x8x96xf32, #tpu.memory_space<vmem>>, vector<1x8x8xf32>,
    %31 = vector.extract_strided_slice %3 {offsets = [0, 640], sizes = [8, 128], strides = [1, 1]} : vector<16x1536xf32> to vector<8x128xf32>
    %cst_23 = arith.constant dense<0.000000e+00> : vector<8x8xf32>
    %32 = tpu.matmul %31, %5, %cst_23 {dimension_numbers = #tpu.dot_dimension_numbers<[1], [0], [0], [1], [0, 0, 1, 1], [], []>} : vector<8x128xf32>, vector<128x8xf32>, vector<8x8xf32> -> vector<8x8xf32>
    %c0_24 = arith.constant 0 : index
    %c0_25 = arith.constant 0 : index
    %c40 = arith.constant 40 : index
    %33 = vector.load %arg5[%c0_24, %c0_25, %c40] : memref<2x8x96xf32, #tpu.memory_space<vmem>>, vector<1x8x8xf32>
    %34 = vector.shape_cast %33 : vector<1x8x8xf32> to vector<8x8xf32>
    %35 = vector.shape_cast %32 : vector<8x8xf32> to vector<1x8x8xf32>
    tpu.vector_store %arg5[%c0_24, %c0_25, %c40], %35 {strides = array<i32>} : memref<2x8x96xf32, #tpu.memory_space<vmem>>, vector<1x8x8xf32>,
    %36 = vector.extract_strided_slice %3 {offsets = [0, 768], sizes = [8, 128], strides = [1, 1]} : vector<16x1536xf32> to vector<8x128xf32>
    %cst_26 = arith.constant dense<0.000000e+00> : vector<8x8xf32>
    %37 = tpu.matmul %36, %5, %cst_26 {dimension_numbers = #tpu.dot_dimension_numbers<[1], [0], [0], [1], [0, 0, 1, 1], [], []>} : vector<8x128xf32>, vector<128x8xf32>, vector<8x8xf32> -> vector<8x8xf32>
    %c0_27 = arith.constant 0 : index
    %c0_28 = arith.constant 0 : index
    %c48 = arith.constant 48 : index
    %38 = vector.load %arg5[%c0_27, %c0_28, %c48] : memref<2x8x96xf32, #tpu.memory_space<vmem>>, vector<1x8x8xf32>
    %39 = vector.shape_cast %38 : vector<1x8x8xf32> to vector<8x8xf32>
    %40 = vector.shape_cast %37 : vector<8x8xf32> to vector<1x8x8xf32>
    tpu.vector_store %arg5[%c0_27, %c0_28, %c48], %40 {strides = array<i32>} : memref<2x8x96xf32, #tpu.memory_space<vmem>>, vector<1x8x8xf32>,
    %41 = vector.extract_strided_slice %3 {offsets = [0, 896], sizes = [8, 128], strides = [1, 1]} : vector<16x1536xf32> to vector<8x128xf32>
    %cst_29 = arith.constant dense<0.000000e+00> : vector<8x8xf32>
    %42 = tpu.matmul %41, %5, %cst_29 {dimension_numbers = #tpu.dot_dimension_numbers<[1], [0], [0], [1], [0, 0, 1, 1], [], []>} : vector<8x128xf32>, vector<128x8xf32>, vector<8x8xf32> -> vector<8x8xf32>
    %c0_30 = arith.constant 0 : index
    %c0_31 = arith.constant 0 : index
    %c56 = arith.constant 56 : index
    %43 = vector.load %arg5[%c0_30, %c0_31, %c56] : memref<2x8x96xf32, #tpu.memory_space<vmem>>, vector<1x8x8xf32>
    %44 = vector.shape_cast %43 : vector<1x8x8xf32> to vector<8x8xf32>
    %45 = vector.shape_cast %42 : vector<8x8xf32> to vector<1x8x8xf32>
    tpu.vector_store %arg5[%c0_30, %c0_31, %c56], %45 {strides = array<i32>} : memref<2x8x96xf32, #tpu.memory_space<vmem>>, vector<1x8x8xf32>,
    %46 = vector.extract_strided_slice %3 {offsets = [0, 1024], sizes = [8, 128], strides = [1, 1]} : vector<16x1536xf32> to vector<8x128xf32>
    %cst_32 = arith.constant dense<0.000000e+00> : vector<8x8xf32>
    %47 = tpu.matmul %46, %5, %cst_32 {dimension_numbers = #tpu.dot_dimension_numbers<[1], [0], [0], [1], [0, 0, 1, 1], [], []>} : vector<8x128xf32>, vector<128x8xf32>, vector<8x8xf32> -> vector<8x8xf32>
    %c0_33 = arith.constant 0 : index
    %c0_34 = arith.constant 0 : index
    %c64 = arith.constant 64 : index
    %48 = vector.load %arg5[%c0_33, %c0_34, %c64] : memref<2x8x96xf32, #tpu.memory_space<vmem>>, vector<1x8x8xf32>
    %49 = vector.shape_cast %48 : vector<1x8x8xf32> to vector<8x8xf32>
    %50 = vector.shape_cast %47 : vector<8x8xf32> to vector<1x8x8xf32>
    tpu.vector_store %arg5[%c0_33, %c0_34, %c64], %50 {strides = array<i32>} : memref<2x8x96xf32, #tpu.memory_space<vmem>>, vector<1x8x8xf32>,
    %51 = vector.extract_strided_slice %3 {offsets = [0, 1152], sizes = [8, 128], strides = [1, 1]} : vector<16x1536xf32> to vector<8x128xf32>
    %cst_35 = arith.constant dense<0.000000e+00> : vector<8x8xf32>
    %52 = tpu.matmul %51, %5, %cst_35 {dimension_numbers = #tpu.dot_dimension_numbers<[1], [0], [0], [1], [0, 0, 1, 1], [], []>} : vector<8x128xf32>, vector<128x8xf32>, vector<8x8xf32> -> vector<8x8xf32>
    %c0_36 = arith.constant 0 : index
    %c0_37 = arith.constant 0 : index
    %c72 = arith.constant 72 : index
    %53 = vector.load %arg5[%c0_36, %c0_37, %c72] : memref<2x8x96xf32, #tpu.memory_space<vmem>>, vector<1x8x8xf32>
    %54 = vector.shape_cast %53 : vector<1x8x8xf32> to vector<8x8xf32>
    %55 = vector.shape_cast %52 : vector<8x8xf32> to vector<1x8x8xf32>
    tpu.vector_store %arg5[%c0_36, %c0_37, %c72], %55 {strides = array<i32>} : memref<2x8x96xf32, #tpu.memory_space<vmem>>, vector<1x8x8xf32>,
    %56 = vector.extract_strided_slice %3 {offsets = [0, 1280], sizes = [8, 128], strides = [1, 1]} : vector<16x1536xf32> to vector<8x128xf32>
    %cst_38 = arith.constant dense<0.000000e+00> : vector<8x8xf32>
    %57 = tpu.matmul %56, %5, %cst_38 {dimension_numbers = #tpu.dot_dimension_numbers<[1], [0], [0], [1], [0, 0, 1, 1], [], []>} : vector<8x128xf32>, vector<128x8xf32>, vector<8x8xf32> -> vector<8x8xf32>
    %c0_39 = arith.constant 0 : index
    %c0_40 = arith.constant 0 : index
    %c80 = arith.constant 80 : index
    %58 = vector.load %arg5[%c0_39, %c0_40, %c80] : memref<2x8x96xf32, #tpu.memory_space<vmem>>, vector<1x8x8xf32>
    %59 = vector.shape_cast %58 : vector<1x8x8xf32> to vector<8x8xf32>
    %60 = vector.shape_cast %57 : vector<8x8xf32> to vector<1x8x8xf32>
    tpu.vector_store %arg5[%c0_39, %c0_40, %c80], %60 {strides = array<i32>} : memref<2x8x96xf32, #tpu.memory_space<vmem>>, vector<1x8x8xf32>,
    %61 = vector.extract_strided_slice %3 {offsets = [0, 1408], sizes = [8, 128], strides = [1, 1]} : vector<16x1536xf32> to vector<8x128xf32>
    %cst_41 = arith.constant dense<0.000000e+00> : vector<8x8xf32>
    %62 = tpu.matmul %61, %5, %cst_41 {dimension_numbers = #tpu.dot_dimension_numbers<[1], [0], [0], [1], [0, 0, 1, 1], [], []>} : vector<8x128xf32>, vector<128x8xf32>, vector<8x8xf32> -> vector<8x8xf32>
    %c0_42 = arith.constant 0 : index
    %c0_43 = arith.constant 0 : index
    %c88 = arith.constant 88 : index
    %63 = vector.load %arg5[%c0_42, %c0_43, %c88] : memref<2x8x96xf32, #tpu.memory_space<vmem>>, vector<1x8x8xf32>
    %64 = vector.shape_cast %63 : vector<1x8x8xf32> to vector<8x8xf32>
    %65 = vector.shape_cast %62 : vector<8x8xf32> to vector<1x8x8xf32>
    tpu.vector_store %arg5[%c0_42, %c0_43, %c88], %65 {strides = array<i32>} : memref<2x8x96xf32, #tpu.memory_space<vmem>>, vector<1x8x8xf32>,
    %c1 = arith.constant 1 : index
    %c0_44 = arith.constant 0 : index
    %c0_45 = arith.constant 0 : index
    %66 = vector.load %arg3[%c1, %c0_44, %c0_45] : memref<2x128x8xf32, #tpu.memory_space<vmem>>, vector<1x128x8xf32>
    %67 = vector.shape_cast %66 : vector<1x128x8xf32> to vector<128x8xf32>
    %68 = vector.extract_strided_slice %3 {offsets = [8, 0], sizes = [8, 128], strides = [1, 1]} : vector<16x1536xf32> to vector<8x128xf32>
    %cst_46 = arith.constant dense<0.000000e+00> : vector<8x8xf32>
    %69 = tpu.matmul %68, %67, %cst_46 {dimension_numbers = #tpu.dot_dimension_numbers<[1], [0], [0], [1], [0, 0, 1, 1], [], []>} : vector<8x128xf32>, vector<128x8xf32>, vector<8x8xf32> -> vector<8x8xf32>
    %c1_47 = arith.constant 1 : index
    %c0_48 = arith.constant 0 : index
    %c0_49 = arith.constant 0 : index
    %70 = vector.load %arg5[%c1_47, %c0_48, %c0_49] : memref<2x8x96xf32, #tpu.memory_space<vmem>>, vector<1x8x8xf32>
    %71 = vector.shape_cast %70 : vector<1x8x8xf32> to vector<8x8xf32>
    %72 = vector.shape_cast %69 : vector<8x8xf32> to vector<1x8x8xf32>
    tpu.vector_store %arg5[%c1_47, %c0_48, %c0_49], %72 {strides = array<i32>} : memref<2x8x96xf32, #tpu.memory_space<vmem>>, vector<1x8x8xf32>,
    %73 = vector.extract_strided_slice %3 {offsets = [8, 128], sizes = [8, 128], strides = [1, 1]} : vector<16x1536xf32> to vector<8x128xf32>
    %cst_50 = arith.constant dense<0.000000e+00> : vector<8x8xf32>
    %74 = tpu.matmul %73, %67, %cst_50 {dimension_numbers = #tpu.dot_dimension_numbers<[1], [0], [0], [1], [0, 0, 1, 1], [], []>} : vector<8x128xf32>, vector<128x8xf32>, vector<8x8xf32> -> vector<8x8xf32>
    %c1_51 = arith.constant 1 : index
    %c0_52 = arith.constant 0 : index
    %c8_53 = arith.constant 8 : index
    %75 = vector.load %arg5[%c1_51, %c0_52, %c8_53] : memref<2x8x96xf32, #tpu.memory_space<vmem>>, vector<1x8x8xf32>
    %76 = vector.shape_cast %75 : vector<1x8x8xf32> to vector<8x8xf32>
    %77 = vector.shape_cast %74 : vector<8x8xf32> to vector<1x8x8xf32>
    tpu.vector_store %arg5[%c1_51, %c0_52, %c8_53], %77 {strides = array<i32>} : memref<2x8x96xf32, #tpu.memory_space<vmem>>, vector<1x8x8xf32>,
    %78 = vector.extract_strided_slice %3 {offsets = [8, 256], sizes = [8, 128], strides = [1, 1]} : vector<16x1536xf32> to vector<8x128xf32>
    %cst_54 = arith.constant dense<0.000000e+00> : vector<8x8xf32>
    %79 = tpu.matmul %78, %67, %cst_54 {dimension_numbers = #tpu.dot_dimension_numbers<[1], [0], [0], [1], [0, 0, 1, 1], [], []>} : vector<8x128xf32>, vector<128x8xf32>, vector<8x8xf32> -> vector<8x8xf32>
    %c1_55 = arith.constant 1 : index
    %c0_56 = arith.constant 0 : index
    %c16_57 = arith.constant 16 : index
    %80 = vector.load %arg5[%c1_55, %c0_56, %c16_57] : memref<2x8x96xf32, #tpu.memory_space<vmem>>, vector<1x8x8xf32>
    %81 = vector.shape_cast %80 : vector<1x8x8xf32> to vector<8x8xf32>
    %82 = vector.shape_cast %79 : vector<8x8xf32> to vector<1x8x8xf32>
    tpu.vector_store %arg5[%c1_55, %c0_56, %c16_57], %82 {strides = array<i32>} : memref<2x8x96xf32, #tpu.memory_space<vmem>>, vector<1x8x8xf32>,
    %83 = vector.extract_strided_slice %3 {offsets = [8, 384], sizes = [8, 128], strides = [1, 1]} : vector<16x1536xf32> to vector<8x128xf32>
    %cst_58 = arith.constant dense<0.000000e+00> : vector<8x8xf32>
    %84 = tpu.matmul %83, %67, %cst_58 {dimension_numbers = #tpu.dot_dimension_numbers<[1], [0], [0], [1], [0, 0, 1, 1], [], []>} : vector<8x128xf32>, vector<128x8xf32>, vector<8x8xf32> -> vector<8x8xf32>
    %c1_59 = arith.constant 1 : index
    %c0_60 = arith.constant 0 : index
    %c24_61 = arith.constant 24 : index
    %85 = vector.load %arg5[%c1_59, %c0_60, %c24_61] : memref<2x8x96xf32, #tpu.memory_space<vmem>>, vector<1x8x8xf32>
    %86 = vector.shape_cast %85 : vector<1x8x8xf32> to vector<8x8xf32>
    %87 = vector.shape_cast %84 : vector<8x8xf32> to vector<1x8x8xf32>
    tpu.vector_store %arg5[%c1_59, %c0_60, %c24_61], %87 {strides = array<i32>} : memref<2x8x96xf32, #tpu.memory_space<vmem>>, vector<1x8x8xf32>,
    %88 = vector.extract_strided_slice %3 {offsets = [8, 512], sizes = [8, 128], strides = [1, 1]} : vector<16x1536xf32> to vector<8x128xf32>
    %cst_62 = arith.constant dense<0.000000e+00> : vector<8x8xf32>
    %89 = tpu.matmul %88, %67, %cst_62 {dimension_numbers = #tpu.dot_dimension_numbers<[1], [0], [0], [1], [0, 0, 1, 1], [], []>} : vector<8x128xf32>, vector<128x8xf32>, vector<8x8xf32> -> vector<8x8xf32>
    %c1_63 = arith.constant 1 : index
    %c0_64 = arith.constant 0 : index
    %c32_65 = arith.constant 32 : index
    %90 = vector.load %arg5[%c1_63, %c0_64, %c32_65] : memref<2x8x96xf32, #tpu.memory_space<vmem>>, vector<1x8x8xf32>
    %91 = vector.shape_cast %90 : vector<1x8x8xf32> to vector<8x8xf32>
    %92 = vector.shape_cast %89 : vector<8x8xf32> to vector<1x8x8xf32>
    tpu.vector_store %arg5[%c1_63, %c0_64, %c32_65], %92 {strides = array<i32>} : memref<2x8x96xf32, #tpu.memory_space<vmem>>, vector<1x8x8xf32>,
    %93 = vector.extract_strided_slice %3 {offsets = [8, 640], sizes = [8, 128], strides = [1, 1]} : vector<16x1536xf32> to vector<8x128xf32>
    %cst_66 = arith.constant dense<0.000000e+00> : vector<8x8xf32>
    %94 = tpu.matmul %93, %67, %cst_66 {dimension_numbers = #tpu.dot_dimension_numbers<[1], [0], [0], [1], [0, 0, 1, 1], [], []>} : vector<8x128xf32>, vector<128x8xf32>, vector<8x8xf32> -> vector<8x8xf32>
    %c1_67 = arith.constant 1 : index
    %c0_68 = arith.constant 0 : index
    %c40_69 = arith.constant 40 : index
    %95 = vector.load %arg5[%c1_67, %c0_68, %c40_69] : memref<2x8x96xf32, #tpu.memory_space<vmem>>, vector<1x8x8xf32>
    %96 = vector.shape_cast %95 : vector<1x8x8xf32> to vector<8x8xf32>
    %97 = vector.shape_cast %94 : vector<8x8xf32> to vector<1x8x8xf32>
    tpu.vector_store %arg5[%c1_67, %c0_68, %c40_69], %97 {strides = array<i32>} : memref<2x8x96xf32, #tpu.memory_space<vmem>>, vector<1x8x8xf32>,
    %98 = vector.extract_strided_slice %3 {offsets = [8, 768], sizes = [8, 128], strides = [1, 1]} : vector<16x1536xf32> to vector<8x128xf32>
    %cst_70 = arith.constant dense<0.000000e+00> : vector<8x8xf32>
    %99 = tpu.matmul %98, %67, %cst_70 {dimension_numbers = #tpu.dot_dimension_numbers<[1], [0], [0], [1], [0, 0, 1, 1], [], []>} : vector<8x128xf32>, vector<128x8xf32>, vector<8x8xf32> -> vector<8x8xf32>
    %c1_71 = arith.constant 1 : index
    %c0_72 = arith.constant 0 : index
    %c48_73 = arith.constant 48 : index
    %100 = vector.load %arg5[%c1_71, %c0_72, %c48_73] : memref<2x8x96xf32, #tpu.memory_space<vmem>>, vector<1x8x8xf32>
    %101 = vector.shape_cast %100 : vector<1x8x8xf32> to vector<8x8xf32>
    %102 = vector.shape_cast %99 : vector<8x8xf32> to vector<1x8x8xf32>
    tpu.vector_store %arg5[%c1_71, %c0_72, %c48_73], %102 {strides = array<i32>} : memref<2x8x96xf32, #tpu.memory_space<vmem>>, vector<1x8x8xf32>,
    %103 = vector.extract_strided_slice %3 {offsets = [8, 896], sizes = [8, 128], strides = [1, 1]} : vector<16x1536xf32> to vector<8x128xf32>
    %cst_74 = arith.constant dense<0.000000e+00> : vector<8x8xf32>
    %104 = tpu.matmul %103, %67, %cst_74 {dimension_numbers = #tpu.dot_dimension_numbers<[1], [0], [0], [1], [0, 0, 1, 1], [], []>} : vector<8x128xf32>, vector<128x8xf32>, vector<8x8xf32> -> vector<8x8xf32>
    %c1_75 = arith.constant 1 : index
    %c0_76 = arith.constant 0 : index
    %c56_77 = arith.constant 56 : index
    %105 = vector.load %arg5[%c1_75, %c0_76, %c56_77] : memref<2x8x96xf32, #tpu.memory_space<vmem>>, vector<1x8x8xf32>
    %106 = vector.shape_cast %105 : vector<1x8x8xf32> to vector<8x8xf32>
    %107 = vector.shape_cast %104 : vector<8x8xf32> to vector<1x8x8xf32>
    tpu.vector_store %arg5[%c1_75, %c0_76, %c56_77], %107 {strides = array<i32>} : memref<2x8x96xf32, #tpu.memory_space<vmem>>, vector<1x8x8xf32>,
    %108 = vector.extract_strided_slice %3 {offsets = [8, 1024], sizes = [8, 128], strides = [1, 1]} : vector<16x1536xf32> to vector<8x128xf32>
    %cst_78 = arith.constant dense<0.000000e+00> : vector<8x8xf32>
    %109 = tpu.matmul %108, %67, %cst_78 {dimension_numbers = #tpu.dot_dimension_numbers<[1], [0], [0], [1], [0, 0, 1, 1], [], []>} : vector<8x128xf32>, vector<128x8xf32>, vector<8x8xf32> -> vector<8x8xf32>
    %c1_79 = arith.constant 1 : index
    %c0_80 = arith.constant 0 : index
    %c64_81 = arith.constant 64 : index
    %110 = vector.load %arg5[%c1_79, %c0_80, %c64_81] : memref<2x8x96xf32, #tpu.memory_space<vmem>>, vector<1x8x8xf32>
    %111 = vector.shape_cast %110 : vector<1x8x8xf32> to vector<8x8xf32>
    %112 = vector.shape_cast %109 : vector<8x8xf32> to vector<1x8x8xf32>
    tpu.vector_store %arg5[%c1_79, %c0_80, %c64_81], %112 {strides = array<i32>} : memref<2x8x96xf32, #tpu.memory_space<vmem>>, vector<1x8x8xf32>,
    %113 = vector.extract_strided_slice %3 {offsets = [8, 1152], sizes = [8, 128], strides = [1, 1]} : vector<16x1536xf32> to vector<8x128xf32>
    %cst_82 = arith.constant dense<0.000000e+00> : vector<8x8xf32>
    %114 = tpu.matmul %113, %67, %cst_82 {dimension_numbers = #tpu.dot_dimension_numbers<[1], [0], [0], [1], [0, 0, 1, 1], [], []>} : vector<8x128xf32>, vector<128x8xf32>, vector<8x8xf32> -> vector<8x8xf32>
    %c1_83 = arith.constant 1 : index
    %c0_84 = arith.constant 0 : index
    %c72_85 = arith.constant 72 : index
    %115 = vector.load %arg5[%c1_83, %c0_84, %c72_85] : memref<2x8x96xf32, #tpu.memory_space<vmem>>, vector<1x8x8xf32>
    %116 = vector.shape_cast %115 : vector<1x8x8xf32> to vector<8x8xf32>
    %117 = vector.shape_cast %114 : vector<8x8xf32> to vector<1x8x8xf32>
    tpu.vector_store %arg5[%c1_83, %c0_84, %c72_85], %117 {strides = array<i32>} : memref<2x8x96xf32, #tpu.memory_space<vmem>>, vector<1x8x8xf32>,
    %118 = vector.extract_strided_slice %3 {offsets = [8, 1280], sizes = [8, 128], strides = [1, 1]} : vector<16x1536xf32> to vector<8x128xf32>
    %cst_86 = arith.constant dense<0.000000e+00> : vector<8x8xf32>
    %119 = tpu.matmul %118, %67, %cst_86 {dimension_numbers = #tpu.dot_dimension_numbers<[1], [0], [0], [1], [0, 0, 1, 1], [], []>} : vector<8x128xf32>, vector<128x8xf32>, vector<8x8xf32> -> vector<8x8xf32>
    %c1_87 = arith.constant 1 : index
    %c0_88 = arith.constant 0 : index
    %c80_89 = arith.constant 80 : index
    %120 = vector.load %arg5[%c1_87, %c0_88, %c80_89] : memref<2x8x96xf32, #tpu.memory_space<vmem>>, vector<1x8x8xf32>
    %121 = vector.shape_cast %120 : vector<1x8x8xf32> to vector<8x8xf32>
    %122 = vector.shape_cast %119 : vector<8x8xf32> to vector<1x8x8xf32>
    tpu.vector_store %arg5[%c1_87, %c0_88, %c80_89], %122 {strides = array<i32>} : memref<2x8x96xf32, #tpu.memory_space<vmem>>, vector<1x8x8xf32>,
    %123 = vector.extract_strided_slice %3 {offsets = [8, 1408], sizes = [8, 128], strides = [1, 1]} : vector<16x1536xf32> to vector<8x128xf32>
    %cst_90 = arith.constant dense<0.000000e+00> : vector<8x8xf32>
    %124 = tpu.matmul %123, %67, %cst_90 {dimension_numbers = #tpu.dot_dimension_numbers<[1], [0], [0], [1], [0, 0, 1, 1], [], []>} : vector<8x128xf32>, vector<128x8xf32>, vector<8x8xf32> -> vector<8x8xf32>
    %c1_91 = arith.constant 1 : index
    %c0_92 = arith.constant 0 : index
    %c88_93 = arith.constant 88 : index
    %125 = vector.load %arg5[%c1_91, %c0_92, %c88_93] : memref<2x8x96xf32, #tpu.memory_space<vmem>>, vector<1x8x8xf32>
    %126 = vector.shape_cast %125 : vector<1x8x8xf32> to vector<8x8xf32>
    %127 = vector.shape_cast %124 : vector<8x8xf32> to vector<1x8x8xf32>
    tpu.vector_store %arg5[%c1_91, %c0_92, %c88_93], %127 {strides = array<i32>} : memref<2x8x96xf32, #tpu.memory_space<vmem>>, vector<1x8x8xf32>,
    return
  }
  func.func @transform_0(%arg0: i32, %arg1: i32) -> (i32, i32) {
    %c0_i32 = arith.constant 0 : i32
    %c0_i32_0 = arith.constant 0 : i32
    return %arg1, %c0_i32 : i32, i32
  }
  func.func @transform_1(%arg0: i32, %arg1: i32) -> (i32, i32, i32) {
    %c0_i32 = arith.constant 0 : i32
    %c0_i32_0 = arith.constant 0 : i32
    %c0_i32_1 = arith.constant 0 : i32
    return %arg1, %c0_i32, %c0_i32_0 : i32, i32, i32
  }
  func.func @transform_2(%arg0: i32, %arg1: i32) -> (i32, i32, i32) {
    %c0_i32 = arith.constant 0 : i32
    %c0_i32_0 = arith.constant 0 : i32
    %c0_i32_1 = arith.constant 0 : i32
    return %arg0, %c0_i32, %c0_i32_0 : i32, i32, i32
  }
  func.func @transform_3(%arg0: i32, %arg1: i32) -> (i32, i32, i32) {
    %c0_i32 = arith.constant 0 : i32
    %c0_i32_0 = arith.constant 0 : i32
    return %arg1, %c0_i32, %arg0 : i32, i32, i32
  }
}

</mosaic_0001>

<bundles_post_ra>
// kernel: tpu_custom_call.1
= control target key start
LH: loop header
LB: loop body
LE: loop exit
PB: predicated region body
PF: predicated region fallthrough
CT: control target
= control target key end

     0   :  { %8 = vsyncpa [#allocation3], 0  ;;  %s5006_s0 = inlined_call_operand.vmem [shape: f32[16,128], index: 0, kind: input, shape index: {}]   ;;  %s5007_s1 = inlined_call_operand.vmem [shape: f32[2,128,8], index: 1, kind: input, shape index: {}]   ;;  %s5008_s2 = inlined_call_operand.hbm [shape: f32[1,128,1536], index: 2, kind: input, shape index: {}]   ;;  %s5009_s3 = inlined_call_operand.hbm [shape: f32[2,8,96], index: 3, kind: output, shape index: {}]  }
   0x1   :  { %9 = vsyncpa [#allocation4], 0  ;;  %s3866_s12 = smov [#allocation2]  }
   0x2   :  { %s19_s13 = sshll.u32 %s3866_s12, 4  ;;  %s20_s13 = int_to_ptr.vmem [resolvable:$true] %s19_s13 }
   0x3   :  { %s3830_s14 = scalar_lea.vmem %s20_s13, 24576  ;;  %p3835_p1 = scmp.lt.s32.totalorder %s20_s13, %s20_s13 }
   0x4   :  { %p3831_p0 = scmp.ne.s32.totalorder %s20_s13, %s3830_s14  ;;  %p3836_p2 = scmp.lt.s32.totalorder %s3830_s14, %s3830_s14 }
   0x6   :  { %p3837_p3 = por %p3836_p2, %p3835_p1 }
   0x8   :  { %p3838_p4 = pnand %p3837_p3, %p3831_p0 }
   0xa   :  { %3841 = shalt.err (!%p3838_p4)
}
   0xb   :  { %s3867_s15 = smov 1536   ;;  %s3868_s16 = smov 96  }
   0xc   :  { %25 = dma.hbm_to_vmem [thread:$0]  %s5008_s2, 24576, %s20_s13, [#allocation3], %s3867_s15, %s3867_s15, %s3868_s16  }
   0xd   :  { %3862 = dma.done.wait [#allocation3], 24576  }
   0xe   :  { %3863 = vsyncadd [#allocation3], 4294942720  ;;  %v3869_v0 = vmov 0.0   ;;  %v212_v1 = vld [vmem:[#allocation2 + $0x5a8] sm:$0xff]  ;;  %v211_v2 = vld [vmem:[#allocation2 + $0x5a0] sm:$0xff]  ;;  %vm3870_vm0 = vmmov 0  }
   0xf   :  { %287 = vmatprep.mubr.f32.mxu0 %v3869_v0  ;;  %364 = vmatprep.mubr.f32.mxu1 %v3869_v0  ;;  %v200_v3 = vld [vmem:[#allocation2 + $0x548] sm:$0xff]  ;;  %v199_v4 = vld [vmem:[#allocation2 + $0x540] sm:$0xff]  ;;  %v214_v14 = vld [vmem:[#allocation2 + $0x5b8] sm:$0xff]  ;;  %vm771_vm1 = vcmask 64512   ;;  %s3872_s27 = smov 16   ;;  %s3873_s28 = smov 24  }
  0x10   :  { %223 = vmatprep.subr.mxu0 %v212_v1  ;;  %v188_v5 = vld [vmem:[#allocation2 + $0x4e8] sm:$0xff]  ;;  %v187_v6 = vld [vmem:[#allocation2 + $0x4e0] sm:$0xff]  ;;  %300 = vmatprep.subr.mxu1 %v214_v14  ;;  %v213_v16 = vld [vmem:[#allocation2 + $0x5b0] sm:$0xff]  ;;  %s3874_s29 = smov 32   ;;  %s3875_s30 = smov 40   ;;  %vm847_vm2 = vcmask 130112  }
  0x11   :  { %224 = vmatpush1.msra.mxu0 %v211_v2  ;;  %v176_v7 = vld [vmem:[#allocation2 + $0x488] sm:$0xff]  ;;  %v175_v8 = vld [vmem:[#allocation2 + $0x480] sm:$0xff]  ;;  %v202_v17 = vld [vmem:[#allocation2 + $0x558] sm:$0xff]  ;;  %301 = vmatpush1.msra.mxu1 %v213_v16  ;;  %s3876_s4 = smov 48   ;;  %s3877_s5 = smov 56   ;;  %vm923_vm3 = vcmask 195712  }
  0x12   :  { %225 = vmatprep.subr.mxu0 %v200_v3  ;;  %v164_v9 = vld [vmem:[#allocation2 + $0x428] sm:$0xff]  ;;  %v163_v10 = vld [vmem:[#allocation2 + $0x420] sm:$0xff]  ;;  %v201_v19 = vld [vmem:[#allocation2 + $0x550] sm:$0xff]  ;;  %302 = vmatprep.subr.mxu1 %v202_v17  ;;  %s3878_s6 = smov 64   ;;  %vm999_vm4 = vcmask 261312   ;;  %vm1075_vm5 = vcmask 326912  }
  0x13   :  { %226 = vmatpush1.msra.mxu0 %v199_v4  ;;  %v152_v11 = vld [vmem:[#allocation2 + $0x3c8] sm:$0xff]  ;;  %v151_v12 = vld [vmem:[#allocation2 + $0x3c0] sm:$0xff]  ;;  %v190_v20 = vld [vmem:[#allocation2 + $0x4f8] sm:$0xff]  ;;  %303 = vmatpush1.msra.mxu1 %v201_v19  ;;  %vm1151_vm6 = vcmask 392512   ;;  %s3879_s7 = smov 72   ;;  %s3880_s8 = smov 80  }
  0x14   :  { %227 = vmatprep.subr.mxu0 %v188_v5  ;;  %v140_v13 = vld [vmem:[#allocation2 + $0x368] sm:$0xff]  ;;  %v139_v15 = vld [vmem:[#allocation2 + $0x360] sm:$0xff]  ;;  %v189_v22 = vld [vmem:[#allocation2 + $0x4f0] sm:$0xff]  ;;  %304 = vmatprep.subr.mxu1 %v190_v20  ;;  %s3881_s9 = smov 88   ;;  %vm1227_vm7 = vcmask 458112   ;;  %vm1303_vm8 = vcmask 523712  }
  0x15   :  { %228 = vmatpush1.msra.mxu0 %v187_v6  ;;  %v128_v18 = vld [vmem:[#allocation2 + $0x308] sm:$0xff]  ;;  %v127_v21 = vld [vmem:[#allocation2 + $0x300] sm:$0xff]  ;;  %v178_v24 = vld [vmem:[#allocation2 + $0x498] sm:$0xff]  ;;  %305 = vmatpush1.msra.mxu1 %v189_v22  ;;  %vm1379_vm9 = vcmask 589312   ;;  %vm1455_vm10 = vcmask 654912   ;;  %vm1531_vm11 = vcmask 720512  }
  0x16   :  { %229 = vmatprep.subr.mxu0 %v176_v7  ;;  %v116_v23 = vld [vmem:[#allocation2 + $0x2a8] sm:$0xff]  ;;  %v115_v25 = vld [vmem:[#allocation2 + $0x2a0] sm:$0xff]  ;;  %v177_v26 = vld [vmem:[#allocation2 + $0x490] sm:$0xff]  ;;  %306 = vmatprep.subr.mxu1 %v178_v24  ;;  %vm1607_vm12 = vcmask 786112   ;;  %s3882_s10 = smov [#allocation5]  }
  0x17   :  { %230 = vmatpush1.msra.mxu0 %v175_v8  ;;  %v104_v27 = vld [vmem:[#allocation2 + $0x248] sm:$0xff]  ;;  %v166_v28 = vld [vmem:[#allocation2 + $0x438] sm:$0xff]  ;;  %v103_v29 = vld [vmem:[#allocation2 + $0x240] sm:$0xff]  ;;  %307 = vmatpush1.msra.mxu1 %v177_v26  ;;  %s2528_s11 = sshll.u32 %s3882_s10, 4  ;;  %s2529_s11 = int_to_ptr.vmem [resolvable:$true] %s2528_s11 }
  0x18   :  { %231 = vmatprep.subr.mxu0 %v164_v9  ;;  %v165_v30 = vld [vmem:[#allocation2 + $0x430] sm:$0xff]  ;;  %v92_v31 = vld [vmem:[#allocation2 + $0x1e8] sm:$0xff]  ;;  %v154_v32 = vld [vmem:[#allocation2 + $0x3d8] sm:$0xff]  ;;  %308 = vmatprep.subr.mxu1 %v166_v28  ;;  %s3842_s12 = scalar_lea.vmem %s2529_s11, 256  ;;  %p3847_p6 = scmp.lt.s32.totalorder %s2529_s11, %s2529_s11 }
  0x19   :  { %232 = vmatpush1.msra.mxu0 %v163_v10  ;;  %v91_v33 = vld [vmem:[#allocation2 + $0x1e0] sm:$0xff]  ;;  %v153_v34 = vld [vmem:[#allocation2 + $0x3d0] sm:$0xff]  ;;  %v80_v35 = vld [vmem:[#allocation2 + $0x188] sm:$0xff]  ;;  %309 = vmatpush1.msra.mxu1 %v165_v30  ;;  %p3843_p5 = scmp.ne.s32.totalorder %s2529_s11, %s3842_s12  ;;  %p3848_p7 = scmp.lt.s32.totalorder %s3842_s12, %s3842_s12 }
  0x1a   :  { %233 = vmatprep.subr.mxu0 %v152_v11  ;;  %v142_v36 = vld [vmem:[#allocation2 + $0x378] sm:$0xff]  ;;  %v79_v37 = vld [vmem:[#allocation2 + $0x180] sm:$0xff]  ;;  %310 = vmatprep.subr.mxu1 %v154_v32  ;;  %v141_v38 = vld [vmem:[#allocation2 + $0x370] sm:$0xff] }
  0x1b   :  { %234 = vmatpush1.msra.mxu0 %v151_v12  ;;  %v68_v39 = vld [vmem:[#allocation2 + $0x128] sm:$0xff]  ;;  %311 = vmatpush1.msra.mxu1 %v153_v34  ;;  %v130_v40 = vld [vmem:[#allocation2 + $0x318] sm:$0xff]  ;;  %v67_v41 = vld [vmem:[#allocation2 + $0x120] sm:$0xff]  ;;  %p3849_p8 = por %p3848_p7, %p3847_p6 }
  0x1c   :  { %235 = vmatprep.subr.mxu0 %v140_v13  ;;  %312 = vmatprep.subr.mxu1 %v142_v36  ;;  %v129_v42 = vld [vmem:[#allocation2 + $0x310] sm:$0xff]  ;;  %v56_v43 = vld [vmem:[#allocation2 + $0xc8] sm:$0xff]  ;;  %v118_v44 = vld [vmem:[#allocation2 + $0x2b8] sm:$0xff] }
  0x1d   :  { %236 = vmatpush1.msra.mxu0 %v139_v15  ;;  %313 = vmatpush1.msra.mxu1 %v141_v38  ;;  %v55_v45 = vld [vmem:[#allocation2 + $0xc0] sm:$0xff]  ;;  %v117_v46 = vld [vmem:[#allocation2 + $0x2b0] sm:$0xff]  ;;  %v44_v47 = vld [vmem:[#allocation2 + $0x68] sm:$0xff]  ;;  %p3850_p9 = pnand %p3849_p8, %p3843_p5 }
  0x1e   :  { %237 = vmatprep.subr.mxu0 %v128_v18  ;;  %314 = vmatprep.subr.mxu1 %v130_v40  ;;  %v106_v48 = vld [vmem:[#allocation2 + $0x258] sm:$0xff]  ;;  %v43_v49 = vld [vmem:[#allocation2 + $0x60] sm:$0xff]  ;;  %v105_v50 = vld [vmem:[#allocation2 + $0x250] sm:$0xff] }
  0x1f   :  { %238 = vmatpush1.msra.mxu0 %v127_v21  ;;  %315 = vmatpush1.msra.mxu1 %v129_v42  ;;  %v32_v51 = vld [vmem:[#allocation2 + $0x8] sm:$0xff]  ;;  %v94_v52 = vld [vmem:[#allocation2 + $0x1f8] sm:$0xff]  ;;  %v31_v53 = vld [vmem:[#allocation2] sm:$0xff] }
  0x20   :  { %239 = vmatprep.subr.mxu0 %v116_v23  ;;  %316 = vmatprep.subr.mxu1 %v118_v44  ;;  %v93_v54 = vld [vmem:[#allocation2 + $0x1f0] sm:$0xff]  ;;  %v3912_v55 = vld [vmem:[%s5006_s0] sm:$0xff]  ;;  %v82_v56 = vld [vmem:[#allocation2 + $0x198] sm:$0xff] }
  0x21   :  { %240 = vmatpush1.msra.mxu0 %v115_v25  ;;  %317 = vmatpush1.msra.mxu1 %v117_v46  ;;  %v81_v57 = vld [vmem:[#allocation2 + $0x190] sm:$0xff]  ;;  %v216_v58 = vld [vmem:[#allocation2 + $0x5c8] sm:$0xff]  ;;  %v70_v59 = vld [vmem:[#allocation2 + $0x138] sm:$0xff] }
  0x22   :  { %241 = vmatprep.subr.mxu0 %v104_v27  ;;  %318 = vmatprep.subr.mxu1 %v106_v48  ;;  %v215_v60 = vld [vmem:[#allocation2 + $0x5c0] sm:$0xff]  ;;  %v69_v61 = vld [vmem:[#allocation2 + $0x130] sm:$0xff]  ;;  %v204_v62 = vld [vmem:[#allocation2 + $0x568] sm:$0xff] }
  0x23   :  { %242 = vmatpush1.msra.mxu0 %v103_v29  ;;  %319 = vmatpush1.msra.mxu1 %v105_v50  ;;  %v58_v63 = vld [vmem:[#allocation2 + $0xd8] sm:$0xff]  ;;  %v203_v1 = vld [vmem:[#allocation2 + $0x560] sm:$0xff]  ;;  %v57_v2 = vld [vmem:[#allocation2 + $0xd0] sm:$0xff] }
  0x24   :  { %243 = vmatprep.subr.mxu0 %v92_v31  ;;  %320 = vmatprep.subr.mxu1 %v94_v52  ;;  %v192_v3 = vld [vmem:[#allocation2 + $0x508] sm:$0xff]  ;;  %v46_v4 = vld [vmem:[#allocation2 + $0x78] sm:$0xff]  ;;  %v191_v5 = vld [vmem:[#allocation2 + $0x500] sm:$0xff] }
  0x25   :  { %244 = vmatpush1.msra.mxu0 %v91_v33  ;;  %321 = vmatpush1.msra.mxu1 %v93_v54  ;;  %v45_v6 = vld [vmem:[#allocation2 + $0x70] sm:$0xff]  ;;  %v180_v7 = vld [vmem:[#allocation2 + $0x4a8] sm:$0xff]  ;;  %v34_v8 = vld [vmem:[#allocation2 + $0x18] sm:$0xff] }
  0x26   :  { %245 = vmatprep.subr.mxu0 %v80_v35  ;;  %322 = vmatprep.subr.mxu1 %v82_v56  ;;  %v179_v9 = vld [vmem:[#allocation2 + $0x4a0] sm:$0xff]  ;;  %v33_v10 = vld [vmem:[#allocation2 + $0x10] sm:$0xff]  ;;  %v168_v11 = vld [vmem:[#allocation2 + $0x448] sm:$0xff] }
  0x27   :  { %246 = vmatpush1.msra.mxu0 %v79_v37  ;;  %323 = vmatpush1.msra.mxu1 %v81_v57  ;;  %v167_v12 = vld [vmem:[#allocation2 + $0x440] sm:$0xff]  ;;  %v156_v13 = vld [vmem:[#allocation2 + $0x3e8] sm:$0xff]  ;;  %v218_v15 = vld [vmem:[#allocation2 + $0x5d8] sm:$0xff] }
  0x28   :  { %247 = vmatprep.subr.mxu0 %v68_v39  ;;  %324 = vmatprep.subr.mxu1 %v70_v59  ;;  %v155_v14 = vld [vmem:[#allocation2 + $0x3e0] sm:$0xff]  ;;  %v144_v16 = vld [vmem:[#allocation2 + $0x388] sm:$0xff]  ;;  %v217_v20 = vld [vmem:[#allocation2 + $0x5d0] sm:$0xff] }
  0x29   :  { %248 = vmatpush1.msra.mxu0 %v67_v41  ;;  %325 = vmatpush1.msra.mxu1 %v69_v61  ;;  %v3919_v17 = vld [vmem:[%s5006_s0 + $0x8] sm:$0xff]  ;;  %v143_v18 = vld [vmem:[#allocation2 + $0x380] sm:$0xff]  ;;  %v206_v22 = vld [vmem:[#allocation2 + $0x578] sm:$0xff] }
  0x2a   :  { %249 = vmatprep.subr.mxu0 %v56_v43  ;;  %326 = vmatprep.subr.mxu1 %v58_v63  ;;  %v132_v19 = vld [vmem:[#allocation2 + $0x328] sm:$0xff]  ;;  %v131_v21 = vld [vmem:[#allocation2 + $0x320] sm:$0xff]  ;;  %v205_v24 = vld [vmem:[#allocation2 + $0x570] sm:$0xff] }
  0x2b   :  { %250 = vmatpush1.msra.mxu0 %v55_v45  ;;  %327 = vmatpush1.msra.mxu1 %v57_v2  ;;  %v120_v23 = vld [vmem:[#allocation2 + $0x2c8] sm:$0xff]  ;;  %v119_v25 = vld [vmem:[#allocation2 + $0x2c0] sm:$0xff]  ;;  %v194_v26 = vld [vmem:[#allocation2 + $0x518] sm:$0xff] }
  0x2c   :  { %251 = vmatprep.subr.mxu0 %v44_v47  ;;  %328 = vmatprep.subr.mxu1 %v46_v4  ;;  %v108_v27 = vld [vmem:[#allocation2 + $0x268] sm:$0xff]  ;;  %v193_v28 = vld [vmem:[#allocation2 + $0x510] sm:$0xff]  ;;  %v107_v29 = vld [vmem:[#allocation2 + $0x260] sm:$0xff] }
  0x2d   :  { %252 = vmatpush1.msra.mxu0 %v43_v49  ;;  %329 = vmatpush1.msra.mxu1 %v45_v6  ;;  %v182_v30 = vld [vmem:[#allocation2 + $0x4b8] sm:$0xff]  ;;  %v96_v31 = vld [vmem:[#allocation2 + $0x208] sm:$0xff]  ;;  %v181_v32 = vld [vmem:[#allocation2 + $0x4b0] sm:$0xff] }
  0x2e   :  { %253 = vmatprep.subr.mxu0 %v32_v51  ;;  %330 = vmatprep.subr.mxu1 %v34_v8  ;;  %v95_v33 = vld [vmem:[#allocation2 + $0x200] sm:$0xff]  ;;  %v170_v34 = vld [vmem:[#allocation2 + $0x458] sm:$0xff]  ;;  %v84_v35 = vld [vmem:[#allocation2 + $0x1a8] sm:$0xff] }
  0x2f   :  { %254 = vmatpush1.msra.mxu0 %v31_v53  ;;  %331 = vmatpush1.msra.mxu1 %v33_v10  ;;  %v169_v36 = vld [vmem:[#allocation2 + $0x450] sm:$0xff]  ;;  %v83_v37 = vld [vmem:[#allocation2 + $0x1a0] sm:$0xff]  ;;  %v158_v38 = vld [vmem:[#allocation2 + $0x3f8] sm:$0xff] }
  0x30   :  { %288 = vmatmul.mubr.f32.vlgmr.msra.gmra.mxu0 %v3912_v55  ;;  %377 = vmatprep.subr.mxu0 %v216_v58  ;;  %v72_v39 = vld [vmem:[#allocation2 + $0x148] sm:$0xff]  ;;  %v157_v40 = vld [vmem:[#allocation2 + $0x3f0] sm:$0xff]  ;;  %v71_v41 = vld [vmem:[#allocation2 + $0x140] sm:$0xff] }
  0x31   :  { %378 = vmatpush1.msra.mxu0 %v215_v60  ;;  %365 = vmatmul.mubr.f32.vlgmr.msra.gmra.mxu1 %v3912_v55  ;;  %v146_v42 = vld [vmem:[#allocation2 + $0x398] sm:$0xff]  ;;  %v60_v43 = vld [vmem:[#allocation2 + $0xe8] sm:$0xff]  ;;  %v145_v44 = vld [vmem:[#allocation2 + $0x390] sm:$0xff] }
  0x32   :  { %379 = vmatprep.subr.mxu0 %v204_v62  ;;  %293 = vmatprep.mubr.f32.mxu0 %v3869_v0  ;;  %v59_v45 = vld [vmem:[#allocation2 + $0xe0] sm:$0xff]  ;;  %v134_v46 = vld [vmem:[#allocation2 + $0x338] sm:$0xff]  ;;  %v48_v47 = vld [vmem:[#allocation2 + $0x88] sm:$0xff] }
  0x33   :  { %380 = vmatpush1.msra.mxu0 %v203_v1  ;;  %454 = vmatprep.subr.mxu1 %v218_v15  ;;  %v133_v48 = vld [vmem:[#allocation2 + $0x330] sm:$0xff]  ;;  %v47_v49 = vld [vmem:[#allocation2 + $0x80] sm:$0xff]  ;;  %v122_v50 = vld [vmem:[#allocation2 + $0x2d8] sm:$0xff] }
  0x34   :  { %381 = vmatprep.subr.mxu0 %v192_v3  ;;  %294 = vmatmul.mubr.f32.gmra.mxu0 %v3919_v17  ;;  %v36_v51 = vld [vmem:[#allocation2 + $0x28] sm:$0xff]  ;;  %v121_v52 = vld [vmem:[#allocation2 + $0x2d0] sm:$0xff]  ;;  %v35_v53 = vld [vmem:[#allocation2 + $0x20] sm:$0xff] }
  0x35   :  { %382 = vmatpush1.msra.mxu0 %v191_v5  ;;  %441 = vmatprep.mubr.f32.mxu0 %v3869_v0  ;;  %v110_v54 = vld [vmem:[#allocation2 + $0x278] sm:$0xff]  ;;  %v109_v56 = vld [vmem:[#allocation2 + $0x270] sm:$0xff]  ;;  %v220_v59 = vld [vmem:[#allocation2 + $0x5e8] sm:$0xff] }
  0x36   :  { %383 = vmatprep.subr.mxu0 %v180_v7  ;;  %455 = vmatpush1.msra.mxu1 %v217_v20  ;;  %v98_v57 = vld [vmem:[#allocation2 + $0x218] sm:$0xff]  ;;  %v97_v58 = vld [vmem:[#allocation2 + $0x210] sm:$0xff]  ;;  %v219_v63 = vld [vmem:[#allocation2 + $0x5e0] sm:$0xff] }
  0x37   :  { %384 = vmatpush1.msra.mxu0 %v179_v9  ;;  %456 = vmatprep.subr.mxu1 %v206_v22  ;;  %v86_v60 = vld [vmem:[#allocation2 + $0x1b8] sm:$0xff]  ;;  %v85_v61 = vld [vmem:[#allocation2 + $0x1b0] sm:$0xff]  ;;  %v208_v2 = vld [vmem:[#allocation2 + $0x588] sm:$0xff] }
  0x38   :  { %385 = vmatprep.subr.mxu0 %v168_v11  ;;  %457 = vmatpush1.msra.mxu1 %v205_v24  ;;  %v74_v62 = vld [vmem:[#allocation2 + $0x158] sm:$0xff]  ;;  %v73_v1 = vld [vmem:[#allocation2 + $0x150] sm:$0xff]  ;;  %v207_v4 = vld [vmem:[#allocation2 + $0x580] sm:$0xff] }
  0x39   :  { %386 = vmatpush1.msra.mxu0 %v167_v12  ;;  %458 = vmatprep.subr.mxu1 %v194_v26  ;;  %v62_v3 = vld [vmem:[#allocation2 + $0xf8] sm:$0xff]  ;;  %v61_v5 = vld [vmem:[#allocation2 + $0xf0] sm:$0xff]  ;;  %v196_v6 = vld [vmem:[#allocation2 + $0x528] sm:$0xff] }
  0x3a   :  { %387 = vmatprep.subr.mxu0 %v156_v13  ;;  %459 = vmatpush1.msra.mxu1 %v193_v28  ;;  %v50_v7 = vld [vmem:[#allocation2 + $0x98] sm:$0xff]  ;;  %v195_v8 = vld [vmem:[#allocation2 + $0x520] sm:$0xff]  ;;  %v49_v9 = vld [vmem:[#allocation2 + $0x90] sm:$0xff] }
  0x3b   :  { %388 = vmatpush1.msra.mxu0 %v155_v14  ;;  %460 = vmatprep.subr.mxu1 %v182_v30  ;;  %v184_v10 = vld [vmem:[#allocation2 + $0x4c8] sm:$0xff]  ;;  %v38_v11 = vld [vmem:[#allocation2 + $0x38] sm:$0xff]  ;;  %v183_v12 = vld [vmem:[#allocation2 + $0x4c0] sm:$0xff] }
  0x3c   :  { %389 = vmatprep.subr.mxu0 %v144_v16  ;;  %461 = vmatpush1.msra.mxu1 %v181_v32  ;;  %v37_v13 = vld [vmem:[#allocation2 + $0x30] sm:$0xff]  ;;  %v172_v14 = vld [vmem:[#allocation2 + $0x468] sm:$0xff]  ;;  %v171_v15 = vld [vmem:[#allocation2 + $0x460] sm:$0xff] }
  0x3d   :  { %390 = vmatpush1.msra.mxu0 %v143_v18  ;;  %462 = vmatprep.subr.mxu1 %v170_v34  ;;  %v160_v16 = vld [vmem:[#allocation2 + $0x408] sm:$0xff]  ;;  %v159_v18 = vld [vmem:[#allocation2 + $0x400] sm:$0xff] }
  0x3e   :  { %391 = vmatprep.subr.mxu0 %v132_v19  ;;  %463 = vmatpush1.msra.mxu1 %v169_v36  ;;  %v222_v19 = vld [vmem:[#allocation2 + $0x5f8] sm:$0xff]  ;;  %v148_v20 = vld [vmem:[#allocation2 + $0x3a8] sm:$0xff]  ;;  %v135_v24 = vld [vmem:[#allocation2 + $0x340] sm:$0xff] }
  0x3f   :  { %392 = vmatpush1.msra.mxu0 %v131_v21  ;;  %464 = vmatprep.subr.mxu1 %v158_v38  ;;  %v147_v21 = vld [vmem:[#allocation2 + $0x3a0] sm:$0xff]  ;;  %v136_v22 = vld [vmem:[#allocation2 + $0x348] sm:$0xff] }
  0x40   :  { %393 = vmatprep.subr.mxu0 %v120_v23  ;;  %465 = vmatpush1.msra.mxu1 %v157_v40  ;;  %v221_v23 = vld [vmem:[#allocation2 + $0x5f0] sm:$0xff]  ;;  %v124_v26 = vld [vmem:[#allocation2 + $0x2e8] sm:$0xff]  ;;  %v123_v28 = vld [vmem:[#allocation2 + $0x2e0] sm:$0xff] }
  0x41   :  { %394 = vmatpush1.msra.mxu0 %v119_v25  ;;  %466 = vmatprep.subr.mxu1 %v146_v42  ;;  %v210_v25 = vld [vmem:[#allocation2 + $0x598] sm:$0xff]  ;;  %v112_v30 = vld [vmem:[#allocation2 + $0x288] sm:$0xff]  ;;  %v111_v32 = vld [vmem:[#allocation2 + $0x280] sm:$0xff] }
  0x42   :  { %395 = vmatprep.subr.mxu0 %v108_v27  ;;  %467 = vmatpush1.msra.mxu1 %v145_v44  ;;  %v209_v27 = vld [vmem:[#allocation2 + $0x590] sm:$0xff]  ;;  %v100_v34 = vld [vmem:[#allocation2 + $0x228] sm:$0xff]  ;;  %v99_v36 = vld [vmem:[#allocation2 + $0x220] sm:$0xff] }
  0x43   :  { %396 = vmatpush1.msra.mxu0 %v107_v29  ;;  %468 = vmatprep.subr.mxu1 %v134_v46  ;;  %v198_v29 = vld [vmem:[#allocation2 + $0x538] sm:$0xff]  ;;  %v88_v38 = vld [vmem:[#allocation2 + $0x1c8] sm:$0xff]  ;;  %v87_v40 = vld [vmem:[#allocation2 + $0x1c0] sm:$0xff] }
  0x44   :  { %397 = vmatprep.subr.mxu0 %v96_v31  ;;  %469 = vmatpush1.msra.mxu1 %v133_v48  ;;  %v197_v31 = vld [vmem:[#allocation2 + $0x530] sm:$0xff]  ;;  %v76_v42 = vld [vmem:[#allocation2 + $0x168] sm:$0xff]  ;;  %v75_v44 = vld [vmem:[#allocation2 + $0x160] sm:$0xff] }
  0x45   :  { %398 = vmatpush1.msra.mxu0 %v95_v33  ;;  %470 = vmatprep.subr.mxu1 %v122_v50  ;;  %v186_v33 = vld [vmem:[#allocation2 + $0x4d8] sm:$0xff]  ;;  %v64_v46 = vld [vmem:[#allocation2 + $0x108] sm:$0xff]  ;;  %v63_v48 = vld [vmem:[#allocation2 + $0x100] sm:$0xff] }
  0x46   :  { %399 = vmatprep.subr.mxu0 %v84_v35  ;;  %471 = vmatpush1.msra.mxu1 %v121_v52  ;;  %v185_v35 = vld [vmem:[#allocation2 + $0x4d0] sm:$0xff]  ;;  %v52_v50 = vld [vmem:[#allocation2 + $0xa8] sm:$0xff]  ;;  %v51_v52 = vld [vmem:[#allocation2 + $0xa0] sm:$0xff] }
  0x47   :  { %400 = vmatpush1.msra.mxu0 %v83_v37  ;;  %472 = vmatprep.subr.mxu1 %v110_v54  ;;  %v174_v37 = vld [vmem:[#allocation2 + $0x478] sm:$0xff]  ;;  %v40_v54 = vld [vmem:[#allocation2 + $0x48] sm:$0xff] }
  0x48   :  { %401 = vmatprep.subr.mxu0 %v72_v39  ;;  %473 = vmatpush1.msra.mxu1 %v109_v56  ;;  %v173_v39 = vld [vmem:[#allocation2 + $0x470] sm:$0xff] }
  0x49   :  { %402 = vmatpush1.msra.mxu0 %v71_v41  ;;  %474 = vmatprep.subr.mxu1 %v98_v57  ;;  %v162_v41 = vld [vmem:[#allocation2 + $0x418] sm:$0xff]  ;;  %v125_v56 = vld [vmem:[#allocation2 + $0x2f0] sm:$0xff]  ;;  %v39_v57 = vld [vmem:[#allocation2 + $0x40] sm:$0xff] }
  0x4a   :  { %403 = vmatprep.subr.mxu0 %v60_v43  ;;  %370 = vmatprep.mubr.f32.mxu1 %v3869_v0  ;;  %v161_v43 = vld [vmem:[#allocation2 + $0x410] sm:$0xff] }
  0x4b   :  { %404 = vmatpush1.msra.mxu0 %v59_v45  ;;  %475 = vmatpush1.msra.mxu1 %v97_v58  ;;  %v150_v45 = vld [vmem:[#allocation2 + $0x3b8] sm:$0xff] }
  0x4c   :  { %405 = vmatprep.subr.mxu0 %v48_v47  ;;  %476 = vmatprep.subr.mxu1 %v86_v60  ;;  %v149_v47 = vld [vmem:[#allocation2 + $0x3b0] sm:$0xff]  ;;  %v114_v58 = vld [vmem:[#allocation2 + $0x298] sm:$0xff] }
  0x4d   :  { %406 = vmatpush1.msra.mxu0 %v47_v49  ;;  %371 = vmatmul.mubr.f32.gmra.mxu1 %v3919_v17  ;;  %v138_v49 = vld [vmem:[#allocation2 + $0x358] sm:$0xff] }
  0x4e   :  { %407 = vmatprep.subr.mxu0 %v36_v51  ;;  %477 = vmatpush1.msra.mxu1 %v85_v61  ;;  %v137_v51 = vld [vmem:[#allocation2 + $0x350] sm:$0xff]  ;;  %v102_v60 = vld [vmem:[#allocation2 + $0x238] sm:$0xff] }
  0x4f   :  { %408 = vmatpush1.msra.mxu0 %v35_v53  ;;  %518 = vmatprep.mubr.f32.mxu1 %v3869_v0  ;;  %v126_v53 = vld [vmem:[#allocation2 + $0x2f8] sm:$0xff]  ;;  %v101_v61 = vld [vmem:[#allocation2 + $0x230] sm:$0xff] }
  0x50   :  { %442 = vmatmul.mubr.f32.vlgmr.msra.gmra.mxu0 %v3912_v55  ;;  %531 = vmatprep.subr.mxu0 %v220_v59  ;;  %v113_v59 = vld [vmem:[#allocation2 + $0x290] sm:$0xff] }
  0x51   :  { %478 = vmatprep.subr.mxu1 %v74_v62  ;;  %532 = vmatpush1.msra.mxu0 %v219_v63  ;;  %v90_v62 = vld [vmem:[#allocation2 + $0x1d8] sm:$0xff]  ;;  %v89_v63 = vld [vmem:[#allocation2 + $0x1d0] sm:$0xff] }
  0x52   :  { %479 = vmatpush1.msra.mxu1 %v73_v1  ;;  %533 = vmatprep.subr.mxu0 %v208_v2  ;;  %v78_v1 = vld [vmem:[#allocation2 + $0x178] sm:$0xff] }
  0x53   :  { %480 = vmatprep.subr.mxu1 %v62_v3  ;;  %534 = vmatpush1.msra.mxu0 %v207_v4  ;;  %v3938_v2 = vld [vmem:[%s5007_s1 + $0x78] sm:$0xff]  ;;  %v77_v3 = vld [vmem:[#allocation2 + $0x170] sm:$0xff] }
  0x54   :  { %481 = vmatpush1.msra.mxu1 %v61_v5  ;;  %535 = vmatprep.subr.mxu0 %v196_v6  ;;  %v66_v4 = vld [vmem:[#allocation2 + $0x118] sm:$0xff]  ;;  %v3945_v5 = vld [vmem:[%s5007_s1 + $0x70] sm:$0xff] }
  0x55   :  { %482 = vmatprep.subr.mxu1 %v50_v7  ;;  %536 = vmatpush1.msra.mxu0 %v195_v8  ;;  %v65_v6 = vld [vmem:[#allocation2 + $0x110] sm:$0xff]  ;;  %v54_v7 = vld [vmem:[#allocation2 + $0xb8] sm:$0xff]  ;;  %v3952_v8 = vld [vmem:[%s5007_s1 + $0x68] sm:$0xff] }
  0x56   :  { %483 = vmatpush1.msra.mxu1 %v49_v9  ;;  %537 = vmatprep.subr.mxu0 %v184_v10  ;;  %v53_v9 = vld [vmem:[#allocation2 + $0xb0] sm:$0xff]  ;;  %v42_v10 = vld [vmem:[#allocation2 + $0x58] sm:$0xff] }
  0x57   :  { %484 = vmatprep.subr.mxu1 %v38_v11  ;;  %538 = vmatpush1.msra.mxu0 %v183_v12  ;;  %v3959_v11 = vld [vmem:[%s5007_s1 + $0x60] sm:$0xff]  ;;  %v41_v12 = vld [vmem:[#allocation2 + $0x50] sm:$0xff] }
  0x58   :  { %485 = vmatpush1.msra.mxu1 %v37_v13  ;;  %539 = vmatprep.subr.mxu0 %v172_v14  ;;  %v3967_v13 = vld [vmem:[%s5007_s1 + $0x58] sm:$0xff]  ;;  %v3975_v14 = vld [vmem:[%s5007_s1 + $0x50] sm:$0xff] }
  0x59   :  { %519 = vmatmul.mubr.f32.vlgmr.msra.gmra.mxu1 %v3912_v55  ;;  %540 = vmatpush1.msra.mxu0 %v171_v15  ;;  %v3984_v15 = vld [vmem:[%s5007_s1 + $0x48] sm:$0xff] }
  0x5a   :  { %541 = vmatprep.subr.mxu0 %v160_v16  ;;  %447 = vmatprep.mubr.f32.mxu0 %v3869_v0  ;;  %v4002_v16 = vld [vmem:[%s5007_s1 + $0x38] sm:$0xff] }
  0x5b   :  { %542 = vmatpush1.msra.mxu0 %v159_v18  ;;  %608 = vmatprep.subr.mxu1 %v222_v19  ;;  %v4011_v18 = vld [vmem:[%s5007_s1 + $0x30] sm:$0xff]  ;;  %v4020_v19 = vld [vmem:[%s5007_s1 + $0x28] sm:$0xff] }
  0x5c   :  { %543 = vmatprep.subr.mxu0 %v148_v20  ;;  %448 = vmatmul.mubr.f32.gmra.mxu0 %v3919_v17  ;;  %v4029_v20 = vld [vmem:[%s5007_s1 + $0x20] sm:$0xff] }
  0x5d   :  { %544 = vmatpush1.msra.mxu0 %v147_v21  ;;  %595 = vmatprep.mubr.f32.mxu0 %v3869_v0  ;;  %v4038_v21 = vld [vmem:[%s5007_s1 + $0x18] sm:$0xff] }
  0x5e   :  { %545 = vmatprep.subr.mxu0 %v136_v22  ;;  %609 = vmatpush1.msra.mxu1 %v221_v23  ;;  %v4051_v22 = vld [vmem:[%s5007_s1 + $0x10] sm:$0xff]  ;;  %v4060_v23 = vld [vmem:[%s5007_s1 + $0x8] sm:$0xff] }
  0x5f   :  { %546 = vmatpush1.msra.mxu0 %v135_v24  ;;  %610 = vmatprep.subr.mxu1 %v210_v25  ;;  %v4073_v24 = vld [vmem:[%s5007_s1] sm:$0xff] }
  0x60   :  { %547 = vmatprep.subr.mxu0 %v124_v26  ;;  %611 = vmatpush1.msra.mxu1 %v209_v27 }
  0x61   :  { %548 = vmatpush1.msra.mxu0 %v123_v28  ;;  %612 = vmatprep.subr.mxu1 %v198_v29 }
  0x62   :  { %549 = vmatprep.subr.mxu0 %v112_v30  ;;  %613 = vmatpush1.msra.mxu1 %v197_v31 }
  0x63   :  { %550 = vmatpush1.msra.mxu0 %v111_v32  ;;  %614 = vmatprep.subr.mxu1 %v186_v33 }
  0x64   :  { %551 = vmatprep.subr.mxu0 %v100_v34  ;;  %615 = vmatpush1.msra.mxu1 %v185_v35 }
  0x65   :  { %552 = vmatpush1.msra.mxu0 %v99_v36  ;;  %616 = vmatprep.subr.mxu1 %v174_v37 }
  0x66   :  { %553 = vmatprep.subr.mxu0 %v88_v38  ;;  %617 = vmatpush1.msra.mxu1 %v173_v39 }
  0x67   :  { %554 = vmatpush1.msra.mxu0 %v87_v40  ;;  %618 = vmatprep.subr.mxu1 %v162_v41 }
  0x68   :  { %555 = vmatprep.subr.mxu0 %v76_v42  ;;  %619 = vmatpush1.msra.mxu1 %v161_v43  ;;  %v4444_v43 = vld [vmem:[%s5007_s1 + $0xf8] sm:$0xff] }
  0x69   :  { %556 = vmatpush1.msra.mxu0 %v75_v44  ;;  %620 = vmatprep.subr.mxu1 %v150_v45  ;;  %v4452_v45 = vld [vmem:[%s5007_s1 + $0xf0] sm:$0xff] }
  0x6a   :  { %557 = vmatprep.subr.mxu0 %v64_v46  ;;  %621 = vmatpush1.msra.mxu1 %v149_v47  ;;  %v4461_v46 = vld [vmem:[%s5007_s1 + $0xe8] sm:$0xff]  ;;  %v4470_v47 = vld [vmem:[%s5007_s1 + $0xe0] sm:$0xff] }
  0x6b   :  { %558 = vmatpush1.msra.mxu0 %v63_v48  ;;  %622 = vmatprep.subr.mxu1 %v138_v49  ;;  %v4479_v48 = vld [vmem:[%s5007_s1 + $0xd8] sm:$0xff]  ;;  %v4488_v49 = vld [vmem:[%s5007_s1 + $0xd0] sm:$0xff] }
  0x6c   :  { %559 = vmatprep.subr.mxu0 %v52_v50  ;;  %623 = vmatpush1.msra.mxu1 %v137_v51  ;;  %v4497_v50 = vld [vmem:[%s5007_s1 + $0xc8] sm:$0xff]  ;;  %v4506_v51 = vld [vmem:[%s5007_s1 + $0xc0] sm:$0xff] }
  0x6d   :  { %560 = vmatpush1.msra.mxu0 %v51_v52  ;;  %624 = vmatprep.subr.mxu1 %v126_v53  ;;  %v4515_v52 = vld [vmem:[%s5007_s1 + $0xb8] sm:$0xff]  ;;  %v4524_v53 = vld [vmem:[%s5007_s1 + $0xb0] sm:$0xff] }
  0x6e   :  { %561 = vmatprep.subr.mxu0 %v40_v54  ;;  %625 = vmatpush1.msra.mxu1 %v125_v56 }
  0x6f   :  { %562 = vmatpush1.msra.mxu0 %v39_v57  ;;  %626 = vmatprep.subr.mxu1 %v114_v58  ;;  %v4537_v57 = vld [vmem:[%s5007_s1 + $0xa8] sm:$0xff]  ;;  %v4546_v58 = vld [vmem:[%s5007_s1 + $0xa0] sm:$0xff] }
  0x70   :  { %596 = vmatmul.mubr.f32.vlgmr.msra.gmra.mxu0 %v3912_v55  ;;  %627 = vmatpush1.msra.mxu1 %v113_v59 }
  0x71   :  { %628 = vmatprep.subr.mxu1 %v102_v60  ;;  %524 = vmatprep.mubr.f32.mxu1 %v3869_v0 }
  0x72   :  { %629 = vmatpush1.msra.mxu1 %v101_v61  ;;  %2964 = vmatprep.subr.mxu0 %v3869_v0  ;;  %v4559_v61 = vld [vmem:[%s5007_s1 + $0x98] sm:$0xff] }
  0x73   :  { %630 = vmatprep.subr.mxu1 %v90_v62  ;;  %525 = vmatmul.mubr.f32.gmra.mxu1 %v3919_v17 }
  0x74   :  { %631 = vmatpush1.msra.mxu1 %v89_v63  ;;  %672 = vmatprep.mubr.f32.mxu1 %v3869_v0  ;;  %v4568_v63 = vld [vmem:[%s5007_s1 + $0x90] sm:$0xff] }
  0x75   :  { %632 = vmatprep.subr.mxu1 %v78_v1  ;;  %2965 = vmatpush3.msra.mxu0 %v3938_v2 }
  0x76   :  { %633 = vmatpush1.msra.mxu1 %v77_v3  ;;  %2966 = vmatprep.subr.mxu0 %v3869_v0  ;;  %v4578_v3 = vld [vmem:[%s5007_s1 + $0x88] sm:$0xff] }
  0x77   :  { %634 = vmatprep.subr.mxu1 %v66_v4  ;;  %2967 = vmatpush3.msra.mxu0 %v3945_v5 }
  0x78   :  { %635 = vmatpush1.msra.mxu1 %v65_v6  ;;  %2968 = vmatprep.subr.mxu0 %v3869_v0 }
  0x79   :  { %636 = vmatprep.subr.mxu1 %v54_v7  ;;  %2969 = vmatpush3.msra.mxu0 %v3952_v8 }
  0x7a   :  { %637 = vmatpush1.msra.mxu1 %v53_v9  ;;  %2970 = vmatprep.subr.mxu0 %v3869_v0 }
  0x7b   :  { %638 = vmatprep.subr.mxu1 %v42_v10  ;;  %2971 = vmatpush3.msra.mxu0 %v3959_v11 }
  0x7c   :  { %639 = vmatpush1.msra.mxu1 %v41_v12  ;;  %2972 = vmatprep.subr.mxu0 %v3869_v0 }
  0x7d   :  { %673 = vmatmul.mubr.f32.vlgmr.msra.gmra.mxu1 %v3912_v55  ;;  %2999 = vmatprep.subr.mxu1 %v3869_v0  ;;  %v3993_v55 = vld [vmem:[%s5007_s1 + $0x40] sm:$0xff] }
  0x7e   :  { %3000 = vmatpush3.msra.mxu1 %v3938_v2  ;;  %2973 = vmatpush3.msra.mxu0 %v3967_v13 }
  0x7f   :  { %3001 = vmatprep.subr.mxu1 %v3869_v0  ;;  %2974 = vmatprep.subr.mxu0 %v3869_v0 }
  0x80   :  { %3002 = vmatpush3.msra.mxu1 %v3945_v5  ;;  %2975 = vmatpush3.msra.mxu0 %v3975_v14 }
  0x81   :  { %3003 = vmatprep.subr.mxu1 %v3869_v0  ;;  %2976 = vmatprep.subr.mxu0 %v3869_v0 }
  0x82   :  { %3004 = vmatpush3.msra.mxu1 %v3952_v8  ;;  %2977 = vmatpush3.msra.mxu0 %v3984_v15 }
  0x83   :  { %3005 = vmatprep.subr.mxu1 %v3869_v0  ;;  %2978 = vmatprep.subr.mxu0 %v3869_v0 }
  0x84   :  { %3006 = vmatpush3.msra.mxu1 %v3959_v11  ;;  %2979 = vmatpush3.msra.mxu0 %v3993_v55 }
  0x85   :  { %3007 = vmatprep.subr.mxu1 %v3869_v0  ;;  %2980 = vmatprep.subr.mxu0 %v3869_v0 }
  0x86   :  { %3008 = vmatpush3.msra.mxu1 %v3967_v13  ;;  %2981 = vmatpush3.msra.mxu0 %v4002_v16 }
  0x87   :  { %3009 = vmatprep.subr.mxu1 %v3869_v0  ;;  %2982 = vmatprep.subr.mxu0 %v3869_v0 }
  0x88   :  { %3010 = vmatpush3.msra.mxu1 %v3975_v14  ;;  %2983 = vmatpush3.msra.mxu0 %v4011_v18 }
  0x89   :  { %3011 = vmatprep.subr.mxu1 %v3869_v0  ;;  %2984 = vmatprep.subr.mxu0 %v3869_v0 }
  0x8a   :  { %3012 = vmatpush3.msra.mxu1 %v3984_v15  ;;  %2985 = vmatpush3.msra.mxu0 %v4020_v19 }
  0x8b   :  { %3013 = vmatprep.subr.mxu1 %v3869_v0  ;;  %2986 = vmatprep.subr.mxu0 %v3869_v0 }
  0x8c   :  { %3014 = vmatpush3.msra.mxu1 %v3993_v55  ;;  %2987 = vmatpush3.msra.mxu0 %v4029_v20 }
  0x8d   :  { %3015 = vmatprep.subr.mxu1 %v3869_v0  ;;  %2988 = vmatprep.subr.mxu0 %v3869_v0 }
  0x8e   :  { %3016 = vmatpush3.msra.mxu1 %v4002_v16  ;;  %2989 = vmatpush3.msra.mxu0 %v4038_v21 }
  0x8f   :  { %3017 = vmatprep.subr.mxu1 %v3869_v0  ;;  %601 = vmatprep.mubr.f32.mxu0 %v3869_v0 }
  0x90   :  { %3018 = vmatpush3.msra.mxu1 %v4011_v18  ;;  %2990 = vmatprep.subr.mxu0 %v3869_v0 }
  0x91   :  { %3019 = vmatprep.subr.mxu1 %v3869_v0  ;;  %602 = vmatmul.mubr.f32.gmra.mxu0 %v3919_v17 }
  0x92   :  { %3020 = vmatpush3.msra.mxu1 %v4020_v19  ;;  %2991 = vmatpush3.msra.mxu0 %v4051_v22 }
  0x93   :  { %3021 = vmatprep.subr.mxu1 %v3869_v0  ;;  %2992 = vmatprep.subr.mxu0 %v3869_v0 }
  0x94   :  { %3022 = vmatpush3.msra.mxu1 %v4029_v20  ;;  %2993 = vmatpush3.msra.mxu0 %v4060_v23 }
  0x95   :  { %3023 = vmatprep.subr.mxu1 %v3869_v0  ;;  %678 = vmatprep.mubr.f32.mxu1 %v3869_v0 }
  0x96   :  { %3024 = vmatpush3.msra.mxu1 %v4038_v21  ;;  %2994 = vmatprep.subr.mxu0 %v3869_v0 }
  0x97   :  { %3025 = vmatprep.subr.mxu1 %v3869_v0  ;;  %679 = vmatmul.mubr.f32.gmra.mxu1 %v3919_v17 }
  0x98   :  { %3026 = vmatpush3.msra.mxu1 %v4051_v22  ;;  %2995 = vmatpush3.msra.mxu0 %v4073_v24 }
  0x99   :  { %3027 = vmatprep.subr.mxu1 %v3869_v0  ;;  %2996 = vmatprep.mubr.msk.f32.mxu0 %vm3870_vm0, %v3869_v0 }
  0x9a   :  { %3028 = vmatpush3.msra.mxu1 %v4060_v23  ;;  %3034 = vmatprep.subr.mxu0 %v3869_v0 }
  0x9b   :  { %3029 = vmatprep.subr.mxu1 %v3869_v0  ;;  %3031 = vmatprep.mubr.msk.f32.mxu1 %vm3870_vm0, %v3869_v0 }
  0x9c   :  { %3030 = vmatpush3.msra.mxu1 %v4073_v24 }
  0x9d   :  { %3069 = vmatprep.subr.mxu1 %v3869_v0 }
  0xf0   :  { %v289_v17 = vpop.f32.mrf.mxu0 }
  0xf1   :  { %2997 = vmatmul.mubr.f32.vlgmr.msra.gmra.mxu0 %v289_v17  ;;  %v366_v26 = vpop.f32.mrf.mxu1 }
  0xf2   :  { %3035 = vmatpush3.msra.mxu0 %v3938_v2  ;;  %v291_v25 = vpop.f32.mrf.mxu0  ;;  %3066 = vmatprep.mubr.msk.f32.mxu0 %vm3870_vm0, %v3869_v0 }
  0xf3   :  { %3036 = vmatprep.subr.mxu0 %v3869_v0  ;;  %3032 = vmatmul.mubr.f32.vlgmr.msra.gmra.mxu1 %v291_v25  ;;  %v368_v27 = vpop.f32.mrf.mxu1 }
  0xf4   :  { %3037 = vmatpush3.msra.mxu0 %v3945_v5  ;;  %3070 = vmatpush3.msra.mxu1 %v3938_v2  ;;  %v4198_v28 = vpop.f32.mrf.mxu0 }
  0xf5   :  { %3038 = vmatprep.subr.mxu0 %v3869_v0  ;;  %3071 = vmatprep.subr.mxu1 %v3869_v0 }
  0xf6   :  { %3039 = vmatpush3.msra.mxu0 %v3952_v8  ;;  %3072 = vmatpush3.msra.mxu1 %v3945_v5  ;;  %v4208_v29 = vpop.f32.mrf.mxu0 }
  0xf7   :  { %3040 = vmatprep.subr.mxu0 %v3869_v0  ;;  %3073 = vmatprep.subr.mxu1 %v3869_v0 }
  0xf8   :  { %3041 = vmatpush3.msra.mxu0 %v3959_v11  ;;  %3074 = vmatpush3.msra.mxu1 %v3952_v8 }
  0xf9   :  { %3042 = vmatprep.subr.mxu0 %v3869_v0  ;;  %3075 = vmatprep.subr.mxu1 %v3869_v0 }
  0xfa   :  { %3043 = vmatpush3.msra.mxu0 %v3967_v13  ;;  %3076 = vmatpush3.msra.mxu1 %v3959_v11 }
  0xfb   :  { %3044 = vmatprep.subr.mxu0 %v3869_v0  ;;  %3077 = vmatprep.subr.mxu1 %v3869_v0 }
  0xfc   :  { %3045 = vmatpush3.msra.mxu0 %v3975_v14  ;;  %3078 = vmatpush3.msra.mxu1 %v3967_v13 }
  0xfd   :  { %3046 = vmatprep.subr.mxu0 %v3869_v0  ;;  %3079 = vmatprep.subr.mxu1 %v3869_v0 }
  0xfe   :  { %3047 = vmatpush3.msra.mxu0 %v3984_v15  ;;  %3080 = vmatpush3.msra.mxu1 %v3975_v14 }
  0xff   :  { %3048 = vmatprep.subr.mxu0 %v3869_v0  ;;  %3081 = vmatprep.subr.mxu1 %v3869_v0 }
 0x100   :  { %3049 = vmatpush3.msra.mxu0 %v3993_v55  ;;  %3082 = vmatpush3.msra.mxu1 %v3984_v15 }
 0x101   :  { %3050 = vmatprep.subr.mxu0 %v3869_v0  ;;  %3083 = vmatprep.subr.mxu1 %v3869_v0 }
 0x102   :  { %3051 = vmatpush3.msra.mxu0 %v4002_v16  ;;  %3084 = vmatpush3.msra.mxu1 %v3993_v55 }
 0x103   :  { %3052 = vmatprep.subr.mxu0 %v3869_v0  ;;  %3085 = vmatprep.subr.mxu1 %v3869_v0 }
 0x104   :  { %3053 = vmatpush3.msra.mxu0 %v4011_v18  ;;  %3086 = vmatpush3.msra.mxu1 %v4002_v16 }
 0x105   :  { %3054 = vmatprep.subr.mxu0 %v3869_v0  ;;  %3087 = vmatprep.subr.mxu1 %v3869_v0 }
 0x106   :  { %3055 = vmatpush3.msra.mxu0 %v4020_v19  ;;  %3088 = vmatpush3.msra.mxu1 %v4011_v18 }
 0x107   :  { %3056 = vmatprep.subr.mxu0 %v3869_v0  ;;  %3089 = vmatprep.subr.mxu1 %v3869_v0 }
 0x108   :  { %3057 = vmatpush3.msra.mxu0 %v4029_v20  ;;  %3090 = vmatpush3.msra.mxu1 %v4020_v19 }
 0x109   :  { %3058 = vmatprep.subr.mxu0 %v3869_v0  ;;  %3091 = vmatprep.subr.mxu1 %v3869_v0 }
 0x10a   :  { %3059 = vmatpush3.msra.mxu0 %v4038_v21  ;;  %3092 = vmatpush3.msra.mxu1 %v4029_v20 }
 0x10b   :  { %3060 = vmatprep.subr.mxu0 %v3869_v0  ;;  %3093 = vmatprep.subr.mxu1 %v3869_v0 }
 0x10c   :  { %3061 = vmatpush3.msra.mxu0 %v4051_v22  ;;  %3094 = vmatpush3.msra.mxu1 %v4038_v21 }
 0x10d   :  { %3062 = vmatprep.subr.mxu0 %v3869_v0  ;;  %3095 = vmatprep.subr.mxu1 %v3869_v0  ;;  %v4270_v32 = vpop.f32.mrf.mxu1 }
 0x10e   :  { %3063 = vmatpush3.msra.mxu0 %v4060_v23  ;;  %3096 = vmatpush3.msra.mxu1 %v4051_v22 }
 0x10f   :  { %3064 = vmatprep.subr.mxu0 %v3869_v0  ;;  %3097 = vmatprep.subr.mxu1 %v3869_v0  ;;  %v4280_v33 = vpop.f32.mrf.mxu1 }
 0x110   :  { %3065 = vmatpush3.msra.mxu0 %v4073_v24  ;;  %3098 = vmatpush3.msra.mxu1 %v4060_v23  ;;  %v443_v30 = vpop.f32.mrf.mxu0 }
 0x111   :  { %3067 = vmatmul.mubr.f32.vlgmr.msra.gmra.mxu0 %v366_v26  ;;  %3099 = vmatprep.subr.mxu1 %v3869_v0 }
 0x112   :  { %3104 = vmatprep.subr.mxu0 %v3869_v0  ;;  %3100 = vmatpush3.msra.mxu1 %v4073_v24  ;;  %v445_v31 = vpop.f32.mrf.mxu0 }
 0x113   :  { %3101 = vmatprep.mubr.msk.f32.mxu1 %vm3870_vm0, %v3869_v0  ;;  %3105 = vmatpush3.msra.mxu0 %v3938_v2 }
 0x114   :  { %3102 = vmatmul.mubr.f32.vlgmr.msra.gmra.mxu1 %v368_v27  ;;  %3106 = vmatprep.subr.mxu0 %v3869_v0 }
 0x115   :  { %3139 = vmatprep.subr.mxu1 %v3869_v0  ;;  %3107 = vmatpush3.msra.mxu0 %v3945_v5 }
 0x116   :  { %3140 = vmatpush3.msra.mxu1 %v3938_v2  ;;  %3108 = vmatprep.subr.mxu0 %v3869_v0 }
 0x117   :  { %3141 = vmatprep.subr.mxu1 %v3869_v0  ;;  %3109 = vmatpush3.msra.mxu0 %v3952_v8 }
 0x118   :  { %3142 = vmatpush3.msra.mxu1 %v3945_v5  ;;  %3110 = vmatprep.subr.mxu0 %v3869_v0 }
 0x119   :  { %3143 = vmatprep.subr.mxu1 %v3869_v0  ;;  %3111 = vmatpush3.msra.mxu0 %v3959_v11  ;;  %v520_v34 = vpop.f32.mrf.mxu1 }
 0x11a   :  { %3144 = vmatpush3.msra.mxu1 %v3952_v8  ;;  %3112 = vmatprep.subr.mxu0 %v3869_v0 }
 0x11b   :  { %3145 = vmatprep.subr.mxu1 %v3869_v0  ;;  %3113 = vmatpush3.msra.mxu0 %v3967_v13  ;;  %v522_v35 = vpop.f32.mrf.mxu1 }
 0x11c   :  { %3146 = vmatpush3.msra.mxu1 %v3959_v11  ;;  %3114 = vmatprep.subr.mxu0 %v3869_v0  ;;  %v4342_v36 = vpop.f32.mrf.mxu0 }
 0x11d   :  { %3147 = vmatprep.subr.mxu1 %v3869_v0  ;;  %3115 = vmatpush3.msra.mxu0 %v3975_v14 }
 0x11e   :  { %3148 = vmatpush3.msra.mxu1 %v3967_v13  ;;  %3116 = vmatprep.subr.mxu0 %v3869_v0  ;;  %v4352_v37 = vpop.f32.mrf.mxu0 }
 0x11f   :  { %3149 = vmatprep.subr.mxu1 %v3869_v0  ;;  %3117 = vmatpush3.msra.mxu0 %v3984_v15 }
 0x120   :  { %3150 = vmatpush3.msra.mxu1 %v3975_v14  ;;  %3118 = vmatprep.subr.mxu0 %v3869_v0 }
 0x121   :  { %3151 = vmatprep.subr.mxu1 %v3869_v0  ;;  %3119 = vmatpush3.msra.mxu0 %v3993_v55 }
 0x122   :  { %3152 = vmatpush3.msra.mxu1 %v3984_v15  ;;  %3120 = vmatprep.subr.mxu0 %v3869_v0 }
 0x123   :  { %3153 = vmatprep.subr.mxu1 %v3869_v0  ;;  %3121 = vmatpush3.msra.mxu0 %v4002_v16 }
 0x124   :  { %3154 = vmatpush3.msra.mxu1 %v3993_v55  ;;  %3122 = vmatprep.subr.mxu0 %v3869_v0 }
 0x125   :  { %3155 = vmatprep.subr.mxu1 %v3869_v0  ;;  %3123 = vmatpush3.msra.mxu0 %v4011_v18 }
 0x126   :  { %3156 = vmatpush3.msra.mxu1 %v4002_v16  ;;  %3124 = vmatprep.subr.mxu0 %v3869_v0 }
 0x127   :  { %3157 = vmatprep.subr.mxu1 %v3869_v0  ;;  %3125 = vmatpush3.msra.mxu0 %v4020_v19 }
 0x128   :  { %3158 = vmatpush3.msra.mxu1 %v4011_v18  ;;  %3126 = vmatprep.subr.mxu0 %v3869_v0 }
 0x129   :  { %3159 = vmatprep.subr.mxu1 %v3869_v0  ;;  %3127 = vmatpush3.msra.mxu0 %v4029_v20 }
 0x12a   :  { %3160 = vmatpush3.msra.mxu1 %v4020_v19  ;;  %3128 = vmatprep.subr.mxu0 %v3869_v0 }
 0x12b   :  { %3161 = vmatprep.subr.mxu1 %v3869_v0  ;;  %3129 = vmatpush3.msra.mxu0 %v4038_v21 }
 0x12c   :  { %3162 = vmatpush3.msra.mxu1 %v4029_v20  ;;  %3130 = vmatprep.subr.mxu0 %v3869_v0 }
 0x12d   :  { %3163 = vmatprep.subr.mxu1 %v3869_v0  ;;  %3131 = vmatpush3.msra.mxu0 %v4051_v22 }
 0x12e   :  { %3164 = vmatpush3.msra.mxu1 %v4038_v21  ;;  %3132 = vmatprep.subr.mxu0 %v3869_v0 }
 0x12f   :  { %3165 = vmatprep.subr.mxu1 %v3869_v0  ;;  %3133 = vmatpush3.msra.mxu0 %v4060_v23 }
 0x130   :  { %3166 = vmatpush3.msra.mxu1 %v4051_v22  ;;  %3134 = vmatprep.subr.mxu0 %v3869_v0  ;;  %v597_v38 = vpop.f32.mrf.mxu0 }
 0x131   :  { %3167 = vmatprep.subr.mxu1 %v3869_v0  ;;  %3135 = vmatpush3.msra.mxu0 %v4073_v24 }
 0x132   :  { %3136 = vmatprep.mubr.msk.f32.mxu0 %vm3870_vm0, %v3869_v0  ;;  %3168 = vmatpush3.msra.mxu1 %v4060_v23  ;;  %v599_v39 = vpop.f32.mrf.mxu0 }
 0x133   :  { %3137 = vmatmul.mubr.f32.vlgmr.msra.gmra.mxu0 %v443_v30  ;;  %3169 = vmatprep.subr.mxu1 %v3869_v0  ;;  %v4414_v40 = vpop.f32.mrf.mxu1 }
 0x134   :  { %3174 = vmatprep.subr.mxu0 %v3869_v0  ;;  %3170 = vmatpush3.msra.mxu1 %v4073_v24 }
 0x135   :  { %3171 = vmatprep.mubr.msk.f32.mxu1 %vm3870_vm0, %v3869_v0  ;;  %3175 = vmatpush3.msra.mxu0 %v3938_v2  ;;  %v4424_v41 = vpop.f32.mrf.mxu1 }
 0x136   :  { %3172 = vmatmul.mubr.f32.vlgmr.msra.gmra.mxu1 %v445_v31  ;;  %3176 = vmatprep.subr.mxu0 %v3869_v0 }
 0x137   :  { %3209 = vmatprep.subr.mxu1 %v3869_v0  ;;  %3177 = vmatpush3.msra.mxu0 %v3945_v5 }
 0x138   :  { %3210 = vmatpush3.msra.mxu1 %v3938_v2  ;;  %3178 = vmatprep.subr.mxu0 %v3869_v0 }
 0x139   :  { %3211 = vmatprep.subr.mxu1 %v3869_v0  ;;  %3179 = vmatpush3.msra.mxu0 %v3952_v8 }
 0x13a   :  { %3212 = vmatpush3.msra.mxu1 %v3945_v5  ;;  %3180 = vmatprep.subr.mxu0 %v3869_v0 }
 0x13b   :  { %3213 = vmatprep.subr.mxu1 %v3869_v0  ;;  %3181 = vmatpush3.msra.mxu0 %v3959_v11 }
 0x13c   :  { %3214 = vmatpush3.msra.mxu1 %v3952_v8  ;;  %3182 = vmatprep.subr.mxu0 %v3869_v0 }
 0x13d   :  { %3215 = vmatprep.subr.mxu1 %v3869_v0  ;;  %3183 = vmatpush3.msra.mxu0 %v3967_v13  ;;  %v674_v42 = vpop.f32.mrf.mxu1 }
 0x13e   :  { %3216 = vmatpush3.msra.mxu1 %v3959_v11  ;;  %3184 = vmatprep.subr.mxu0 %v3869_v0 }
 0x13f   :  { %3217 = vmatprep.subr.mxu1 %v3869_v0  ;;  %3185 = vmatpush3.msra.mxu0 %v3975_v14  ;;  %v676_v44 = vpop.f32.mrf.mxu1 }
 0x140   :  { %3218 = vmatpush3.msra.mxu1 %v3967_v13  ;;  %3186 = vmatprep.subr.mxu0 %v3869_v0 }
 0x141   :  { %3219 = vmatprep.subr.mxu1 %v3869_v0  ;;  %3187 = vmatpush3.msra.mxu0 %v3984_v15 }
 0x142   :  { %3220 = vmatpush3.msra.mxu1 %v3975_v14  ;;  %3188 = vmatprep.subr.mxu0 %v3869_v0 }
 0x143   :  { %3221 = vmatprep.subr.mxu1 %v3869_v0  ;;  %3189 = vmatpush3.msra.mxu0 %v3993_v55 }
 0x144   :  { %3222 = vmatpush3.msra.mxu1 %v3984_v15  ;;  %3190 = vmatprep.subr.mxu0 %v3869_v0 }
 0x145   :  { %3223 = vmatprep.subr.mxu1 %v3869_v0  ;;  %3191 = vmatpush3.msra.mxu0 %v4002_v16 }
 0x146   :  { %3224 = vmatpush3.msra.mxu1 %v3993_v55  ;;  %3192 = vmatprep.subr.mxu0 %v3869_v0 }
 0x147   :  { %3225 = vmatprep.subr.mxu1 %v3869_v0  ;;  %3193 = vmatpush3.msra.mxu0 %v4011_v18 }
 0x148   :  { %3226 = vmatpush3.msra.mxu1 %v4002_v16  ;;  %3194 = vmatprep.subr.mxu0 %v3869_v0 }
 0x149   :  { %3227 = vmatprep.subr.mxu1 %v3869_v0  ;;  %3195 = vmatpush3.msra.mxu0 %v4020_v19 }
 0x14a   :  { %3228 = vmatpush3.msra.mxu1 %v4011_v18  ;;  %3196 = vmatprep.subr.mxu0 %v3869_v0 }
 0x14b   :  { %3229 = vmatprep.subr.mxu1 %v3869_v0  ;;  %3197 = vmatpush3.msra.mxu0 %v4029_v20 }
 0x14c   :  { %3230 = vmatpush3.msra.mxu1 %v4020_v19  ;;  %3198 = vmatprep.subr.mxu0 %v3869_v0 }
 0x14d   :  { %3231 = vmatprep.subr.mxu1 %v3869_v0  ;;  %3199 = vmatpush3.msra.mxu0 %v4038_v21 }
 0x14e   :  { %3232 = vmatpush3.msra.mxu1 %v4029_v20  ;;  %3200 = vmatprep.subr.mxu0 %v3869_v0 }
 0x14f   :  { %3233 = vmatprep.subr.mxu1 %v3869_v0  ;;  %3201 = vmatpush3.msra.mxu0 %v4051_v22 }
 0x150   :  { %3234 = vmatpush3.msra.mxu1 %v4038_v21  ;;  %3202 = vmatprep.subr.mxu0 %v3869_v0 }
 0x151   :  { %3235 = vmatprep.subr.mxu1 %v3869_v0  ;;  %3203 = vmatpush3.msra.mxu0 %v4060_v23  ;;  %v4528_v54 = vpop.f32.mrf.mxu0 }
 0x152   :  { %3236 = vmatpush3.msra.mxu1 %v4051_v22  ;;  %3204 = vmatprep.subr.mxu0 %v3869_v0 }
 0x153   :  { %3237 = vmatprep.subr.mxu1 %v3869_v0  ;;  %3205 = vmatpush3.msra.mxu0 %v4073_v24  ;;  %v4550_v59 = vpop.f32.mrf.mxu0 }
 0x154   :  { %3206 = vmatprep.mubr.msk.f32.mxu0 %vm3870_vm0, %v3869_v0  ;;  %3238 = vmatpush3.msra.mxu1 %v4060_v23 }
 0x155   :  { %3207 = vmatmul.mubr.f32.vlgmr.msra.gmra.mxu0 %v520_v34  ;;  %3239 = vmatprep.subr.mxu1 %v3869_v0 }
 0x156   :  { %3244 = vmatprep.subr.mxu0 %v3869_v0  ;;  %3240 = vmatpush3.msra.mxu1 %v4073_v24 }
 0x157   :  { %3241 = vmatprep.mubr.msk.f32.mxu1 %vm3870_vm0, %v3869_v0  ;;  %3245 = vmatpush3.msra.mxu0 %v3938_v2  ;;  %v4530_v56 = vpop.f32.mrf.mxu1 }
 0x158   :  { %3242 = vmatmul.mubr.f32.vlgmr.msra.gmra.mxu1 %v522_v35  ;;  %3246 = vmatprep.subr.mxu0 %v3869_v0 }
 0x159   :  { %3279 = vmatprep.subr.mxu1 %v3869_v0  ;;  %3247 = vmatpush3.msra.mxu0 %v3945_v5  ;;  %v4552_v60 = vpop.f32.mrf.mxu1 }
 0x15a   :  { %3280 = vmatpush3.msra.mxu1 %v3938_v2  ;;  %3248 = vmatprep.subr.mxu0 %v3869_v0 }
 0x15b   :  { %3281 = vmatprep.subr.mxu1 %v3869_v0  ;;  %3249 = vmatpush3.msra.mxu0 %v3952_v8 }
 0x15c   :  { %3282 = vmatpush3.msra.mxu1 %v3945_v5  ;;  %3250 = vmatprep.subr.mxu0 %v3869_v0 }
 0x15d   :  { %3283 = vmatprep.subr.mxu1 %v3869_v0  ;;  %3251 = vmatpush3.msra.mxu0 %v3959_v11 }
 0x15e   :  { %3284 = vmatpush3.msra.mxu1 %v3952_v8  ;;  %3252 = vmatprep.subr.mxu0 %v3869_v0 }
 0x15f   :  { %3285 = vmatprep.subr.mxu1 %v3869_v0  ;;  %3253 = vmatpush3.msra.mxu0 %v3967_v13 }
 0x160   :  { %3286 = vmatpush3.msra.mxu1 %v3959_v11  ;;  %3254 = vmatprep.subr.mxu0 %v3869_v0 }
 0x161   :  { %3287 = vmatprep.subr.mxu1 %v3869_v0  ;;  %3255 = vmatpush3.msra.mxu0 %v3975_v14 }
 0x162   :  { %3288 = vmatpush3.msra.mxu1 %v3967_v13  ;;  %3256 = vmatprep.subr.mxu0 %v3869_v0 }
 0x163   :  { %3289 = vmatprep.subr.mxu1 %v3869_v0  ;;  %3257 = vmatpush3.msra.mxu0 %v3984_v15 }
 0x164   :  { %3290 = vmatpush3.msra.mxu1 %v3975_v14  ;;  %3258 = vmatprep.subr.mxu0 %v3869_v0 }
 0x165   :  { %3291 = vmatprep.subr.mxu1 %v3869_v0  ;;  %3259 = vmatpush3.msra.mxu0 %v3993_v55 }
 0x166   :  { %3292 = vmatpush3.msra.mxu1 %v3984_v15  ;;  %3260 = vmatprep.subr.mxu0 %v3869_v0 }
 0x167   :  { %3293 = vmatprep.subr.mxu1 %v3869_v0  ;;  %3261 = vmatpush3.msra.mxu0 %v4002_v16 }
 0x168   :  { %3294 = vmatpush3.msra.mxu1 %v3993_v55  ;;  %3262 = vmatprep.subr.mxu0 %v3869_v0 }
 0x169   :  { %3295 = vmatprep.subr.mxu1 %v3869_v0  ;;  %3263 = vmatpush3.msra.mxu0 %v4011_v18 }
 0x16a   :  { %3296 = vmatpush3.msra.mxu1 %v4002_v16  ;;  %3264 = vmatprep.subr.mxu0 %v3869_v0 }
 0x16b   :  { %3297 = vmatprep.subr.mxu1 %v3869_v0  ;;  %3265 = vmatpush3.msra.mxu0 %v4020_v19 }
 0x16c   :  { %3298 = vmatpush3.msra.mxu1 %v4011_v18  ;;  %3266 = vmatprep.subr.mxu0 %v3869_v0 }
 0x16d   :  { %3299 = vmatprep.subr.mxu1 %v3869_v0  ;;  %3267 = vmatpush3.msra.mxu0 %v4029_v20 }
 0x16e   :  { %3300 = vmatpush3.msra.mxu1 %v4020_v19  ;;  %3268 = vmatprep.subr.mxu0 %v3869_v0 }
 0x16f   :  { %3301 = vmatprep.subr.mxu1 %v3869_v0  ;;  %3269 = vmatpush3.msra.mxu0 %v4038_v21 }
 0x170   :  { %3302 = vmatpush3.msra.mxu1 %v4029_v20  ;;  %3270 = vmatprep.subr.mxu0 %v3869_v0 }
 0x171   :  { %3303 = vmatprep.subr.mxu1 %v3869_v0  ;;  %3271 = vmatpush3.msra.mxu0 %v4051_v22 }
 0x172   :  { %3304 = vmatpush3.msra.mxu1 %v4038_v21  ;;  %3272 = vmatprep.subr.mxu0 %v3869_v0 }
 0x173   :  { %3305 = vmatprep.subr.mxu1 %v3869_v0  ;;  %3273 = vmatpush3.msra.mxu0 %v4060_v23 }
 0x174   :  { %3306 = vmatpush3.msra.mxu1 %v4051_v22  ;;  %3274 = vmatprep.subr.mxu0 %v3869_v0 }
 0x175   :  { %3307 = vmatprep.subr.mxu1 %v3869_v0  ;;  %3275 = vmatpush3.msra.mxu0 %v4073_v24 }
 0x176   :  { %3276 = vmatprep.mubr.msk.f32.mxu0 %vm3870_vm0, %v3869_v0  ;;  %3308 = vmatpush3.msra.mxu1 %v4060_v23 }
 0x177   :  { %3277 = vmatmul.mubr.f32.vlgmr.msra.gmra.mxu0 %v597_v38  ;;  %3309 = vmatprep.subr.mxu1 %v3869_v0 }
 0x178   :  { %3314 = vmatprep.subr.mxu0 %v3869_v0  ;;  %3310 = vmatpush3.msra.mxu1 %v4073_v24 }
 0x179   :  { %3311 = vmatprep.mubr.msk.f32.mxu1 %vm3870_vm0, %v3869_v0  ;;  %3315 = vmatpush3.msra.mxu0 %v3938_v2 }
 0x17a   :  { %3312 = vmatmul.mubr.f32.vlgmr.msra.gmra.mxu1 %v599_v39  ;;  %3316 = vmatprep.subr.mxu0 %v3869_v0 }
 0x17b   :  { %3349 = vmatprep.subr.mxu1 %v3869_v0  ;;  %3317 = vmatpush3.msra.mxu0 %v3945_v5 }
 0x17c   :  { %3350 = vmatpush3.msra.mxu1 %v3938_v2  ;;  %3318 = vmatprep.subr.mxu0 %v3869_v0 }
 0x17d   :  { %3351 = vmatprep.subr.mxu1 %v3869_v0  ;;  %3319 = vmatpush3.msra.mxu0 %v3952_v8 }
 0x17e   :  { %3352 = vmatpush3.msra.mxu1 %v3945_v5  ;;  %3320 = vmatprep.subr.mxu0 %v3869_v0  ;;  %v4587_v5 = vld [vmem:[%s5007_s1 + $0x80] sm:$0xff]  ;;  %s3871_s1 = smov 8  }
 0x17f   :  { %3353 = vmatprep.subr.mxu1 %v3869_v0  ;;  %3321 = vmatpush3.msra.mxu0 %v3959_v11 }
 0x180   :  { %3354 = vmatpush3.msra.mxu1 %v3952_v8  ;;  %3322 = vmatprep.subr.mxu0 %v3869_v0 }
 0x181   :  { %3355 = vmatprep.subr.mxu1 %v3869_v0  ;;  %3323 = vmatpush3.msra.mxu0 %v3967_v13 }
 0x182   :  { %3356 = vmatpush3.msra.mxu1 %v3959_v11  ;;  %3324 = vmatprep.subr.mxu0 %v3869_v0 }
 0x183   :  { %3357 = vmatprep.subr.mxu1 %v3869_v0  ;;  %3325 = vmatpush3.msra.mxu0 %v3975_v14 }
 0x184   :  { %3358 = vmatpush3.msra.mxu1 %v3967_v13  ;;  %3326 = vmatprep.subr.mxu0 %v3869_v0 }
 0x185   :  { %3359 = vmatprep.subr.mxu1 %v3869_v0  ;;  %3327 = vmatpush3.msra.mxu0 %v3984_v15 }
 0x186   :  { %3360 = vmatpush3.msra.mxu1 %v3975_v14  ;;  %3328 = vmatprep.subr.mxu0 %v3869_v0 }
 0x187   :  { %3361 = vmatprep.subr.mxu1 %v3869_v0  ;;  %3329 = vmatpush3.msra.mxu0 %v3993_v55 }
 0x188   :  { %3362 = vmatpush3.msra.mxu1 %v3984_v15  ;;  %3330 = vmatprep.subr.mxu0 %v3869_v0 }
 0x189   :  { %3363 = vmatprep.subr.mxu1 %v3869_v0  ;;  %3331 = vmatpush3.msra.mxu0 %v4002_v16 }
 0x18a   :  { %3364 = vmatpush3.msra.mxu1 %v3993_v55  ;;  %3332 = vmatprep.subr.mxu0 %v3869_v0 }
 0x18b   :  { %3365 = vmatprep.subr.mxu1 %v3869_v0  ;;  %3333 = vmatpush3.msra.mxu0 %v4011_v18 }
 0x18c   :  { %3366 = vmatpush3.msra.mxu1 %v4002_v16  ;;  %3334 = vmatprep.subr.mxu0 %v3869_v0 }
 0x18d   :  { %3367 = vmatprep.subr.mxu1 %v3869_v0  ;;  %3335 = vmatpush3.msra.mxu0 %v4020_v19 }
 0x18e   :  { %3368 = vmatpush3.msra.mxu1 %v4011_v18  ;;  %3336 = vmatprep.subr.mxu0 %v3869_v0 }
 0x18f   :  { %3369 = vmatprep.subr.mxu1 %v3869_v0  ;;  %3337 = vmatpush3.msra.mxu0 %v4029_v20 }
 0x190   :  { %3370 = vmatpush3.msra.mxu1 %v4020_v19  ;;  %3338 = vmatprep.subr.mxu0 %v3869_v0 }
 0x191   :  { %3371 = vmatprep.subr.mxu1 %v3869_v0  ;;  %3339 = vmatpush3.msra.mxu0 %v4038_v21 }
 0x192   :  { %3372 = vmatpush3.msra.mxu1 %v4029_v20  ;;  %3340 = vmatprep.subr.mxu0 %v3869_v0 }
 0x193   :  { %3373 = vmatprep.subr.mxu1 %v3869_v0  ;;  %3341 = vmatpush3.msra.mxu0 %v4051_v22 }
 0x194   :  { %3374 = vmatpush3.msra.mxu1 %v4038_v21  ;;  %3342 = vmatprep.subr.mxu0 %v3869_v0 }
 0x195   :  { %3375 = vmatprep.subr.mxu1 %v3869_v0  ;;  %3343 = vmatpush3.msra.mxu0 %v4060_v23 }
 0x196   :  { %3376 = vmatpush3.msra.mxu1 %v4051_v22  ;;  %3344 = vmatprep.subr.mxu0 %v3869_v0 }
 0x197   :  { %3377 = vmatprep.subr.mxu1 %v3869_v0  ;;  %3345 = vmatpush3.msra.mxu0 %v4073_v24 }
 0x198   :  { %3346 = vmatprep.mubr.msk.f32.mxu0 %vm3870_vm0, %v3869_v0  ;;  %3378 = vmatpush3.msra.mxu1 %v4060_v23 }
 0x199   :  { %3347 = vmatmul.mubr.f32.vlgmr.msra.gmra.mxu0 %v674_v42  ;;  %3379 = vmatprep.subr.mxu1 %v3869_v0 }
 0x19a   :  { %3384 = vmatprep.subr.mxu0 %v3869_v0  ;;  %3380 = vmatpush3.msra.mxu1 %v4073_v24 }
 0x19b   :  { %3381 = vmatprep.mubr.msk.f32.mxu1 %vm3870_vm0, %v3869_v0  ;;  %3385 = vmatpush3.msra.mxu0 %v4444_v43 }
 0x19c   :  { %3382 = vmatmul.mubr.f32.vlgmr.msra.gmra.mxu1 %v676_v44  ;;  %3386 = vmatprep.subr.mxu0 %v3869_v0 }
 0x19d   :  { %3419 = vmatprep.subr.mxu1 %v3869_v0  ;;  %3387 = vmatpush3.msra.mxu0 %v4452_v45 }
 0x19e   :  { %3420 = vmatpush3.msra.mxu1 %v4444_v43  ;;  %3388 = vmatprep.subr.mxu0 %v3869_v0 }
 0x19f   :  { %3421 = vmatprep.subr.mxu1 %v3869_v0  ;;  %3389 = vmatpush3.msra.mxu0 %v4461_v46 }
 0x1a0   :  { %3422 = vmatpush3.msra.mxu1 %v4452_v45  ;;  %3390 = vmatprep.subr.mxu0 %v3869_v0 }
 0x1a1   :  { %3423 = vmatprep.subr.mxu1 %v3869_v0  ;;  %3391 = vmatpush3.msra.mxu0 %v4470_v47 }
 0x1a2   :  { %3424 = vmatpush3.msra.mxu1 %v4461_v46  ;;  %3392 = vmatprep.subr.mxu0 %v3869_v0 }
 0x1a3   :  { %3425 = vmatprep.subr.mxu1 %v3869_v0  ;;  %3393 = vmatpush3.msra.mxu0 %v4479_v48 }
 0x1a4   :  { %3426 = vmatpush3.msra.mxu1 %v4470_v47  ;;  %3394 = vmatprep.subr.mxu0 %v3869_v0 }
 0x1a5   :  { %3427 = vmatprep.subr.mxu1 %v3869_v0  ;;  %3395 = vmatpush3.msra.mxu0 %v4488_v49 }
 0x1a6   :  { %3428 = vmatpush3.msra.mxu1 %v4479_v48  ;;  %3396 = vmatprep.subr.mxu0 %v3869_v0 }
 0x1a7   :  { %3429 = vmatprep.subr.mxu1 %v3869_v0  ;;  %3397 = vmatpush3.msra.mxu0 %v4497_v50 }
 0x1a8   :  { %3430 = vmatpush3.msra.mxu1 %v4488_v49  ;;  %3398 = vmatprep.subr.mxu0 %v3869_v0 }
 0x1a9   :  { %3431 = vmatprep.subr.mxu1 %v3869_v0  ;;  %3399 = vmatpush3.msra.mxu0 %v4506_v51 }
 0x1aa   :  { %3432 = vmatpush3.msra.mxu1 %v4497_v50  ;;  %3400 = vmatprep.subr.mxu0 %v3869_v0 }
 0x1ab   :  { %3433 = vmatprep.subr.mxu1 %v3869_v0  ;;  %3401 = vmatpush3.msra.mxu0 %v4515_v52 }
 0x1ac   :  { %3434 = vmatpush3.msra.mxu1 %v4506_v51  ;;  %3402 = vmatprep.subr.mxu0 %v3869_v0 }
 0x1ad   :  { %3435 = vmatprep.subr.mxu1 %v3869_v0  ;;  %3403 = vmatpush3.msra.mxu0 %v4524_v53 }
 0x1ae   :  { %3436 = vmatpush3.msra.mxu1 %v4515_v52  ;;  %3404 = vmatprep.subr.mxu0 %v3869_v0 }
 0x1af   :  { %3437 = vmatprep.subr.mxu1 %v3869_v0  ;;  %3405 = vmatpush3.msra.mxu0 %v4537_v57 }
 0x1b0   :  { %3438 = vmatpush3.msra.mxu1 %v4524_v53  ;;  %3406 = vmatprep.subr.mxu0 %v3869_v0 }
 0x1b1   :  { %3439 = vmatprep.subr.mxu1 %v3869_v0  ;;  %3407 = vmatpush3.msra.mxu0 %v4546_v58  ;;  %v767_v62 = vpop.f32.mrf.mxu0 }
 0x1b2   :  { %3440 = vmatpush3.msra.mxu1 %v4537_v57  ;;  %3408 = vmatprep.subr.mxu0 %v3869_v0  ;;  %772 = vst.msk [vmem:[#allocation5] sm:$0xff] %vm771_vm1, %v767_v62 }
 0x1b3   :  { %3441 = vmatprep.subr.mxu1 %v3869_v0  ;;  %3409 = vmatpush3.msra.mxu0 %v4559_v61  ;;  %v2998_v1 = vpop.f32.mrf.mxu0  ;;  %v839_v2 = vpop.f32.mrf.mxu1 }
 0x1b4   :  { %3442 = vmatpush3.msra.mxu1 %v4546_v58  ;;  %3410 = vmatprep.subr.mxu0 %v3869_v0 }
 0x1b5   :  { %3443 = vmatprep.subr.mxu1 %v3869_v0  ;;  %3411 = vmatpush3.msra.mxu0 %v4568_v63  ;;  %v3033_v4 = vpop.f32.mrf.mxu1 }
 0x1b6   :  { %3444 = vmatpush3.msra.mxu1 %v4559_v61  ;;  %3412 = vmatprep.subr.mxu0 %v3869_v0 }
 0x1b7   :  { %3445 = vmatprep.subr.mxu1 %v3869_v0  ;;  %3413 = vmatpush3.msra.mxu0 %v4578_v3 }
 0x1b8   :  { %3446 = vmatpush3.msra.mxu1 %v4568_v63  ;;  %3414 = vmatprep.subr.mxu0 %v3869_v0 }
 0x1b9   :  { %3447 = vmatprep.subr.mxu1 %v3869_v0  ;;  %3415 = vmatpush3.msra.mxu0 %v4587_v5 }
 0x1ba   :  { %3416 = vmatprep.mubr.msk.f32.mxu0 %vm3870_vm0, %v3869_v0  ;;  %3448 = vmatpush3.msra.mxu1 %v4578_v3 }
 0x1bb   :  { %3417 = vmatmul.mubr.f32.vlgmr.msra.gmra.mxu0 %v4198_v28  ;;  %3449 = vmatprep.subr.mxu1 %v3869_v0 }
 0x1bc   :  { %3454 = vmatprep.subr.mxu0 %v3869_v0  ;;  %3450 = vmatpush3.msra.mxu1 %v4587_v5 }
 0x1bd   :  { %3451 = vmatprep.mubr.msk.f32.mxu1 %vm3870_vm0, %v3869_v0  ;;  %3455 = vmatpush3.msra.mxu0 %v4444_v43 }
 0x1be   :  { %3452 = vmatmul.mubr.f32.vlgmr.msra.gmra.mxu1 %v4208_v29  ;;  %3456 = vmatprep.subr.mxu0 %v3869_v0 }
 0x1bf   :  { %3489 = vmatprep.subr.mxu1 %v3869_v0  ;;  %3457 = vmatpush3.msra.mxu0 %v4452_v45 }
 0x1c0   :  { %3490 = vmatpush3.msra.mxu1 %v4444_v43  ;;  %844 = vrot.lane.b32.xlu0 %v839_v2, %s3871_s1 }
 0x1c1   :  { %3458 = vmatprep.subr.mxu0 %v3869_v0  ;;  %3491 = vmatprep.subr.mxu1 %v3869_v0 }
 0x1c2   :  { %3459 = vmatpush3.msra.mxu0 %v4461_v46  ;;  %3492 = vmatpush3.msra.mxu1 %v4452_v45 }
 0x1c3   :  { %3460 = vmatprep.subr.mxu0 %v3869_v0  ;;  %3493 = vmatprep.subr.mxu1 %v3869_v0 }
 0x1c4   :  { %3461 = vmatpush3.msra.mxu0 %v4470_v47  ;;  %3494 = vmatpush3.msra.mxu1 %v4461_v46 }
 0x1c5   :  { %3462 = vmatprep.subr.mxu0 %v3869_v0  ;;  %3495 = vmatprep.subr.mxu1 %v3869_v0 }
 0x1c6   :  { %3463 = vmatpush3.msra.mxu0 %v4479_v48  ;;  %3496 = vmatpush3.msra.mxu1 %v4470_v47 }
 0x1c7   :  { %3464 = vmatprep.subr.mxu0 %v3869_v0  ;;  %3497 = vmatprep.subr.mxu1 %v3869_v0 }
 0x1c8   :  { %3465 = vmatpush3.msra.mxu0 %v4488_v49  ;;  %3498 = vmatpush3.msra.mxu1 %v4479_v48 }
 0x1c9   :  { %3466 = vmatprep.subr.mxu0 %v3869_v0  ;;  %3499 = vmatprep.subr.mxu1 %v3869_v0 }
 0x1ca   :  { %3467 = vmatpush3.msra.mxu0 %v4497_v50  ;;  %3500 = vmatpush3.msra.mxu1 %v4488_v49 }
 0x1cb   :  { %3468 = vmatprep.subr.mxu0 %v3869_v0  ;;  %3501 = vmatprep.subr.mxu1 %v3869_v0 }
 0x1cc   :  { %3469 = vmatpush3.msra.mxu0 %v4506_v51  ;;  %3502 = vmatpush3.msra.mxu1 %v4497_v50 }
 0x1cd   :  { %3470 = vmatprep.subr.mxu0 %v3869_v0  ;;  %3503 = vmatprep.subr.mxu1 %v3869_v0 }
 0x1ce   :  { %3471 = vmatpush3.msra.mxu0 %v4515_v52  ;;  %3504 = vmatpush3.msra.mxu1 %v4506_v51 }
 0x1cf   :  { %3472 = vmatprep.subr.mxu0 %v3869_v0  ;;  %3505 = vmatprep.subr.mxu1 %v3869_v0 }
 0x1d0   :  { %3473 = vmatpush3.msra.mxu0 %v4524_v53  ;;  %3506 = vmatpush3.msra.mxu1 %v4515_v52 }
 0x1d1   :  { %3474 = vmatprep.subr.mxu0 %v3869_v0  ;;  %3507 = vmatprep.subr.mxu1 %v3869_v0  ;;  %v915_v6 = vpop.f32.mrf.mxu0 }
 0x1d2   :  { %3475 = vmatpush3.msra.mxu0 %v4537_v57  ;;  %3508 = vmatpush3.msra.mxu1 %v4524_v53 }
 0x1d3   :  { %3476 = vmatprep.subr.mxu0 %v3869_v0  ;;  %3509 = vmatprep.subr.mxu1 %v3869_v0  ;;  %v3068_v7 = vpop.f32.mrf.mxu0 }
 0x1d4   :  { %3477 = vmatpush3.msra.mxu0 %v4546_v58  ;;  %3510 = vmatpush3.msra.mxu1 %v4537_v57  ;;  %v991_v8 = vpop.f32.mrf.mxu1 }
 0x1d5   :  { %3478 = vmatprep.subr.mxu0 %v3869_v0  ;;  %3511 = vmatprep.subr.mxu1 %v3869_v0 }
 0x1d6   :  { %3479 = vmatpush3.msra.mxu0 %v4559_v61  ;;  %3512 = vmatpush3.msra.mxu1 %v4546_v58  ;;  %v3103_v9 = vpop.f32.mrf.mxu1 }
 0x1d7   :  { %3480 = vmatprep.subr.mxu0 %v3869_v0  ;;  %3513 = vmatprep.subr.mxu1 %v3869_v0 }
 0x1d8   :  { %3481 = vmatpush3.msra.mxu0 %v4568_v63  ;;  %3514 = vmatpush3.msra.mxu1 %v4559_v61 }
 0x1d9   :  { %3482 = vmatprep.subr.mxu0 %v3869_v0  ;;  %3515 = vmatprep.subr.mxu1 %v3869_v0 }
 0x1da   :  { %3483 = vmatpush3.msra.mxu0 %v4578_v3  ;;  %3516 = vmatpush3.msra.mxu1 %v4568_v63 }
 0x1db   :  { %3484 = vmatprep.subr.mxu0 %v3869_v0  ;;  %3517 = vmatprep.subr.mxu1 %v3869_v0 }
 0x1dc   :  { %3485 = vmatpush3.msra.mxu0 %v4587_v5  ;;  %3486 = vmatprep.mubr.msk.f32.mxu0 %vm3870_vm0, %v3869_v0 }
 0x1dd   :  { %3518 = vmatpush3.msra.mxu1 %v4578_v3  ;;  %3487 = vmatmul.mubr.f32.vlgmr.msra.gmra.mxu0 %v4270_v32 }
 0x1de   :  { %3519 = vmatprep.subr.mxu1 %v3869_v0  ;;  %3524 = vmatprep.subr.mxu0 %v3869_v0 }
 0x1df   :  { %3520 = vmatpush3.msra.mxu1 %v4587_v5  ;;  %3521 = vmatprep.mubr.msk.f32.mxu1 %vm3870_vm0, %v3869_v0 }
 0x1e0   :  { %3525 = vmatpush3.msra.mxu0 %v4444_v43  ;;  %3522 = vmatmul.mubr.f32.vlgmr.msra.gmra.mxu1 %v4280_v33 }
 0x1e1   :  { %3526 = vmatprep.subr.mxu0 %v3869_v0  ;;  %3559 = vmatprep.subr.mxu1 %v3869_v0 }
 0x1e2   :  { %920 = vrot.lane.b32.xlu1 %v915_v6, %s3872_s27  ;;  %996 = vrot.lane.b32.xlu0 %v991_v8, %s3873_s28 }
 0x1e3   :  { %3527 = vmatpush3.msra.mxu0 %v4452_v45  ;;  %3560 = vmatpush3.msra.mxu1 %v4444_v43 }
 0x1e4   :  { %3528 = vmatprep.subr.mxu0 %v3869_v0  ;;  %3561 = vmatprep.subr.mxu1 %v3869_v0 }
 0x1e5   :  { %3529 = vmatpush3.msra.mxu0 %v4461_v46  ;;  %3562 = vmatpush3.msra.mxu1 %v4452_v45 }
 0x1e6   :  { %3530 = vmatprep.subr.mxu0 %v3869_v0  ;;  %3563 = vmatprep.subr.mxu1 %v3869_v0 }
 0x1e7   :  { %3531 = vmatpush3.msra.mxu0 %v4470_v47  ;;  %3564 = vmatpush3.msra.mxu1 %v4461_v46 }
 0x1e8   :  { %3532 = vmatprep.subr.mxu0 %v3869_v0  ;;  %3565 = vmatprep.subr.mxu1 %v3869_v0 }
 0x1e9   :  { %3533 = vmatpush3.msra.mxu0 %v4479_v48  ;;  %3566 = vmatpush3.msra.mxu1 %v4470_v47 }
 0x1ea   :  { %3534 = vmatprep.subr.mxu0 %v3869_v0  ;;  %3567 = vmatprep.subr.mxu1 %v3869_v0 }
 0x1eb   :  { %3535 = vmatpush3.msra.mxu0 %v4488_v49  ;;  %3568 = vmatpush3.msra.mxu1 %v4479_v48 }
 0x1ec   :  { %3536 = vmatprep.subr.mxu0 %v3869_v0  ;;  %3569 = vmatprep.subr.mxu1 %v3869_v0 }
 0x1ed   :  { %3537 = vmatpush3.msra.mxu0 %v4497_v50  ;;  %3570 = vmatpush3.msra.mxu1 %v4488_v49 }
 0x1ee   :  { %3538 = vmatprep.subr.mxu0 %v3869_v0  ;;  %3571 = vmatprep.subr.mxu1 %v3869_v0 }
 0x1ef   :  { %3539 = vmatpush3.msra.mxu0 %v4506_v51  ;;  %3572 = vmatpush3.msra.mxu1 %v4497_v50 }
 0x1f0   :  { %3540 = vmatprep.subr.mxu0 %v3869_v0  ;;  %3573 = vmatprep.subr.mxu1 %v3869_v0 }
 0x1f1   :  { %3541 = vmatpush3.msra.mxu0 %v4515_v52  ;;  %3574 = vmatpush3.msra.mxu1 %v4506_v51 }
 0x1f2   :  { %3542 = vmatprep.subr.mxu0 %v3869_v0  ;;  %3575 = vmatprep.subr.mxu1 %v3869_v0 }
 0x1f3   :  { %3543 = vmatpush3.msra.mxu0 %v4524_v53  ;;  %3576 = vmatpush3.msra.mxu1 %v4515_v52  ;;  %v1067_v10 = vpop.f32.mrf.mxu0 }
 0x1f4   :  { %3544 = vmatprep.subr.mxu0 %v3869_v0  ;;  %3577 = vmatprep.subr.mxu1 %v3869_v0 }
 0x1f5   :  { %3545 = vmatpush3.msra.mxu0 %v4537_v57  ;;  %3578 = vmatpush3.msra.mxu1 %v4524_v53  ;;  %v3138_v11 = vpop.f32.mrf.mxu0 }
 0x1f6   :  { %3546 = vmatprep.subr.mxu0 %v3869_v0  ;;  %3579 = vmatprep.subr.mxu1 %v3869_v0  ;;  %v1143_v12 = vpop.f32.mrf.mxu1 }
 0x1f7   :  { %3547 = vmatpush3.msra.mxu0 %v4546_v58  ;;  %3580 = vmatpush3.msra.mxu1 %v4537_v57 }
 0x1f8   :  { %3548 = vmatprep.subr.mxu0 %v3869_v0  ;;  %3581 = vmatprep.subr.mxu1 %v3869_v0  ;;  %v3173_v13 = vpop.f32.mrf.mxu1 }
 0x1f9   :  { %3549 = vmatpush3.msra.mxu0 %v4559_v61  ;;  %3582 = vmatpush3.msra.mxu1 %v4546_v58 }
 0x1fa   :  { %3550 = vmatprep.subr.mxu0 %v3869_v0  ;;  %3583 = vmatprep.subr.mxu1 %v3869_v0 }
 0x1fb   :  { %3551 = vmatpush3.msra.mxu0 %v4568_v63  ;;  %3584 = vmatpush3.msra.mxu1 %v4559_v61 }
 0x1fc   :  { %3552 = vmatprep.subr.mxu0 %v3869_v0  ;;  %3585 = vmatprep.subr.mxu1 %v3869_v0 }
 0x1fd   :  { %3553 = vmatpush3.msra.mxu0 %v4578_v3  ;;  %3586 = vmatpush3.msra.mxu1 %v4568_v63 }
 0x1fe   :  { %3554 = vmatprep.subr.mxu0 %v3869_v0  ;;  %3587 = vmatprep.subr.mxu1 %v3869_v0 }
 0x1ff   :  { %3555 = vmatpush3.msra.mxu0 %v4587_v5  ;;  %3556 = vmatprep.mubr.msk.f32.mxu0 %vm3870_vm0, %v3869_v0 }
 0x200   :  { %3588 = vmatpush3.msra.mxu1 %v4578_v3  ;;  %3557 = vmatmul.mubr.f32.vlgmr.msra.gmra.mxu0 %v4342_v36 }
 0x201   :  { %3589 = vmatprep.subr.mxu1 %v3869_v0  ;;  %3594 = vmatprep.subr.mxu0 %v3869_v0 }
 0x202   :  { %3590 = vmatpush3.msra.mxu1 %v4587_v5  ;;  %3591 = vmatprep.mubr.msk.f32.mxu1 %vm3870_vm0, %v3869_v0 }
 0x203   :  { %3595 = vmatpush3.msra.mxu0 %v4444_v43  ;;  %1072 = vrot.lane.b32.xlu0 %v1067_v10, %s3874_s29 }
 0x204   :  { %3592 = vmatmul.mubr.f32.vlgmr.msra.gmra.mxu1 %v4352_v37  ;;  %3596 = vmatprep.subr.mxu0 %v3869_v0 }
 0x205   :  { %3629 = vmatprep.subr.mxu1 %v3869_v0  ;;  %3597 = vmatpush3.msra.mxu0 %v4452_v45 }
 0x206   :  { %3630 = vmatpush3.msra.mxu1 %v4444_v43  ;;  %3598 = vmatprep.subr.mxu0 %v3869_v0 }
 0x207   :  { %3631 = vmatprep.subr.mxu1 %v3869_v0  ;;  %3599 = vmatpush3.msra.mxu0 %v4461_v46 }
 0x208   :  { %3632 = vmatpush3.msra.mxu1 %v4452_v45  ;;  %1148 = vrot.lane.b32.xlu0 %v1143_v12, %s3875_s30 }
 0x209   :  { %3600 = vmatprep.subr.mxu0 %v3869_v0  ;;  %3633 = vmatprep.subr.mxu1 %v3869_v0 }
 0x20a   :  { %3601 = vmatpush3.msra.mxu0 %v4470_v47  ;;  %3634 = vmatpush3.msra.mxu1 %v4461_v46 }
 0x20b   :  { %3602 = vmatprep.subr.mxu0 %v3869_v0  ;;  %3635 = vmatprep.subr.mxu1 %v3869_v0 }
 0x20c   :  { %3603 = vmatpush3.msra.mxu0 %v4479_v48  ;;  %3636 = vmatpush3.msra.mxu1 %v4470_v47 }
 0x20d   :  { %3604 = vmatprep.subr.mxu0 %v3869_v0  ;;  %3637 = vmatprep.subr.mxu1 %v3869_v0 }
 0x20e   :  { %3605 = vmatpush3.msra.mxu0 %v4488_v49  ;;  %3638 = vmatpush3.msra.mxu1 %v4479_v48 }
 0x20f   :  { %3606 = vmatprep.subr.mxu0 %v3869_v0  ;;  %3639 = vmatprep.subr.mxu1 %v3869_v0 }
 0x210   :  { %3607 = vmatpush3.msra.mxu0 %v4497_v50  ;;  %3640 = vmatpush3.msra.mxu1 %v4488_v49 }
 0x211   :  { %3608 = vmatprep.subr.mxu0 %v3869_v0  ;;  %3641 = vmatprep.subr.mxu1 %v3869_v0 }
 0x212   :  { %3609 = vmatpush3.msra.mxu0 %v4506_v51  ;;  %3642 = vmatpush3.msra.mxu1 %v4497_v50 }
 0x213   :  { %3610 = vmatprep.subr.mxu0 %v3869_v0  ;;  %3643 = vmatprep.subr.mxu1 %v3869_v0 }
 0x214   :  { %3611 = vmatpush3.msra.mxu0 %v4515_v52  ;;  %3644 = vmatpush3.msra.mxu1 %v4506_v51 }
 0x215   :  { %3612 = vmatprep.subr.mxu0 %v3869_v0  ;;  %3645 = vmatprep.subr.mxu1 %v3869_v0  ;;  %v1219_v14 = vpop.f32.mrf.mxu0 }
 0x216   :  { %3613 = vmatpush3.msra.mxu0 %v4524_v53  ;;  %3646 = vmatpush3.msra.mxu1 %v4515_v52 }
 0x217   :  { %3614 = vmatprep.subr.mxu0 %v3869_v0  ;;  %3647 = vmatprep.subr.mxu1 %v3869_v0  ;;  %v3208_v15 = vpop.f32.mrf.mxu0 }
 0x218   :  { %3615 = vmatpush3.msra.mxu0 %v4537_v57  ;;  %3648 = vmatpush3.msra.mxu1 %v4524_v53  ;;  %v1295_v55 = vpop.f32.mrf.mxu1 }
 0x219   :  { %3616 = vmatprep.subr.mxu0 %v3869_v0  ;;  %3649 = vmatprep.subr.mxu1 %v3869_v0 }
 0x21a   :  { %3617 = vmatpush3.msra.mxu0 %v4546_v58  ;;  %3650 = vmatpush3.msra.mxu1 %v4537_v57  ;;  %v3243_v16 = vpop.f32.mrf.mxu1 }
 0x21b   :  { %3618 = vmatprep.subr.mxu0 %v3869_v0  ;;  %3651 = vmatprep.subr.mxu1 %v3869_v0 }
 0x21c   :  { %3619 = vmatpush3.msra.mxu0 %v4559_v61  ;;  %3652 = vmatpush3.msra.mxu1 %v4546_v58 }
 0x21d   :  { %3620 = vmatprep.subr.mxu0 %v3869_v0  ;;  %3653 = vmatprep.subr.mxu1 %v3869_v0 }
 0x21e   :  { %3621 = vmatpush3.msra.mxu0 %v4568_v63  ;;  %3654 = vmatpush3.msra.mxu1 %v4559_v61 }
 0x21f   :  { %3622 = vmatprep.subr.mxu0 %v3869_v0  ;;  %3655 = vmatprep.subr.mxu1 %v3869_v0 }
 0x220   :  { %3623 = vmatpush3.msra.mxu0 %v4578_v3  ;;  %3656 = vmatpush3.msra.mxu1 %v4568_v63 }
 0x221   :  { %3624 = vmatprep.subr.mxu0 %v3869_v0  ;;  %3657 = vmatprep.subr.mxu1 %v3869_v0 }
 0x222   :  { %3625 = vmatpush3.msra.mxu0 %v4587_v5  ;;  %3626 = vmatprep.mubr.msk.f32.mxu0 %vm3870_vm0, %v3869_v0 }
 0x223   :  { %3658 = vmatpush3.msra.mxu1 %v4578_v3  ;;  %3627 = vmatmul.mubr.f32.vlgmr.msra.gmra.mxu0 %v4414_v40 }
 0x224   :  { %3659 = vmatprep.subr.mxu1 %v3869_v0  ;;  %3664 = vmatprep.subr.mxu0 %v3869_v0 }
 0x225   :  { %3660 = vmatpush3.msra.mxu1 %v4587_v5  ;;  %3661 = vmatprep.mubr.msk.f32.mxu1 %vm3870_vm0, %v3869_v0 }
 0x226   :  { %3665 = vmatpush3.msra.mxu0 %v4444_v43  ;;  %1224 = vrot.lane.b32.xlu0 %v1219_v14, %s3876_s4 }
 0x227   :  { %3662 = vmatmul.mubr.f32.vlgmr.msra.gmra.mxu1 %v4424_v41  ;;  %3666 = vmatprep.subr.mxu0 %v3869_v0 }
 0x228   :  { %3699 = vmatprep.subr.mxu1 %v3869_v0  ;;  %3667 = vmatpush3.msra.mxu0 %v4452_v45 }
 0x229   :  { %3700 = vmatpush3.msra.mxu1 %v4444_v43  ;;  %3668 = vmatprep.subr.mxu0 %v3869_v0 }
 0x22a   :  { %3701 = vmatprep.subr.mxu1 %v3869_v0  ;;  %3669 = vmatpush3.msra.mxu0 %v4461_v46 }
 0x22b   :  { %3702 = vmatpush3.msra.mxu1 %v4452_v45  ;;  %1300 = vrot.lane.b32.xlu0 %v1295_v55, %s3877_s5 }
 0x22c   :  { %3670 = vmatprep.subr.mxu0 %v3869_v0  ;;  %3703 = vmatprep.subr.mxu1 %v3869_v0 }
 0x22d   :  { %3671 = vmatpush3.msra.mxu0 %v4470_v47  ;;  %3704 = vmatpush3.msra.mxu1 %v4461_v46 }
 0x22e   :  { %3672 = vmatprep.subr.mxu0 %v3869_v0  ;;  %3705 = vmatprep.subr.mxu1 %v3869_v0 }
 0x22f   :  { %3673 = vmatpush3.msra.mxu0 %v4479_v48  ;;  %3706 = vmatpush3.msra.mxu1 %v4470_v47 }
 0x230   :  { %3674 = vmatprep.subr.mxu0 %v3869_v0  ;;  %3707 = vmatprep.subr.mxu1 %v3869_v0 }
 0x231   :  { %3675 = vmatpush3.msra.mxu0 %v4488_v49  ;;  %3708 = vmatpush3.msra.mxu1 %v4479_v48 }
 0x232   :  { %3676 = vmatprep.subr.mxu0 %v3869_v0  ;;  %3709 = vmatprep.subr.mxu1 %v3869_v0  ;;  %v845_v18 = vpop.permute.xlu0 %844 }
 0x233   :  { %3677 = vmatpush3.msra.mxu0 %v4497_v50  ;;  %3710 = vmatpush3.msra.mxu1 %v4488_v49  ;;  %848 = vst.msk [vmem:[#allocation5] sm:$0xff] %vm847_vm2, %v845_v18 }
 0x234   :  { %3678 = vmatprep.subr.mxu0 %v3869_v0  ;;  %3711 = vmatprep.subr.mxu1 %v3869_v0 }
 0x235   :  { %3679 = vmatpush3.msra.mxu0 %v4506_v51  ;;  %3712 = vmatpush3.msra.mxu1 %v4497_v50 }
 0x236   :  { %3680 = vmatprep.subr.mxu0 %v3869_v0  ;;  %3713 = vmatprep.subr.mxu1 %v3869_v0 }
 0x237   :  { %3681 = vmatpush3.msra.mxu0 %v4515_v52  ;;  %3714 = vmatpush3.msra.mxu1 %v4506_v51  ;;  %v1371_v19 = vpop.f32.mrf.mxu0 }
 0x238   :  { %3682 = vmatprep.subr.mxu0 %v3869_v0  ;;  %3715 = vmatprep.subr.mxu1 %v3869_v0 }
 0x239   :  { %3683 = vmatpush3.msra.mxu0 %v4524_v53  ;;  %3716 = vmatpush3.msra.mxu1 %v4515_v52  ;;  %v3278_v20 = vpop.f32.mrf.mxu0 }
 0x23a   :  { %3684 = vmatprep.subr.mxu0 %v3869_v0  ;;  %3717 = vmatprep.subr.mxu1 %v3869_v0  ;;  %v4862_v21 = vpop.f32.mrf.mxu1 }
 0x23b   :  { %3685 = vmatpush3.msra.mxu0 %v4537_v57  ;;  %3718 = vmatpush3.msra.mxu1 %v4524_v53 }
 0x23c   :  { %3686 = vmatprep.subr.mxu0 %v3869_v0  ;;  %3719 = vmatprep.subr.mxu1 %v3869_v0  ;;  %v3313_v22 = vpop.f32.mrf.mxu1 }
 0x23d   :  { %3687 = vmatpush3.msra.mxu0 %v4546_v58  ;;  %3720 = vmatpush3.msra.mxu1 %v4537_v57 }
 0x23e   :  { %3688 = vmatprep.subr.mxu0 %v3869_v0  ;;  %3721 = vmatprep.subr.mxu1 %v3869_v0 }
 0x23f   :  { %3689 = vmatpush3.msra.mxu0 %v4559_v61  ;;  %3722 = vmatpush3.msra.mxu1 %v4546_v58 }
 0x240   :  { %3690 = vmatprep.subr.mxu0 %v3869_v0  ;;  %3723 = vmatprep.subr.mxu1 %v3869_v0 }
 0x241   :  { %3691 = vmatpush3.msra.mxu0 %v4568_v63  ;;  %3724 = vmatpush3.msra.mxu1 %v4559_v61 }
 0x242   :  { %3692 = vmatprep.subr.mxu0 %v3869_v0  ;;  %3725 = vmatprep.subr.mxu1 %v3869_v0 }
 0x243   :  { %3693 = vmatpush3.msra.mxu0 %v4578_v3  ;;  %3726 = vmatpush3.msra.mxu1 %v4568_v63 }
 0x244   :  { %3694 = vmatprep.subr.mxu0 %v3869_v0  ;;  %3727 = vmatprep.subr.mxu1 %v3869_v0 }
 0x245   :  { %3695 = vmatpush3.msra.mxu0 %v4587_v5  ;;  %3696 = vmatprep.mubr.msk.f32.mxu0 %vm3870_vm0, %v3869_v0 }
 0x246   :  { %3728 = vmatpush3.msra.mxu1 %v4578_v3  ;;  %3697 = vmatmul.mubr.f32.vlgmr.msra.gmra.mxu0 %v4528_v54 }
 0x247   :  { %3729 = vmatprep.subr.mxu1 %v3869_v0  ;;  %3734 = vmatprep.subr.mxu0 %v3869_v0 }
 0x248   :  { %3730 = vmatpush3.msra.mxu1 %v4587_v5  ;;  %3731 = vmatprep.mubr.msk.f32.mxu1 %vm3870_vm0, %v3869_v0 }
 0x249   :  { %3735 = vmatpush3.msra.mxu0 %v4444_v43  ;;  %3732 = vmatmul.mubr.f32.vlgmr.msra.gmra.mxu1 %v4550_v59 }
 0x24a   :  { %3736 = vmatprep.subr.mxu0 %v3869_v0  ;;  %3769 = vmatprep.subr.mxu1 %v3869_v0 }
 0x24b   :  { %1376 = vrot.lane.b32.xlu0 %v1371_v19, %s3878_s6  ;;  %3737 = vmatpush3.msra.mxu0 %v4452_v45 }
 0x24c   :  { %3770 = vmatpush3.msra.mxu1 %v4444_v43  ;;  %3738 = vmatprep.subr.mxu0 %v3869_v0 }
 0x24d   :  { %3771 = vmatprep.subr.mxu1 %v3869_v0  ;;  %3739 = vmatpush3.msra.mxu0 %v4461_v46 }
 0x24e   :  { %3772 = vmatpush3.msra.mxu1 %v4452_v45  ;;  %3740 = vmatprep.subr.mxu0 %v3869_v0 }
 0x24f   :  { %3773 = vmatprep.subr.mxu1 %v3869_v0  ;;  %3741 = vmatpush3.msra.mxu0 %v4470_v47 }
 0x250   :  { %3774 = vmatpush3.msra.mxu1 %v4461_v46  ;;  %3742 = vmatprep.subr.mxu0 %v3869_v0 }
 0x251   :  { %3775 = vmatprep.subr.mxu1 %v3869_v0  ;;  %3743 = vmatpush3.msra.mxu0 %v4479_v48 }
 0x252   :  { %3776 = vmatpush3.msra.mxu1 %v4470_v47  ;;  %3744 = vmatprep.subr.mxu0 %v3869_v0 }
 0x253   :  { %3777 = vmatprep.subr.mxu1 %v3869_v0  ;;  %3745 = vmatpush3.msra.mxu0 %v4488_v49 }
 0x254   :  { %3778 = vmatpush3.msra.mxu1 %v4479_v48  ;;  %3746 = vmatprep.subr.mxu0 %v3869_v0  ;;  %v921_v23 = vpop.permute.xlu1 %920  ;;  %v997_v24 = vpop.permute.xlu0 %996 }
 0x255   :  { %3779 = vmatprep.subr.mxu1 %v3869_v0  ;;  %3747 = vmatpush3.msra.mxu0 %v4497_v50  ;;  %924 = vst.msk [vmem:[#allocation5] sm:$0xff] %vm923_vm3, %v921_v23 }
 0x256   :  { %3780 = vmatpush3.msra.mxu1 %v4488_v49  ;;  %3748 = vmatprep.subr.mxu0 %v3869_v0  ;;  %1000 = vst.msk [vmem:[#allocation5] sm:$0xff] %vm999_vm4, %v997_v24 }
 0x257   :  { %3781 = vmatprep.subr.mxu1 %v3869_v0  ;;  %3749 = vmatpush3.msra.mxu0 %v4506_v51 }
 0x258   :  { %3782 = vmatpush3.msra.mxu1 %v4497_v50  ;;  %3750 = vmatprep.subr.mxu0 %v3869_v0 }
 0x259   :  { %3783 = vmatprep.subr.mxu1 %v3869_v0  ;;  %3751 = vmatpush3.msra.mxu0 %v4515_v52  ;;  %v1523_v17 = vpop.f32.mrf.mxu0 }
 0x25a   :  { %3784 = vmatpush3.msra.mxu1 %v4506_v51  ;;  %3752 = vmatprep.subr.mxu0 %v3869_v0 }
 0x25b   :  { %3785 = vmatprep.subr.mxu1 %v3869_v0  ;;  %3753 = vmatpush3.msra.mxu0 %v4524_v53  ;;  %v3348_v25 = vpop.f32.mrf.mxu0 }
 0x25c   :  { %3786 = vmatpush3.msra.mxu1 %v4515_v52  ;;  %3754 = vmatprep.subr.mxu0 %v3869_v0  ;;  %v1599_v26 = vpop.f32.mrf.mxu1 }
 0x25d   :  { %3787 = vmatprep.subr.mxu1 %v3869_v0  ;;  %3755 = vmatpush3.msra.mxu0 %v4537_v57 }
 0x25e   :  { %3788 = vmatpush3.msra.mxu1 %v4524_v53  ;;  %3756 = vmatprep.subr.mxu0 %v3869_v0  ;;  %v3383_v27 = vpop.f32.mrf.mxu1 }
 0x25f   :  { %3789 = vmatprep.subr.mxu1 %v3869_v0  ;;  %3757 = vmatpush3.msra.mxu0 %v4546_v58 }
 0x260   :  { %3790 = vmatpush3.msra.mxu1 %v4537_v57  ;;  %3758 = vmatprep.subr.mxu0 %v3869_v0 }
 0x261   :  { %3791 = vmatprep.subr.mxu1 %v3869_v0  ;;  %3759 = vmatpush3.msra.mxu0 %v4559_v61 }
 0x262   :  { %3792 = vmatpush3.msra.mxu1 %v4546_v58  ;;  %3760 = vmatprep.subr.mxu0 %v3869_v0 }
 0x263   :  { %3793 = vmatprep.subr.mxu1 %v3869_v0  ;;  %3761 = vmatpush3.msra.mxu0 %v4568_v63 }
 0x264   :  { %3794 = vmatpush3.msra.mxu1 %v4559_v61  ;;  %3762 = vmatprep.subr.mxu0 %v3869_v0 }
 0x265   :  { %3795 = vmatprep.subr.mxu1 %v3869_v0  ;;  %3763 = vmatpush3.msra.mxu0 %v4578_v3 }
 0x266   :  { %3796 = vmatpush3.msra.mxu1 %v4568_v63  ;;  %3764 = vmatprep.subr.mxu0 %v3869_v0 }
 0x267   :  { %3797 = vmatprep.subr.mxu1 %v3869_v0  ;;  %3765 = vmatpush3.msra.mxu0 %v4587_v5 }
 0x268   :  { %3766 = vmatprep.mubr.msk.f32.mxu0 %vm3870_vm0, %v3869_v0  ;;  %3798 = vmatpush3.msra.mxu1 %v4578_v3 }
 0x269   :  { %3767 = vmatmul.mubr.f32.vlgmr.msra.gmra.mxu0 %v4530_v56  ;;  %3799 = vmatprep.subr.mxu1 %v3869_v0 }
 0x26a   :  { %3800 = vmatpush3.msra.mxu1 %v4587_v5  ;;  %3801 = vmatprep.mubr.msk.f32.mxu1 %vm3870_vm0, %v3869_v0 }
 0x26b   :  { %3802 = vmatmul.mubr.f32.vlgmr.msra.gmra.mxu1 %v4552_v60 }
 0x275   :  { %v1073_v28 = vpop.permute.xlu0 %1072 }
 0x276   :  { %1076 = vst.msk [vmem:[#allocation5] sm:$0xff] %vm1075_vm5, %v1073_v28 }
 0x27a   :  { %v1149_v29 = vpop.permute.xlu0 %1148 }
 0x27b   :  { %1152 = vst.msk [vmem:[#allocation5] sm:$0xff] %vm1151_vm6, %v1149_v29  ;;  %v1692_v30 = vpop.f32.mrf.mxu0 }
 0x27c   :  { %1697 = vst.msk [vmem:[#allocation5 + $0x8] sm:$0xff] %vm771_vm1, %v1692_v30 }
 0x27d   :  { %v3418_v31 = vpop.f32.mrf.mxu0 }
 0x27e   :  { %v1764_v32 = vpop.f32.mrf.mxu1 }
 0x27f   :  { %1769 = vrot.lane.b32.xlu0 %v1764_v32, %s3871_s1 }
 0x280   :  { %v3453_v33 = vpop.f32.mrf.mxu1 }
 0x283   :  { %1452 = vrot.lane.b32.xlu0 %v4862_v21, %s3879_s7 }
 0x287   :  { %1528 = vrot.lane.b32.xlu0 %v1523_v17, %s3880_s8 }
 0x28b   :  { %1604 = vrot.lane.b32.xlu0 %v1599_v26, %s3881_s9 }
 0x298   :  { %v1225_v0 = vpop.permute.xlu0 %1224 }
 0x299   :  { %1228 = vst.msk [vmem:[#allocation5] sm:$0xff] %vm1227_vm7, %v1225_v0 }
 0x29d   :  { %v1301_v34 = vpop.permute.xlu0 %1300  ;;  %v1839_v35 = vpop.f32.mrf.mxu0 }
 0x29e   :  { %1304 = vst.msk [vmem:[#allocation5] sm:$0xff] %vm1303_vm8, %v1301_v34  ;;  %1844 = vrot.lane.b32.xlu1 %v1839_v35, %s3872_s27 }
 0x29f   :  { %v3488_v36 = vpop.f32.mrf.mxu0 }
 0x2a0   :  { %v1914_v37 = vpop.f32.mrf.mxu1 }
 0x2a2   :  { %v3523_v38 = vpop.f32.mrf.mxu1  ;;  %1919 = vrot.lane.b32.xlu1 %v1914_v37, %s3873_s28 }
 0x2bd   :  { %v1377_v39 = vpop.permute.xlu0 %1376 }
 0x2be   :  { %1380 = vst.msk [vmem:[#allocation5] sm:$0xff] %vm1379_vm9, %v1377_v39 }
 0x2c0   :  { %v1989_v40 = vpop.f32.mrf.mxu0 }
 0x2c1   :  { %1994 = vrot.lane.b32.xlu1 %v1989_v40, %s3874_s29 }
 0x2c2   :  { %v3558_v41 = vpop.f32.mrf.mxu0 }
 0x2c4   :  { %v2064_v42 = vpop.f32.mrf.mxu1 }
 0x2c5   :  { %2069 = vrot.lane.b32.xlu1 %v2064_v42, %s3875_s30 }
 0x2c6   :  { %v3593_v43 = vpop.f32.mrf.mxu1 }
 0x2e3   :  { %v2139_v44 = vpop.f32.mrf.mxu0 }
 0x2e4   :  { %2144 = vrot.lane.b32.xlu1 %v2139_v44, %s3876_s4 }
 0x2e5   :  { %v3628_v45 = vpop.f32.mrf.mxu0 }
 0x2e7   :  { %v2214_v46 = vpop.f32.mrf.mxu1 }
 0x2e8   :  { %2219 = vrot.lane.b32.xlu1 %v2214_v46, %s3877_s5 }
 0x2e9   :  { %v3663_v47 = vpop.f32.mrf.mxu1 }
 0x2f1   :  { %v1770_v48 = vpop.permute.xlu0 %1769 }
 0x2f2   :  { %1772 = vst.msk [vmem:[#allocation5 + $0x8] sm:$0xff] %vm847_vm2, %v1770_v48 }
 0x2f5   :  { %v1453_v49 = vpop.permute.xlu0 %1452 }
 0x2f6   :  { %1456 = vst.msk [vmem:[#allocation5] sm:$0xff] %vm1455_vm10, %v1453_v49 }
 0x2f9   :  { %v1529_v50 = vpop.permute.xlu0 %1528 }
 0x2fa   :  { %1532 = vst.msk [vmem:[#allocation5] sm:$0xff] %vm1531_vm11, %v1529_v50 }
 0x2fd   :  { %v1605_v51 = vpop.permute.xlu0 %1604 }
 0x2fe   :  { %1608 = vst.msk [vmem:[#allocation5] sm:$0xff] %vm1607_vm12, %v1605_v51 }
 0x306   :  { %v2289_v52 = vpop.f32.mrf.mxu0 }
 0x307   :  { %2294 = vrot.lane.b32.xlu1 %v2289_v52, %s3878_s6 }
 0x308   :  { %v3698_v53 = vpop.f32.mrf.mxu0 }
 0x309   :  { %v2364_v54 = vpop.f32.mrf.mxu1 }
 0x30b   :  { %v3733_v56 = vpop.f32.mrf.mxu1  ;;  %2369 = vrot.lane.b32.xlu1 %v2364_v54, %s3879_s7 }
 0x310   :  { %v1845_v57 = vpop.permute.xlu1 %1844 }
 0x311   :  { %1847 = vst.msk [vmem:[#allocation5 + $0x8] sm:$0xff] %vm923_vm3, %v1845_v57 }
 0x314   :  { %v1920_v58 = vpop.permute.xlu1 %1919 }
 0x315   :  { %1922 = vst.msk [vmem:[#allocation5 + $0x8] sm:$0xff] %vm999_vm4, %v1920_v58 }
 0x329   :  { %v2439_v59 = vpop.f32.mrf.mxu0 }
 0x32a   :  { %2444 = vrot.lane.b32.xlu1 %v2439_v59, %s3880_s8 }
 0x32b   :  { %v3768_v60 = vpop.f32.mrf.mxu0  ;;  %v2514_v61 = vpop.f32.mrf.mxu1 }
 0x32d   :  { %v3803_v62 = vpop.f32.mrf.mxu1 }
 0x32e   :  { %2519 = vrot.lane.b32.xlu1 %v2514_v61, %s3881_s9 }
 0x333   :  { %v1995_v63 = vpop.permute.xlu1 %1994 }
 0x334   :  { %1997 = vst.msk [vmem:[#allocation5 + $0x8] sm:$0xff] %vm1075_vm5, %v1995_v63 }
 0x337   :  { %v2070_v1 = vpop.permute.xlu1 %2069 }
 0x338   :  { %2072 = vst.msk [vmem:[#allocation5 + $0x8] sm:$0xff] %vm1151_vm6, %v2070_v1 }
 0x356   :  { %v2145_v2 = vpop.permute.xlu1 %2144 }
 0x357   :  { %2147 = vst.msk [vmem:[#allocation5 + $0x8] sm:$0xff] %vm1227_vm7, %v2145_v2 }
 0x35a   :  { %v2220_v3 = vpop.permute.xlu1 %2219 }
 0x35b   :  { %2222 = vst.msk [vmem:[#allocation5 + $0x8] sm:$0xff] %vm1303_vm8, %v2220_v3 }
 0x379   :  { %v2295_v4 = vpop.permute.xlu1 %2294 }
 0x37a   :  { %2297 = vst.msk [vmem:[#allocation5 + $0x8] sm:$0xff] %vm1379_vm9, %v2295_v4 }
 0x37d   :  { %v2370_v5 = vpop.permute.xlu1 %2369 }
 0x37e   :  { %2372 = vst.msk [vmem:[#allocation5 + $0x8] sm:$0xff] %vm1455_vm10, %v2370_v5 }
 0x39c   :  { %v2445_v6 = vpop.permute.xlu1 %2444 }
 0x39d   :  { %2447 = vst.msk [vmem:[#allocation5 + $0x8] sm:$0xff] %vm1531_vm11, %v2445_v6 }
 0x3a0   :  { %v2520_v7 = vpop.permute.xlu1 %2519 }
 0x3a1   :  { %2522 = vst.msk [vmem:[#allocation5 + $0x8] sm:$0xff] %vm1607_vm12, %v2520_v7 }
 0x3a2   :  { %3853 = shalt.err (!%p3850_p9)
}
 0x3a3   :  { %s3883_s13 = smov 128  }
 0x3a4   :  { %2534 = dma.vmem_to_hbm [thread:$0]  %s2529_s11, 256, %s5009_s3, [#allocation4], %s3883_s13, %s3883_s13, %s3871_s1  }
 0x3a5   :  { %3864 = dma.done.wait [#allocation4], 256  }
 0x3a6   :  { %3865 = vsyncadd [#allocation4], 4294967040 }
 0x3a7   :  { %2538 = vsyncpa [#allocation3], 1 }
 0x3a8   :  { %2539 = vsyncpa [#allocation4], 1 }

// kernel: tpu_custom_call.1
= control target key start
LH: loop header
LB: loop body
LE: loop exit
PB: predicated region body
PF: predicated region fallthrough
CT: control target
= control target key end

     0   :  { %8 = vsyncpa [#allocation3], 0  ;;  %s5006_s0 = inlined_call_operand.vmem [shape: f32[16,128], index: 0, kind: input, shape index: {}]   ;;  %s5007_s1 = inlined_call_operand.vmem [shape: f32[2,128,8], index: 1, kind: input, shape index: {}]   ;;  %s5008_s2 = inlined_call_operand.hbm [shape: f32[1,128,1536], index: 2, kind: input, shape index: {}]   ;;  %s5009_s3 = inlined_call_operand.hbm [shape: f32[2,8,96], index: 3, kind: output, shape index: {}]  }
   0x1   :  { %9 = vsyncpa [#allocation4], 0  ;;  %s3866_s12 = smov [#allocation2]  }
   0x2   :  { %s19_s13 = sshll.u32 %s3866_s12, 4  ;;  %s20_s13 = int_to_ptr.vmem [resolvable:$true] %s19_s13 }
   0x3   :  { %s3830_s14 = scalar_lea.vmem %s20_s13, 24576  ;;  %p3835_p1 = scmp.lt.s32.totalorder %s20_s13, %s20_s13 }
   0x4   :  { %p3831_p0 = scmp.ne.s32.totalorder %s20_s13, %s3830_s14  ;;  %p3836_p2 = scmp.lt.s32.totalorder %s3830_s14, %s3830_s14 }
   0x6   :  { %p3837_p3 = por %p3836_p2, %p3835_p1 }
   0x8   :  { %p3838_p4 = pnand %p3837_p3, %p3831_p0 }
   0xa   :  { %3841 = shalt.err (!%p3838_p4)
}
   0xb   :  { %s3867_s15 = smov 1536   ;;  %s3868_s16 = smov 96  }
   0xc   :  { %25 = dma.hbm_to_vmem [thread:$0]  %s5008_s2, 24576, %s20_s13, [#allocation3], %s3867_s15, %s3867_s15, %s3868_s16  }
   0xd   :  { %3862 = dma.done.wait [#allocation3], 24576  }
   0xe   :  { %3863 = vsyncadd [#allocation3], 4294942720  ;;  %v3869_v0 = vmov 0.0   ;;  %v212_v1 = vld [vmem:[#allocation2 + $0x5a8] sm:$0xff]  ;;  %v211_v2 = vld [vmem:[#allocation2 + $0x5a0] sm:$0xff]  ;;  %vm3870_vm0 = vmmov 0  }
   0xf   :  { %287 = vmatprep.mubr.f32.mxu0 %v3869_v0  ;;  %364 = vmatprep.mubr.f32.mxu1 %v3869_v0  ;;  %v200_v3 = vld [vmem:[#allocation2 + $0x548] sm:$0xff]  ;;  %v199_v4 = vld [vmem:[#allocation2 + $0x540] sm:$0xff]  ;;  %v214_v14 = vld [vmem:[#allocation2 + $0x5b8] sm:$0xff]  ;;  %vm771_vm1 = vcmask 64512   ;;  %s3872_s27 = smov 16   ;;  %s3873_s28 = smov 24  }
  0x10   :  { %223 = vmatprep.subr.mxu0 %v212_v1  ;;  %v188_v5 = vld [vmem:[#allocation2 + $0x4e8] sm:$0xff]  ;;  %v187_v6 = vld [vmem:[#allocation2 + $0x4e0] sm:$0xff]  ;;  %300 = vmatprep.subr.mxu1 %v214_v14  ;;  %v213_v16 = vld [vmem:[#allocation2 + $0x5b0] sm:$0xff]  ;;  %s3874_s29 = smov 32   ;;  %s3875_s30 = smov 40   ;;  %vm847_vm2 = vcmask 130112  }
  0x11   :  { %224 = vmatpush1.msra.mxu0 %v211_v2  ;;  %v176_v7 = vld [vmem:[#allocation2 + $0x488] sm:$0xff]  ;;  %v175_v8 = vld [vmem:[#allocation2 + $0x480] sm:$0xff]  ;;  %v202_v17 = vld [vmem:[#allocation2 + $0x558] sm:$0xff]  ;;  %301 = vmatpush1.msra.mxu1 %v213_v16  ;;  %s3876_s4 = smov 48   ;;  %s3877_s5 = smov 56   ;;  %vm923_vm3 = vcmask 195712  }
  0x12   :  { %225 = vmatprep.subr.mxu0 %v200_v3  ;;  %v164_v9 = vld [vmem:[#allocation2 + $0x428] sm:$0xff]  ;;  %v163_v10 = vld [vmem:[#allocation2 + $0x420] sm:$0xff]  ;;  %v201_v19 = vld [vmem:[#allocation2 + $0x550] sm:$0xff]  ;;  %302 = vmatprep.subr.mxu1 %v202_v17  ;;  %s3878_s6 = smov 64   ;;  %vm999_vm4 = vcmask 261312   ;;  %vm1075_vm5 = vcmask 326912  }
  0x13   :  { %226 = vmatpush1.msra.mxu0 %v199_v4  ;;  %v152_v11 = vld [vmem:[#allocation2 + $0x3c8] sm:$0xff]  ;;  %v151_v12 = vld [vmem:[#allocation2 + $0x3c0] sm:$0xff]  ;;  %v190_v20 = vld [vmem:[#allocation2 + $0x4f8] sm:$0xff]  ;;  %303 = vmatpush1.msra.mxu1 %v201_v19  ;;  %vm1151_vm6 = vcmask 392512   ;;  %s3879_s7 = smov 72   ;;  %s3880_s8 = smov 80  }
  0x14   :  { %227 = vmatprep.subr.mxu0 %v188_v5  ;;  %v140_v13 = vld [vmem:[#allocation2 + $0x368] sm:$0xff]  ;;  %v139_v15 = vld [vmem:[#allocation2 + $0x360] sm:$0xff]  ;;  %v189_v22 = vld [vmem:[#allocation2 + $0x4f0] sm:$0xff]  ;;  %304 = vmatprep.subr.mxu1 %v190_v20  ;;  %s3881_s9 = smov 88   ;;  %vm1227_vm7 = vcmask 458112   ;;  %vm1303_vm8 = vcmask 523712  }
  0x15   :  { %228 = vmatpush1.msra.mxu0 %v187_v6  ;;  %v128_v18 = vld [vmem:[#allocation2 + $0x308] sm:$0xff]  ;;  %v127_v21 = vld [vmem:[#allocation2 + $0x300] sm:$0xff]  ;;  %v178_v24 = vld [vmem:[#allocation2 + $0x498] sm:$0xff]  ;;  %305 = vmatpush1.msra.mxu1 %v189_v22  ;;  %vm1379_vm9 = vcmask 589312   ;;  %vm1455_vm10 = vcmask 654912   ;;  %vm1531_vm11 = vcmask 720512  }
  0x16   :  { %229 = vmatprep.subr.mxu0 %v176_v7  ;;  %v116_v23 = vld [vmem:[#allocation2 + $0x2a8] sm:$0xff]  ;;  %v115_v25 = vld [vmem:[#allocation2 + $0x2a0] sm:$0xff]  ;;  %v177_v26 = vld [vmem:[#allocation2 + $0x490] sm:$0xff]  ;;  %306 = vmatprep.subr.mxu1 %v178_v24  ;;  %vm1607_vm12 = vcmask 786112   ;;  %s3882_s10 = smov [#allocation5]  }
  0x17   :  { %230 = vmatpush1.msra.mxu0 %v175_v8  ;;  %v104_v27 = vld [vmem:[#allocation2 + $0x248] sm:$0xff]  ;;  %v166_v28 = vld [vmem:[#allocation2 + $0x438] sm:$0xff]  ;;  %v103_v29 = vld [vmem:[#allocation2 + $0x240] sm:$0xff]  ;;  %307 = vmatpush1.msra.mxu1 %v177_v26  ;;  %s2528_s11 = sshll.u32 %s3882_s10, 4  ;;  %s2529_s11 = int_to_ptr.vmem [resolvable:$true] %s2528_s11 }
  0x18   :  { %231 = vmatprep.subr.mxu0 %v164_v9  ;;  %v165_v30 = vld [vmem:[#allocation2 + $0x430] sm:$0xff]  ;;  %v92_v31 = vld [vmem:[#allocation2 + $0x1e8] sm:$0xff]  ;;  %v154_v32 = vld [vmem:[#allocation2 + $0x3d8] sm:$0xff]  ;;  %308 = vmatprep.subr.mxu1 %v166_v28  ;;  %s3842_s12 = scalar_lea.vmem %s2529_s11, 256  ;;  %p3847_p6 = scmp.lt.s32.totalorder %s2529_s11, %s2529_s11 }
  0x19   :  { %232 = vmatpush1.msra.mxu0 %v163_v10  ;;  %v91_v33 = vld [vmem:[#allocation2 + $0x1e0] sm:$0xff]  ;;  %v153_v34 = vld [vmem:[#allocation2 + $0x3d0] sm:$0xff]  ;;  %v80_v35 = vld [vmem:[#allocation2 + $0x188] sm:$0xff]  ;;  %309 = vmatpush1.msra.mxu1 %v165_v30  ;;  %p3843_p5 = scmp.ne.s32.totalorder %s2529_s11, %s3842_s12  ;;  %p3848_p7 = scmp.lt.s32.totalorder %s3842_s12, %s3842_s12 }
  0x1a   :  { %233 = vmatprep.subr.mxu0 %v152_v11  ;;  %v142_v36 = vld [vmem:[#allocation2 + $0x378] sm:$0xff]  ;;  %v79_v37 = vld [vmem:[#allocation2 + $0x180] sm:$0xff]  ;;  %310 = vmatprep.subr.mxu1 %v154_v32  ;;  %v141_v38 = vld [vmem:[#allocation2 + $0x370] sm:$0xff] }
  0x1b   :  { %234 = vmatpush1.msra.mxu0 %v151_v12  ;;  %v68_v39 = vld [vmem:[#allocation2 + $0x128] sm:$0xff]  ;;  %311 = vmatpush1.msra.mxu1 %v153_v34  ;;  %v130_v40 = vld [vmem:[#allocation2 + $0x318] sm:$0xff]  ;;  %v67_v41 = vld [vmem:[#allocation2 + $0x120] sm:$0xff]  ;;  %p3849_p8 = por %p3848_p7, %p3847_p6 }
  0x1c   :  { %235 = vmatprep.subr.mxu0 %v140_v13  ;;  %312 = vmatprep.subr.mxu1 %v142_v36  ;;  %v129_v42 = vld [vmem:[#allocation2 + $0x310] sm:$0xff]  ;;  %v56_v43 = vld [vmem:[#allocation2 + $0xc8] sm:$0xff]  ;;  %v118_v44 = vld [vmem:[#allocation2 + $0x2b8] sm:$0xff] }
  0x1d   :  { %236 = vmatpush1.msra.mxu0 %v139_v15  ;;  %313 = vmatpush1.msra.mxu1 %v141_v38  ;;  %v55_v45 = vld [vmem:[#allocation2 + $0xc0] sm:$0xff]  ;;  %v117_v46 = vld [vmem:[#allocation2 + $0x2b0] sm:$0xff]  ;;  %v44_v47 = vld [vmem:[#allocation2 + $0x68] sm:$0xff]  ;;  %p3850_p9 = pnand %p3849_p8, %p3843_p5 }
  0x1e   :  { %237 = vmatprep.subr.mxu0 %v128_v18  ;;  %314 = vmatprep.subr.mxu1 %v130_v40  ;;  %v106_v48 = vld [vmem:[#allocation2 + $0x258] sm:$0xff]  ;;  %v43_v49 = vld [vmem:[#allocation2 + $0x60] sm:$0xff]  ;;  %v105_v50 = vld [vmem:[#allocation2 + $0x250] sm:$0xff] }
  0x1f   :  { %238 = vmatpush1.msra.mxu0 %v127_v21  ;;  %315 = vmatpush1.msra.mxu1 %v129_v42  ;;  %v32_v51 = vld [vmem:[#allocation2 + $0x8] sm:$0xff]  ;;  %v94_v52 = vld [vmem:[#allocation2 + $0x1f8] sm:$0xff]  ;;  %v31_v53 = vld [vmem:[#allocation2] sm:$0xff] }
  0x20   :  { %239 = vmatprep.subr.mxu0 %v116_v23  ;;  %316 = vmatprep.subr.mxu1 %v118_v44  ;;  %v93_v54 = vld [vmem:[#allocation2 + $0x1f0] sm:$0xff]  ;;  %v3912_v55 = vld [vmem:[%s5006_s0] sm:$0xff]  ;;  %v82_v56 = vld [vmem:[#allocation2 + $0x198] sm:$0xff] }
  0x21   :  { %240 = vmatpush1.msra.mxu0 %v115_v25  ;;  %317 = vmatpush1.msra.mxu1 %v117_v46  ;;  %v81_v57 = vld [vmem:[#allocation2 + $0x190] sm:$0xff]  ;;  %v216_v58 = vld [vmem:[#allocation2 + $0x5c8] sm:$0xff]  ;;  %v70_v59 = vld [vmem:[#allocation2 + $0x138] sm:$0xff] }
  0x22   :  { %241 = vmatprep.subr.mxu0 %v104_v27  ;;  %318 = vmatprep.subr.mxu1 %v106_v48  ;;  %v215_v60 = vld [vmem:[#allocation2 + $0x5c0] sm:$0xff]  ;;  %v69_v61 = vld [vmem:[#allocation2 + $0x130] sm:$0xff]  ;;  %v204_v62 = vld [vmem:[#allocation2 + $0x568] sm:$0xff] }
  0x23   :  { %242 = vmatpush1.msra.mxu0 %v103_v29  ;;  %319 = vmatpush1.msra.mxu1 %v105_v50  ;;  %v58_v63 = vld [vmem:[#allocation2 + $0xd8] sm:$0xff]  ;;  %v203_v1 = vld [vmem:[#allocation2 + $0x560] sm:$0xff]  ;;  %v57_v2 = vld [vmem:[#allocation2 + $0xd0] sm:$0xff] }
  0x24   :  { %243 = vmatprep.subr.mxu0 %v92_v31  ;;  %320 = vmatprep.subr.mxu1 %v94_v52  ;;  %v192_v3 = vld [vmem:[#allocation2 + $0x508] sm:$0xff]  ;;  %v46_v4 = vld [vmem:[#allocation2 + $0x78] sm:$0xff]  ;;  %v191_v5 = vld [vmem:[#allocation2 + $0x500] sm:$0xff] }
  0x25   :  { %244 = vmatpush1.msra.mxu0 %v91_v33  ;;  %321 = vmatpush1.msra.mxu1 %v93_v54  ;;  %v45_v6 = vld [vmem:[#allocation2 + $0x70] sm:$0xff]  ;;  %v180_v7 = vld [vmem:[#allocation2 + $0x4a8] sm:$0xff]  ;;  %v34_v8 = vld [vmem:[#allocation2 + $0x18] sm:$0xff] }
  0x26   :  { %245 = vmatprep.subr.mxu0 %v80_v35  ;;  %322 = vmatprep.subr.mxu1 %v82_v56  ;;  %v179_v9 = vld [vmem:[#allocation2 + $0x4a0] sm:$0xff]  ;;  %v33_v10 = vld [vmem:[#allocation2 + $0x10] sm:$0xff]  ;;  %v168_v11 = vld [vmem:[#allocation2 + $0x448] sm:$0xff] }
  0x27   :  { %246 = vmatpush1.msra.mxu0 %v79_v37  ;;  %323 = vmatpush1.msra.mxu1 %v81_v57  ;;  %v167_v12 = vld [vmem:[#allocation2 + $0x440] sm:$0xff]  ;;  %v156_v13 = vld [vmem:[#allocation2 + $0x3e8] sm:$0xff]  ;;  %v218_v15 = vld [vmem:[#allocation2 + $0x5d8] sm:$0xff] }
  0x28   :  { %247 = vmatprep.subr.mxu0 %v68_v39  ;;  %324 = vmatprep.subr.mxu1 %v70_v59  ;;  %v155_v14 = vld [vmem:[#allocation2 + $0x3e0] sm:$0xff]  ;;  %v144_v16 = vld [vmem:[#allocation2 + $0x388] sm:$0xff]  ;;  %v217_v20 = vld [vmem:[#allocation2 + $0x5d0] sm:$0xff] }
  0x29   :  { %248 = vmatpush1.msra.mxu0 %v67_v41  ;;  %325 = vmatpush1.msra.mxu1 %v69_v61  ;;  %v3919_v17 = vld [vmem:[%s5006_s0 + $0x8] sm:$0xff]  ;;  %v143_v18 = vld [vmem:[#allocation2 + $0x380] sm:$0xff]  ;;  %v206_v22 = vld [vmem:[#allocation2 + $0x578] sm:$0xff] }
  0x2a   :  { %249 = vmatprep.subr.mxu0 %v56_v43  ;;  %326 = vmatprep.subr.mxu1 %v58_v63  ;;  %v132_v19 = vld [vmem:[#allocation2 + $0x328] sm:$0xff]  ;;  %v131_v21 = vld [vmem:[#allocation2 + $0x320] sm:$0xff]  ;;  %v205_v24 = vld [vmem:[#allocation2 + $0x570] sm:$0xff] }
  0x2b   :  { %250 = vmatpush1.msra.mxu0 %v55_v45  ;;  %327 = vmatpush1.msra.mxu1 %v57_v2  ;;  %v120_v23 = vld [vmem:[#allocation2 + $0x2c8] sm:$0xff]  ;;  %v119_v25 = vld [vmem:[#allocation2 + $0x2c0] sm:$0xff]  ;;  %v194_v26 = vld [vmem:[#allocation2 + $0x518] sm:$0xff] }
  0x2c   :  { %251 = vmatprep.subr.mxu0 %v44_v47  ;;  %328 = vmatprep.subr.mxu1 %v46_v4  ;;  %v108_v27 = vld [vmem:[#allocation2 + $0x268] sm:$0xff]  ;;  %v193_v28 = vld [vmem:[#allocation2 + $0x510] sm:$0xff]  ;;  %v107_v29 = vld [vmem:[#allocation2 + $0x260] sm:$0xff] }
  0x2d   :  { %252 = vmatpush1.msra.mxu0 %v43_v49  ;;  %329 = vmatpush1.msra.mxu1 %v45_v6  ;;  %v182_v30 = vld [vmem:[#allocation2 + $0x4b8] sm:$0xff]  ;;  %v96_v31 = vld [vmem:[#allocation2 + $0x208] sm:$0xff]  ;;  %v181_v32 = vld [vmem:[#allocation2 + $0x4b0] sm:$0xff] }
  0x2e   :  { %253 = vmatprep.subr.mxu0 %v32_v51  ;;  %330 = vmatprep.subr.mxu1 %v34_v8  ;;  %v95_v33 = vld [vmem:[#allocation2 + $0x200] sm:$0xff]  ;;  %v170_v34 = vld [vmem:[#allocation2 + $0x458] sm:$0xff]  ;;  %v84_v35 = vld [vmem:[#allocation2 + $0x1a8] sm:$0xff] }
  0x2f   :  { %254 = vmatpush1.msra.mxu0 %v31_v53  ;;  %331 = vmatpush1.msra.mxu1 %v33_v10  ;;  %v169_v36 = vld [vmem:[#allocation2 + $0x450] sm:$0xff]  ;;  %v83_v37 = vld [vmem:[#allocation2 + $0x1a0] sm:$0xff]  ;;  %v158_v38 = vld [vmem:[#allocation2 + $0x3f8] sm:$0xff] }
  0x30   :  { %288 = vmatmul.mubr.f32.vlgmr.msra.gmra.mxu0 %v3912_v55  ;;  %377 = vmatprep.subr.mxu0 %v216_v58  ;;  %v72_v39 = vld [vmem:[#allocation2 + $0x148] sm:$0xff]  ;;  %v157_v40 = vld [vmem:[#allocation2 + $0x3f0] sm:$0xff]  ;;  %v71_v41 = vld [vmem:[#allocation2 + $0x140] sm:$0xff] }
  0x31   :  { %378 = vmatpush1.msra.mxu0 %v215_v60  ;;  %365 = vmatmul.mubr.f32.vlgmr.msra.gmra.mxu1 %v3912_v55  ;;  %v146_v42 = vld [vmem:[#allocation2 + $0x398] sm:$0xff]  ;;  %v60_v43 = vld [vmem:[#allocation2 + $0xe8] sm:$0xff]  ;;  %v145_v44 = vld [vmem:[#allocation2 + $0x390] sm:$0xff] }
  0x32   :  { %379 = vmatprep.subr.mxu0 %v204_v62  ;;  %293 = vmatprep.mubr.f32.mxu0 %v3869_v0  ;;  %v59_v45 = vld [vmem:[#allocation2 + $0xe0] sm:$0xff]  ;;  %v134_v46 = vld [vmem:[#allocation2 + $0x338] sm:$0xff]  ;;  %v48_v47 = vld [vmem:[#allocation2 + $0x88] sm:$0xff] }
  0x33   :  { %380 = vmatpush1.msra.mxu0 %v203_v1  ;;  %454 = vmatprep.subr.mxu1 %v218_v15  ;;  %v133_v48 = vld [vmem:[#allocation2 + $0x330] sm:$0xff]  ;;  %v47_v49 = vld [vmem:[#allocation2 + $0x80] sm:$0xff]  ;;  %v122_v50 = vld [vmem:[#allocation2 + $0x2d8] sm:$0xff] }
  0x34   :  { %381 = vmatprep.subr.mxu0 %v192_v3  ;;  %294 = vmatmul.mubr.f32.gmra.mxu0 %v3919_v17  ;;  %v36_v51 = vld [vmem:[#allocation2 + $0x28] sm:$0xff]  ;;  %v121_v52 = vld [vmem:[#allocation2 + $0x2d0] sm:$0xff]  ;;  %v35_v53 = vld [vmem:[#allocation2 + $0x20] sm:$0xff] }
  0x35   :  { %382 = vmatpush1.msra.mxu0 %v191_v5  ;;  %441 = vmatprep.mubr.f32.mxu0 %v3869_v0  ;;  %v110_v54 = vld [vmem:[#allocation2 + $0x278] sm:$0xff]  ;;  %v109_v56 = vld [vmem:[#allocation2 + $0x270] sm:$0xff]  ;;  %v220_v59 = vld [vmem:[#allocation2 + $0x5e8] sm:$0xff] }
  0x36   :  { %383 = vmatprep.subr.mxu0 %v180_v7  ;;  %455 = vmatpush1.msra.mxu1 %v217_v20  ;;  %v98_v57 = vld [vmem:[#allocation2 + $0x218] sm:$0xff]  ;;  %v97_v58 = vld [vmem:[#allocation2 + $0x210] sm:$0xff]  ;;  %v219_v63 = vld [vmem:[#allocation2 + $0x5e0] sm:$0xff] }
  0x37   :  { %384 = vmatpush1.msra.mxu0 %v179_v9  ;;  %456 = vmatprep.subr.mxu1 %v206_v22  ;;  %v86_v60 = vld [vmem:[#allocation2 + $0x1b8] sm:$0xff]  ;;  %v85_v61 = vld [vmem:[#allocation2 + $0x1b0] sm:$0xff]  ;;  %v208_v2 = vld [vmem:[#allocation2 + $0x588] sm:$0xff] }
  0x38   :  { %385 = vmatprep.subr.mxu0 %v168_v11  ;;  %457 = vmatpush1.msra.mxu1 %v205_v24  ;;  %v74_v62 = vld [vmem:[#allocation2 + $0x158] sm:$0xff]  ;;  %v73_v1 = vld [vmem:[#allocation2 + $0x150] sm:$0xff]  ;;  %v207_v4 = vld [vmem:[#allocation2 + $0x580] sm:$0xff] }
  0x39   :  { %386 = vmatpush1.msra.mxu0 %v167_v12  ;;  %458 = vmatprep.subr.mxu1 %v194_v26  ;;  %v62_v3 = vld [vmem:[#allocation2 + $0xf8] sm:$0xff]  ;;  %v61_v5 = vld [vmem:[#allocation2 + $0xf0] sm:$0xff]  ;;  %v196_v6 = vld [vmem:[#allocation2 + $0x528] sm:$0xff] }
  0x3a   :  { %387 = vmatprep.subr.mxu0 %v156_v13  ;;  %459 = vmatpush1.msra.mxu1 %v193_v28  ;;  %v50_v7 = vld [vmem:[#allocation2 + $0x98] sm:$0xff]  ;;  %v195_v8 = vld [vmem:[#allocation2 + $0x520] sm:$0xff]  ;;  %v49_v9 = vld [vmem:[#allocation2 + $0x90] sm:$0xff] }
  0x3b   :  { %388 = vmatpush1.msra.mxu0 %v155_v14  ;;  %460 = vmatprep.subr.mxu1 %v182_v30  ;;  %v184_v10 = vld [vmem:[#allocation2 + $0x4c8] sm:$0xff]  ;;  %v38_v11 = vld [vmem:[#allocation2 + $0x38] sm:$0xff]  ;;  %v183_v12 = vld [vmem:[#allocation2 + $0x4c0] sm:$0xff] }
  0x3c   :  { %389 = vmatprep.subr.mxu0 %v144_v16  ;;  %461 = vmatpush1.msra.mxu1 %v181_v32  ;;  %v37_v13 = vld [vmem:[#allocation2 + $0x30] sm:$0xff]  ;;  %v172_v14 = vld [vmem:[#allocation2 + $0x468] sm:$0xff]  ;;  %v171_v15 = vld [vmem:[#allocation2 + $0x460] sm:$0xff] }
  0x3d   :  { %390 = vmatpush1.msra.mxu0 %v143_v18  ;;  %462 = vmatprep.subr.mxu1 %v170_v34  ;;  %v160_v16 = vld [vmem:[#allocation2 + $0x408] sm:$0xff]  ;;  %v159_v18 = vld [vmem:[#allocation2 + $0x400] sm:$0xff] }
  0x3e   :  { %391 = vmatprep.subr.mxu0 %v132_v19  ;;  %463 = vmatpush1.msra.mxu1 %v169_v36  ;;  %v222_v19 = vld [vmem:[#allocation2 + $0x5f8] sm:$0xff]  ;;  %v148_v20 = vld [vmem:[#allocation2 + $0x3a8] sm:$0xff]  ;;  %v135_v24 = vld [vmem:[#allocation2 + $0x340] sm:$0xff] }
  0x3f   :  { %392 = vmatpush1.msra.mxu0 %v131_v21  ;;  %464 = vmatprep.subr.mxu1 %v158_v38  ;;  %v147_v21 = vld [vmem:[#allocation2 + $0x3a0] sm:$0xff]  ;;  %v136_v22 = vld [vmem:[#allocation2 + $0x348] sm:$0xff] }
  0x40   :  { %393 = vmatprep.subr.mxu0 %v120_v23  ;;  %465 = vmatpush1.msra.mxu1 %v157_v40  ;;  %v221_v23 = vld [vmem:[#allocation2 + $0x5f0] sm:$0xff]  ;;  %v124_v26 = vld [vmem:[#allocation2 + $0x2e8] sm:$0xff]  ;;  %v123_v28 = vld [vmem:[#allocation2 + $0x2e0] sm:$0xff] }
  0x41   :  { %394 = vmatpush1.msra.mxu0 %v119_v25  ;;  %466 = vmatprep.subr.mxu1 %v146_v42  ;;  %v210_v25 = vld [vmem:[#allocation2 + $0x598] sm:$0xff]  ;;  %v112_v30 = vld [vmem:[#allocation2 + $0x288] sm:$0xff]  ;;  %v111_v32 = vld [vmem:[#allocation2 + $0x280] sm:$0xff] }
  0x42   :  { %395 = vmatprep.subr.mxu0 %v108_v27  ;;  %467 = vmatpush1.msra.mxu1 %v145_v44  ;;  %v209_v27 = vld [vmem:[#allocation2 + $0x590] sm:$0xff]  ;;  %v100_v34 = vld [vmem:[#allocation2 + $0x228] sm:$0xff]  ;;  %v99_v36 = vld [vmem:[#allocation2 + $0x220] sm:$0xff] }
  0x43   :  { %396 = vmatpush1.msra.mxu0 %v107_v29  ;;  %468 = vmatprep.subr.mxu1 %v134_v46  ;;  %v198_v29 = vld [vmem:[#allocation2 + $0x538] sm:$0xff]  ;;  %v88_v38 = vld [vmem:[#allocation2 + $0x1c8] sm:$0xff]  ;;  %v87_v40 = vld [vmem:[#allocation2 + $0x1c0] sm:$0xff] }
  0x44   :  { %397 = vmatprep.subr.mxu0 %v96_v31  ;;  %469 = vmatpush1.msra.mxu1 %v133_v48  ;;  %v197_v31 = vld [vmem:[#allocation2 + $0x530] sm:$0xff]  ;;  %v76_v42 = vld [vmem:[#allocation2 + $0x168] sm:$0xff]  ;;  %v75_v44 = vld [vmem:[#allocation2 + $0x160] sm:$0xff] }
  0x45   :  { %398 = vmatpush1.msra.mxu0 %v95_v33  ;;  %470 = vmatprep.subr.mxu1 %v122_v50  ;;  %v186_v33 = vld [vmem:[#allocation2 + $0x4d8] sm:$0xff]  ;;  %v64_v46 = vld [vmem:[#allocation2 + $0x108] sm:$0xff]  ;;  %v63_v48 = vld [vmem:[#allocation2 + $0x100] sm:$0xff] }
  0x46   :  { %399 = vmatprep.subr.mxu0 %v84_v35  ;;  %471 = vmatpush1.msra.mxu1 %v121_v52  ;;  %v185_v35 = vld [vmem:[#allocation2 + $0x4d0] sm:$0xff]  ;;  %v52_v50 = vld [vmem:[#allocation2 + $0xa8] sm:$0xff]  ;;  %v51_v52 = vld [vmem:[#allocation2 + $0xa0] sm:$0xff] }
  0x47   :  { %400 = vmatpush1.msra.mxu0 %v83_v37  ;;  %472 = vmatprep.subr.mxu1 %v110_v54  ;;  %v174_v37 = vld [vmem:[#allocation2 + $0x478] sm:$0xff]  ;;  %v40_v54 = vld [vmem:[#allocation2 + $0x48] sm:$0xff] }
  0x48   :  { %401 = vmatprep.subr.mxu0 %v72_v39  ;;  %473 = vmatpush1.msra.mxu1 %v109_v56  ;;  %v173_v39 = vld [vmem:[#allocation2 + $0x470] sm:$0xff] }
  0x49   :  { %402 = vmatpush1.msra.mxu0 %v71_v41  ;;  %474 = vmatprep.subr.mxu1 %v98_v57  ;;  %v162_v41 = vld [vmem:[#allocation2 + $0x418] sm:$0xff]  ;;  %v125_v56 = vld [vmem:[#allocation2 + $0x2f0] sm:$0xff]  ;;  %v39_v57 = vld [vmem:[#allocation2 + $0x40] sm:$0xff] }
  0x4a   :  { %403 = vmatprep.subr.mxu0 %v60_v43  ;;  %370 = vmatprep.mubr.f32.mxu1 %v3869_v0  ;;  %v161_v43 = vld [vmem:[#allocation2 + $0x410] sm:$0xff] }
  0x4b   :  { %404 = vmatpush1.msra.mxu0 %v59_v45  ;;  %475 = vmatpush1.msra.mxu1 %v97_v58  ;;  %v150_v45 = vld [vmem:[#allocation2 + $0x3b8] sm:$0xff] }
  0x4c   :  { %405 = vmatprep.subr.mxu0 %v48_v47  ;;  %476 = vmatprep.subr.mxu1 %v86_v60  ;;  %v149_v47 = vld [vmem:[#allocation2 + $0x3b0] sm:$0xff]  ;;  %v114_v58 = vld [vmem:[#allocation2 + $0x298] sm:$0xff] }
  0x4d   :  { %406 = vmatpush1.msra.mxu0 %v47_v49  ;;  %371 = vmatmul.mubr.f32.gmra.mxu1 %v3919_v17  ;;  %v138_v49 = vld [vmem:[#allocation2 + $0x358] sm:$0xff] }
  0x4e   :  { %407 = vmatprep.subr.mxu0 %v36_v51  ;;  %477 = vmatpush1.msra.mxu1 %v85_v61  ;;  %v137_v51 = vld [vmem:[#allocation2 + $0x350] sm:$0xff]  ;;  %v102_v60 = vld [vmem:[#allocation2 + $0x238] sm:$0xff] }
  0x4f   :  { %408 = vmatpush1.msra.mxu0 %v35_v53  ;;  %518 = vmatprep.mubr.f32.mxu1 %v3869_v0  ;;  %v126_v53 = vld [vmem:[#allocation2 + $0x2f8] sm:$0xff]  ;;  %v101_v61 = vld [vmem:[#allocation2 + $0x230] sm:$0xff] }
  0x50   :  { %442 = vmatmul.mubr.f32.vlgmr.msra.gmra.mxu0 %v3912_v55  ;;  %531 = vmatprep.subr.mxu0 %v220_v59  ;;  %v113_v59 = vld [vmem:[#allocation2 + $0x290] sm:$0xff] }
  0x51   :  { %478 = vmatprep.subr.mxu1 %v74_v62  ;;  %532 = vmatpush1.msra.mxu0 %v219_v63  ;;  %v90_v62 = vld [vmem:[#allocation2 + $0x1d8] sm:$0xff]  ;;  %v89_v63 = vld [vmem:[#allocation2 + $0x1d0] sm:$0xff] }
  0x52   :  { %479 = vmatpush1.msra.mxu1 %v73_v1  ;;  %533 = vmatprep.subr.mxu0 %v208_v2  ;;  %v78_v1 = vld [vmem:[#allocation2 + $0x178] sm:$0xff] }
  0x53   :  { %480 = vmatprep.subr.mxu1 %v62_v3  ;;  %534 = vmatpush1.msra.mxu0 %v207_v4  ;;  %v3938_v2 = vld [vmem:[%s5007_s1 + $0x78] sm:$0xff]  ;;  %v77_v3 = vld [vmem:[#allocation2 + $0x170] sm:$0xff] }
  0x54   :  { %481 = vmatpush1.msra.mxu1 %v61_v5  ;;  %535 = vmatprep.subr.mxu0 %v196_v6  ;;  %v66_v4 = vld [vmem:[#allocation2 + $0x118] sm:$0xff]  ;;  %v3945_v5 = vld [vmem:[%s5007_s1 + $0x70] sm:$0xff] }
  0x55   :  { %482 = vmatprep.subr.mxu1 %v50_v7  ;;  %536 = vmatpush1.msra.mxu0 %v195_v8  ;;  %v65_v6 = vld [vmem:[#allocation2 + $0x110] sm:$0xff]  ;;  %v54_v7 = vld [vmem:[#allocation2 + $0xb8] sm:$0xff]  ;;  %v3952_v8 = vld [vmem:[%s5007_s1 + $0x68] sm:$0xff] }
  0x56   :  { %483 = vmatpush1.msra.mxu1 %v49_v9  ;;  %537 = vmatprep.subr.mxu0 %v184_v10  ;;  %v53_v9 = vld [vmem:[#allocation2 + $0xb0] sm:$0xff]  ;;  %v42_v10 = vld [vmem:[#allocation2 + $0x58] sm:$0xff] }
  0x57   :  { %484 = vmatprep.subr.mxu1 %v38_v11  ;;  %538 = vmatpush1.msra.mxu0 %v183_v12  ;;  %v3959_v11 = vld [vmem:[%s5007_s1 + $0x60] sm:$0xff]  ;;  %v41_v12 = vld [vmem:[#allocation2 + $0x50] sm:$0xff] }
  0x58   :  { %485 = vmatpush1.msra.mxu1 %v37_v13  ;;  %539 = vmatprep.subr.mxu0 %v172_v14  ;;  %v3967_v13 = vld [vmem:[%s5007_s1 + $0x58] sm:$0xff]  ;;  %v3975_v14 = vld [vmem:[%s5007_s1 + $0x50] sm:$0xff] }
  0x59   :  { %519 = vmatmul.mubr.f32.vlgmr.msra.gmra.mxu1 %v3912_v55  ;;  %540 = vmatpush1.msra.mxu0 %v171_v15  ;;  %v3984_v15 = vld [vmem:[%s5007_s1 + $0x48] sm:$0xff] }
  0x5a   :  { %541 = vmatprep.subr.mxu0 %v160_v16  ;;  %447 = vmatprep.mubr.f32.mxu0 %v3869_v0  ;;  %v4002_v16 = vld [vmem:[%s5007_s1 + $0x38] sm:$0xff] }
  0x5b   :  { %542 = vmatpush1.msra.mxu0 %v159_v18  ;;  %608 = vmatprep.subr.mxu1 %v222_v19  ;;  %v4011_v18 = vld [vmem:[%s5007_s1 + $0x30] sm:$0xff]  ;;  %v4020_v19 = vld [vmem:[%s5007_s1 + $0x28] sm:$0xff] }
  0x5c   :  { %543 = vmatprep.subr.mxu0 %v148_v20  ;;  %448 = vmatmul.mubr.f32.gmra.mxu0 %v3919_v17  ;;  %v4029_v20 = vld [vmem:[%s5007_s1 + $0x20] sm:$0xff] }
  0x5d   :  { %544 = vmatpush1.msra.mxu0 %v147_v21  ;;  %595 = vmatprep.mubr.f32.mxu0 %v3869_v0  ;;  %v4038_v21 = vld [vmem:[%s5007_s1 + $0x18] sm:$0xff] }
  0x5e   :  { %545 = vmatprep.subr.mxu0 %v136_v22  ;;  %609 = vmatpush1.msra.mxu1 %v221_v23  ;;  %v4051_v22 = vld [vmem:[%s5007_s1 + $0x10] sm:$0xff]  ;;  %v4060_v23 = vld [vmem:[%s5007_s1 + $0x8] sm:$0xff] }
  0x5f   :  { %546 = vmatpush1.msra.mxu0 %v135_v24  ;;  %610 = vmatprep.subr.mxu1 %v210_v25  ;;  %v4073_v24 = vld [vmem:[%s5007_s1] sm:$0xff] }
  0x60   :  { %547 = vmatprep.subr.mxu0 %v124_v26  ;;  %611 = vmatpush1.msra.mxu1 %v209_v27 }
  0x61   :  { %548 = vmatpush1.msra.mxu0 %v123_v28  ;;  %612 = vmatprep.subr.mxu1 %v198_v29 }
  0x62   :  { %549 = vmatprep.subr.mxu0 %v112_v30  ;;  %613 = vmatpush1.msra.mxu1 %v197_v31 }
  0x63   :  { %550 = vmatpush1.msra.mxu0 %v111_v32  ;;  %614 = vmatprep.subr.mxu1 %v186_v33 }
  0x64   :  { %551 = vmatprep.subr.mxu0 %v100_v34  ;;  %615 = vmatpush1.msra.mxu1 %v185_v35 }
  0x65   :  { %552 = vmatpush1.msra.mxu0 %v99_v36  ;;  %616 = vmatprep.subr.mxu1 %v174_v37 }
  0x66   :  { %553 = vmatprep.subr.mxu0 %v88_v38  ;;  %617 = vmatpush1.msra.mxu1 %v173_v39 }
  0x67   :  { %554 = vmatpush1.msra.mxu0 %v87_v40  ;;  %618 = vmatprep.subr.mxu1 %v162_v41 }
  0x68   :  { %555 = vmatprep.subr.mxu0 %v76_v42  ;;  %619 = vmatpush1.msra.mxu1 %v161_v43  ;;  %v4444_v43 = vld [vmem:[%s5007_s1 + $0xf8] sm:$0xff] }
  0x69   :  { %556 = vmatpush1.msra.mxu0 %v75_v44  ;;  %620 = vmatprep.subr.mxu1 %v150_v45  ;;  %v4452_v45 = vld [vmem:[%s5007_s1 + $0xf0] sm:$0xff] }
  0x6a   :  { %557 = vmatprep.subr.mxu0 %v64_v46  ;;  %621 = vmatpush1.msra.mxu1 %v149_v47  ;;  %v4461_v46 = vld [vmem:[%s5007_s1 + $0xe8] sm:$0xff]  ;;  %v4470_v47 = vld [vmem:[%s5007_s1 + $0xe0] sm:$0xff] }
  0x6b   :  { %558 = vmatpush1.msra.mxu0 %v63_v48  ;;  %622 = vmatprep.subr.mxu1 %v138_v49  ;;  %v4479_v48 = vld [vmem:[%s5007_s1 + $0xd8] sm:$0xff]  ;;  %v4488_v49 = vld [vmem:[%s5007_s1 + $0xd0] sm:$0xff] }
  0x6c   :  { %559 = vmatprep.subr.mxu0 %v52_v50  ;;  %623 = vmatpush1.msra.mxu1 %v137_v51  ;;  %v4497_v50 = vld [vmem:[%s5007_s1 + $0xc8] sm:$0xff]  ;;  %v4506_v51 = vld [vmem:[%s5007_s1 + $0xc0] sm:$0xff] }
  0x6d   :  { %560 = vmatpush1.msra.mxu0 %v51_v52  ;;  %624 = vmatprep.subr.mxu1 %v126_v53  ;;  %v4515_v52 = vld [vmem:[%s5007_s1 + $0xb8] sm:$0xff]  ;;  %v4524_v53 = vld [vmem:[%s5007_s1 + $0xb0] sm:$0xff] }
  0x6e   :  { %561 = vmatprep.subr.mxu0 %v40_v54  ;;  %625 = vmatpush1.msra.mxu1 %v125_v56 }
  0x6f   :  { %562 = vmatpush1.msra.mxu0 %v39_v57  ;;  %626 = vmatprep.subr.mxu1 %v114_v58  ;;  %v4537_v57 = vld [vmem:[%s5007_s1 + $0xa8] sm:$0xff]  ;;  %v4546_v58 = vld [vmem:[%s5007_s1 + $0xa0] sm:$0xff] }
  0x70   :  { %596 = vmatmul.mubr.f32.vlgmr.msra.gmra.mxu0 %v3912_v55  ;;  %627 = vmatpush1.msra.mxu1 %v113_v59 }
  0x71   :  { %628 = vmatprep.subr.mxu1 %v102_v60  ;;  %524 = vmatprep.mubr.f32.mxu1 %v3869_v0 }
  0x72   :  { %629 = vmatpush1.msra.mxu1 %v101_v61  ;;  %2964 = vmatprep.subr.mxu0 %v3869_v0  ;;  %v4559_v61 = vld [vmem:[%s5007_s1 + $0x98] sm:$0xff] }
  0x73   :  { %630 = vmatprep.subr.mxu1 %v90_v62  ;;  %525 = vmatmul.mubr.f32.gmra.mxu1 %v3919_v17 }
  0x74   :  { %631 = vmatpush1.msra.mxu1 %v89_v63  ;;  %672 = vmatprep.mubr.f32.mxu1 %v3869_v0  ;;  %v4568_v63 = vld [vmem:[%s5007_s1 + $0x90] sm:$0xff] }
  0x75   :  { %632 = vmatprep.subr.mxu1 %v78_v1  ;;  %2965 = vmatpush3.msra.mxu0 %v3938_v2 }
  0x76   :  { %633 = vmatpush1.msra.mxu1 %v77_v3  ;;  %2966 = vmatprep.subr.mxu0 %v3869_v0  ;;  %v4578_v3 = vld [vmem:[%s5007_s1 + $0x88] sm:$0xff] }
  0x77   :  { %634 = vmatprep.subr.mxu1 %v66_v4  ;;  %2967 = vmatpush3.msra.mxu0 %v3945_v5 }
  0x78   :  { %635 = vmatpush1.msra.mxu1 %v65_v6  ;;  %2968 = vmatprep.subr.mxu0 %v3869_v0 }
  0x79   :  { %636 = vmatprep.subr.mxu1 %v54_v7  ;;  %2969 = vmatpush3.msra.mxu0 %v3952_v8 }
  0x7a   :  { %637 = vmatpush1.msra.mxu1 %v53_v9  ;;  %2970 = vmatprep.subr.mxu0 %v3869_v0 }
  0x7b   :  { %638 = vmatprep.subr.mxu1 %v42_v10  ;;  %2971 = vmatpush3.msra.mxu0 %v3959_v11 }
  0x7c   :  { %639 = vmatpush1.msra.mxu1 %v41_v12  ;;  %2972 = vmatprep.subr.mxu0 %v3869_v0 }
  0x7d   :  { %673 = vmatmul.mubr.f32.vlgmr.msra.gmra.mxu1 %v3912_v55  ;;  %2999 = vmatprep.subr.mxu1 %v3869_v0  ;;  %v3993_v55 = vld [vmem:[%s5007_s1 + $0x40] sm:$0xff] }
  0x7e   :  { %3000 = vmatpush3.msra.mxu1 %v3938_v2  ;;  %2973 = vmatpush3.msra.mxu0 %v3967_v13 }
  0x7f   :  { %3001 = vmatprep.subr.mxu1 %v3869_v0  ;;  %2974 = vmatprep.subr.mxu0 %v3869_v0 }
  0x80   :  { %3002 = vmatpush3.msra.mxu1 %v3945_v5  ;;  %2975 = vmatpush3.msra.mxu0 %v3975_v14 }
  0x81   :  { %3003 = vmatprep.subr.mxu1 %v3869_v0  ;;  %2976 = vmatprep.subr.mxu0 %v3869_v0 }
  0x82   :  { %3004 = vmatpush3.msra.mxu1 %v3952_v8  ;;  %2977 = vmatpush3.msra.mxu0 %v3984_v15 }
  0x83   :  { %3005 = vmatprep.subr.mxu1 %v3869_v0  ;;  %2978 = vmatprep.subr.mxu0 %v3869_v0 }
  0x84   :  { %3006 = vmatpush3.msra.mxu1 %v3959_v11  ;;  %2979 = vmatpush3.msra.mxu0 %v3993_v55 }
  0x85   :  { %3007 = vmatprep.subr.mxu1 %v3869_v0  ;;  %2980 = vmatprep.subr.mxu0 %v3869_v0 }
  0x86   :  { %3008 = vmatpush3.msra.mxu1 %v3967_v13  ;;  %2981 = vmatpush3.msra.mxu0 %v4002_v16 }
  0x87   :  { %3009 = vmatprep.subr.mxu1 %v3869_v0  ;;  %2982 = vmatprep.subr.mxu0 %v3869_v0 }
  0x88   :  { %3010 = vmatpush3.msra.mxu1 %v3975_v14  ;;  %2983 = vmatpush3.msra.mxu0 %v4011_v18 }
  0x89   :  { %3011 = vmatprep.subr.mxu1 %v3869_v0  ;;  %2984 = vmatprep.subr.mxu0 %v3869_v0 }
  0x8a   :  { %3012 = vmatpush3.msra.mxu1 %v3984_v15  ;;  %2985 = vmatpush3.msra.mxu0 %v4020_v19 }
  0x8b   :  { %3013 = vmatprep.subr.mxu1 %v3869_v0  ;;  %2986 = vmatprep.subr.mxu0 %v3869_v0 }
  0x8c   :  { %3014 = vmatpush3.msra.mxu1 %v3993_v55  ;;  %2987 = vmatpush3.msra.mxu0 %v4029_v20 }
  0x8d   :  { %3015 = vmatprep.subr.mxu1 %v3869_v0  ;;  %2988 = vmatprep.subr.mxu0 %v3869_v0 }
  0x8e   :  { %3016 = vmatpush3.msra.mxu1 %v4002_v16  ;;  %2989 = vmatpush3.msra.mxu0 %v4038_v21 }
  0x8f   :  { %3017 = vmatprep.subr.mxu1 %v3869_v0  ;;  %601 = vmatprep.mubr.f32.mxu0 %v3869_v0 }
  0x90   :  { %3018 = vmatpush3.msra.mxu1 %v4011_v18  ;;  %2990 = vmatprep.subr.mxu0 %v3869_v0 }
  0x91   :  { %3019 = vmatprep.subr.mxu1 %v3869_v0  ;;  %602 = vmatmul.mubr.f32.gmra.mxu0 %v3919_v17 }
  0x92   :  { %3020 = vmatpush3.msra.mxu1 %v4020_v19  ;;  %2991 = vmatpush3.msra.mxu0 %v4051_v22 }
  0x93   :  { %3021 = vmatprep.subr.mxu1 %v3869_v0  ;;  %2992 = vmatprep.subr.mxu0 %v3869_v0 }
  0x94   :  { %3022 = vmatpush3.msra.mxu1 %v4029_v20  ;;  %2993 = vmatpush3.msra.mxu0 %v4060_v23 }
  0x95   :  { %3023 = vmatprep.subr.mxu1 %v3869_v0  ;;  %678 = vmatprep.mubr.f32.mxu1 %v3869_v0 }
  0x96   :  { %3024 = vmatpush3.msra.mxu1 %v4038_v21  ;;  %2994 = vmatprep.subr.mxu0 %v3869_v0 }
  0x97   :  { %3025 = vmatprep.subr.mxu1 %v3869_v0  ;;  %679 = vmatmul.mubr.f32.gmra.mxu1 %v3919_v17 }
  0x98   :  { %3026 = vmatpush3.msra.mxu1 %v4051_v22  ;;  %2995 = vmatpush3.msra.mxu0 %v4073_v24 }
  0x99   :  { %3027 = vmatprep.subr.mxu1 %v3869_v0  ;;  %2996 = vmatprep.mubr.msk.f32.mxu0 %vm3870_vm0, %v3869_v0 }
  0x9a   :  { %3028 = vmatpush3.msra.mxu1 %v4060_v23  ;;  %3034 = vmatprep.subr.mxu0 %v3869_v0 }
  0x9b   :  { %3029 = vmatprep.subr.mxu1 %v3869_v0  ;;  %3031 = vmatprep.mubr.msk.f32.mxu1 %vm3870_vm0, %v3869_v0 }
  0x9c   :  { %3030 = vmatpush3.msra.mxu1 %v4073_v24 }
  0x9d   :  { %3069 = vmatprep.subr.mxu1 %v3869_v0 }
  0xf0   :  { %v289_v17 = vpop.f32.mrf.mxu0 }
  0xf1   :  { %2997 = vmatmul.mubr.f32.vlgmr.msra.gmra.mxu0 %v289_v17  ;;  %v366_v26 = vpop.f32.mrf.mxu1 }
  0xf2   :  { %3035 = vmatpush3.msra.mxu0 %v3938_v2  ;;  %v291_v25 = vpop.f32.mrf.mxu0  ;;  %3066 = vmatprep.mubr.msk.f32.mxu0 %vm3870_vm0, %v3869_v0 }
  0xf3   :  { %3036 = vmatprep.subr.mxu0 %v3869_v0  ;;  %3032 = vmatmul.mubr.f32.vlgmr.msra.gmra.mxu1 %v291_v25  ;;  %v368_v27 = vpop.f32.mrf.mxu1 }
  0xf4   :  { %3037 = vmatpush3.msra.mxu0 %v3945_v5  ;;  %3070 = vmatpush3.msra.mxu1 %v3938_v2  ;;  %v4198_v28 = vpop.f32.mrf.mxu0 }
  0xf5   :  { %3038 = vmatprep.subr.mxu0 %v3869_v0  ;;  %3071 = vmatprep.subr.mxu1 %v3869_v0 }
  0xf6   :  { %3039 = vmatpush3.msra.mxu0 %v3952_v8  ;;  %3072 = vmatpush3.msra.mxu1 %v3945_v5  ;;  %v4208_v29 = vpop.f32.mrf.mxu0 }
  0xf7   :  { %3040 = vmatprep.subr.mxu0 %v3869_v0  ;;  %3073 = vmatprep.subr.mxu1 %v3869_v0 }
  0xf8   :  { %3041 = vmatpush3.msra.mxu0 %v3959_v11  ;;  %3074 = vmatpush3.msra.mxu1 %v3952_v8 }
  0xf9   :  { %3042 = vmatprep.subr.mxu0 %v3869_v0  ;;  %3075 = vmatprep.subr.mxu1 %v3869_v0 }
  0xfa   :  { %3043 = vmatpush3.msra.mxu0 %v3967_v13  ;;  %3076 = vmatpush3.msra.mxu1 %v3959_v11 }
  0xfb   :  { %3044 = vmatprep.subr.mxu0 %v3869_v0  ;;  %3077 = vmatprep.subr.mxu1 %v3869_v0 }
  0xfc   :  { %3045 = vmatpush3.msra.mxu0 %v3975_v14  ;;  %3078 = vmatpush3.msra.mxu1 %v3967_v13 }
  0xfd   :  { %3046 = vmatprep.subr.mxu0 %v3869_v0  ;;  %3079 = vmatprep.subr.mxu1 %v3869_v0 }
  0xfe   :  { %3047 = vmatpush3.msra.mxu0 %v3984_v15  ;;  %3080 = vmatpush3.msra.mxu1 %v3975_v14 }
  0xff   :  { %3048 = vmatprep.subr.mxu0 %v3869_v0  ;;  %3081 = vmatprep.subr.mxu1 %v3869_v0 }
 0x100   :  { %3049 = vmatpush3.msra.mxu0 %v3993_v55  ;;  %3082 = vmatpush3.msra.mxu1 %v3984_v15 }
 0x101   :  { %3050 = vmatprep.subr.mxu0 %v3869_v0  ;;  %3083 = vmatprep.subr.mxu1 %v3869_v0 }
 0x102   :  { %3051 = vmatpush3.msra.mxu0 %v4002_v16  ;;  %3084 = vmatpush3.msra.mxu1 %v3993_v55 }
 0x103   :  { %3052 = vmatprep.subr.mxu0 %v3869_v0  ;;  %3085 = vmatprep.subr.mxu1 %v3869_v0 }
 0x104   :  { %3053 = vmatpush3.msra.mxu0 %v4011_v18  ;;  %3086 = vmatpush3.msra.mxu1 %v4002_v16 }
 0x105   :  { %3054 = vmatprep.subr.mxu0 %v3869_v0  ;;  %3087 = vmatprep.subr.mxu1 %v3869_v0 }
 0x106   :  { %3055 = vmatpush3.msra.mxu0 %v4020_v19  ;;  %3088 = vmatpush3.msra.mxu1 %v4011_v18 }
 0x107   :  { %3056 = vmatprep.subr.mxu0 %v3869_v0  ;;  %3089 = vmatprep.subr.mxu1 %v3869_v0 }
 0x108   :  { %3057 = vmatpush3.msra.mxu0 %v4029_v20  ;;  %3090 = vmatpush3.msra.mxu1 %v4020_v19 }
 0x109   :  { %3058 = vmatprep.subr.mxu0 %v3869_v0  ;;  %3091 = vmatprep.subr.mxu1 %v3869_v0 }
 0x10a   :  { %3059 = vmatpush3.msra.mxu0 %v4038_v21  ;;  %3092 = vmatpush3.msra.mxu1 %v4029_v20 }
 0x10b   :  { %3060 = vmatprep.subr.mxu0 %v3869_v0  ;;  %3093 = vmatprep.subr.mxu1 %v3869_v0 }
 0x10c   :  { %3061 = vmatpush3.msra.mxu0 %v4051_v22  ;;  %3094 = vmatpush3.msra.mxu1 %v4038_v21 }
 0x10d   :  { %3062 = vmatprep.subr.mxu0 %v3869_v0  ;;  %3095 = vmatprep.subr.mxu1 %v3869_v0  ;;  %v4270_v32 = vpop.f32.mrf.mxu1 }
 0x10e   :  { %3063 = vmatpush3.msra.mxu0 %v4060_v23  ;;  %3096 = vmatpush3.msra.mxu1 %v4051_v22 }
 0x10f   :  { %3064 = vmatprep.subr.mxu0 %v3869_v0  ;;  %3097 = vmatprep.subr.mxu1 %v3869_v0  ;;  %v4280_v33 = vpop.f32.mrf.mxu1 }
 0x110   :  { %3065 = vmatpush3.msra.mxu0 %v4073_v24  ;;  %3098 = vmatpush3.msra.mxu1 %v4060_v23  ;;  %v443_v30 = vpop.f32.mrf.mxu0 }
 0x111   :  { %3067 = vmatmul.mubr.f32.vlgmr.msra.gmra.mxu0 %v366_v26  ;;  %3099 = vmatprep.subr.mxu1 %v3869_v0 }
 0x112   :  { %3104 = vmatprep.subr.mxu0 %v3869_v0  ;;  %3100 = vmatpush3.msra.mxu1 %v4073_v24  ;;  %v445_v31 = vpop.f32.mrf.mxu0 }
 0x113   :  { %3101 = vmatprep.mubr.msk.f32.mxu1 %vm3870_vm0, %v3869_v0  ;;  %3105 = vmatpush3.msra.mxu0 %v3938_v2 }
 0x114   :  { %3102 = vmatmul.mubr.f32.vlgmr.msra.gmra.mxu1 %v368_v27  ;;  %3106 = vmatprep.subr.mxu0 %v3869_v0 }
 0x115   :  { %3139 = vmatprep.subr.mxu1 %v3869_v0  ;;  %3107 = vmatpush3.msra.mxu0 %v3945_v5 }
 0x116   :  { %3140 = vmatpush3.msra.mxu1 %v3938_v2  ;;  %3108 = vmatprep.subr.mxu0 %v3869_v0 }
 0x117   :  { %3141 = vmatprep.subr.mxu1 %v3869_v0  ;;  %3109 = vmatpush3.msra.mxu0 %v3952_v8 }
 0x118   :  { %3142 = vmatpush3.msra.mxu1 %v3945_v5  ;;  %3110 = vmatprep.subr.mxu0 %v3869_v0 }
 0x119   :  { %3143 = vmatprep.subr.mxu1 %v3869_v0  ;;  %3111 = vmatpush3.msra.mxu0 %v3959_v11  ;;  %v520_v34 = vpop.f32.mrf.mxu1 }
 0x11a   :  { %3144 = vmatpush3.msra.mxu1 %v3952_v8  ;;  %3112 = vmatprep.subr.mxu0 %v3869_v0 }
 0x11b   :  { %3145 = vmatprep.subr.mxu1 %v3869_v0  ;;  %3113 = vmatpush3.msra.mxu0 %v3967_v13  ;;  %v522_v35 = vpop.f32.mrf.mxu1 }
 0x11c   :  { %3146 = vmatpush3.msra.mxu1 %v3959_v11  ;;  %3114 = vmatprep.subr.mxu0 %v3869_v0  ;;  %v4342_v36 = vpop.f32.mrf.mxu0 }
 0x11d   :  { %3147 = vmatprep.subr.mxu1 %v3869_v0  ;;  %3115 = vmatpush3.msra.mxu0 %v3975_v14 }
 0x11e   :  { %3148 = vmatpush3.msra.mxu1 %v3967_v13  ;;  %3116 = vmatprep.subr.mxu0 %v3869_v0  ;;  %v4352_v37 = vpop.f32.mrf.mxu0 }
 0x11f   :  { %3149 = vmatprep.subr.mxu1 %v3869_v0  ;;  %3117 = vmatpush3.msra.mxu0 %v3984_v15 }
 0x120   :  { %3150 = vmatpush3.msra.mxu1 %v3975_v14  ;;  %3118 = vmatprep.subr.mxu0 %v3869_v0 }
 0x121   :  { %3151 = vmatprep.subr.mxu1 %v3869_v0  ;;  %3119 = vmatpush3.msra.mxu0 %v3993_v55 }
 0x122   :  { %3152 = vmatpush3.msra.mxu1 %v3984_v15  ;;  %3120 = vmatprep.subr.mxu0 %v3869_v0 }
 0x123   :  { %3153 = vmatprep.subr.mxu1 %v3869_v0  ;;  %3121 = vmatpush3.msra.mxu0 %v4002_v16 }
 0x124   :  { %3154 = vmatpush3.msra.mxu1 %v3993_v55  ;;  %3122 = vmatprep.subr.mxu0 %v3869_v0 }
 0x125   :  { %3155 = vmatprep.subr.mxu1 %v3869_v0  ;;  %3123 = vmatpush3.msra.mxu0 %v4011_v18 }
 0x126   :  { %3156 = vmatpush3.msra.mxu1 %v4002_v16  ;;  %3124 = vmatprep.subr.mxu0 %v3869_v0 }
 0x127   :  { %3157 = vmatprep.subr.mxu1 %v3869_v0  ;;  %3125 = vmatpush3.msra.mxu0 %v4020_v19 }
 0x128   :  { %3158 = vmatpush3.msra.mxu1 %v4011_v18  ;;  %3126 = vmatprep.subr.mxu0 %v3869_v0 }
 0x129   :  { %3159 = vmatprep.subr.mxu1 %v3869_v0  ;;  %3127 = vmatpush3.msra.mxu0 %v4029_v20 }
 0x12a   :  { %3160 = vmatpush3.msra.mxu1 %v4020_v19  ;;  %3128 = vmatprep.subr.mxu0 %v3869_v0 }
 0x12b   :  { %3161 = vmatprep.subr.mxu1 %v3869_v0  ;;  %3129 = vmatpush3.msra.mxu0 %v4038_v21 }
 0x12c   :  { %3162 = vmatpush3.msra.mxu1 %v4029_v20  ;;  %3130 = vmatprep.subr.mxu0 %v3869_v0 }
 0x12d   :  { %3163 = vmatprep.subr.mxu1 %v3869_v0  ;;  %3131 = vmatpush3.msra.mxu0 %v4051_v22 }
 0x12e   :  { %3164 = vmatpush3.msra.mxu1 %v4038_v21  ;;  %3132 = vmatprep.subr.mxu0 %v3869_v0 }
 0x12f   :  { %3165 = vmatprep.subr.mxu1 %v3869_v0  ;;  %3133 = vmatpush3.msra.mxu0 %v4060_v23 }
 0x130   :  { %3166 = vmatpush3.msra.mxu1 %v4051_v22  ;;  %3134 = vmatprep.subr.mxu0 %v3869_v0  ;;  %v597_v38 = vpop.f32.mrf.mxu0 }
 0x131   :  { %3167 = vmatprep.subr.mxu1 %v3869_v0  ;;  %3135 = vmatpush3.msra.mxu0 %v4073_v24 }
 0x132   :  { %3136 = vmatprep.mubr.msk.f32.mxu0 %vm3870_vm0, %v3869_v0  ;;  %3168 = vmatpush3.msra.mxu1 %v4060_v23  ;;  %v599_v39 = vpop.f32.mrf.mxu0 }
 0x133   :  { %3137 = vmatmul.mubr.f32.vlgmr.msra.gmra.mxu0 %v443_v30  ;;  %3169 = vmatprep.subr.mxu1 %v3869_v0  ;;  %v4414_v40 = vpop.f32.mrf.mxu1 }
 0x134   :  { %3174 = vmatprep.subr.mxu0 %v3869_v0  ;;  %3170 = vmatpush3.msra.mxu1 %v4073_v24 }
 0x135   :  { %3171 = vmatprep.mubr.msk.f32.mxu1 %vm3870_vm0, %v3869_v0  ;;  %3175 = vmatpush3.msra.mxu0 %v3938_v2  ;;  %v4424_v41 = vpop.f32.mrf.mxu1 }
 0x136   :  { %3172 = vmatmul.mubr.f32.vlgmr.msra.gmra.mxu1 %v445_v31  ;;  %3176 = vmatprep.subr.mxu0 %v3869_v0 }
 0x137   :  { %3209 = vmatprep.subr.mxu1 %v3869_v0  ;;  %3177 = vmatpush3.msra.mxu0 %v3945_v5 }
 0x138   :  { %3210 = vmatpush3.msra.mxu1 %v3938_v2  ;;  %3178 = vmatprep.subr.mxu0 %v3869_v0 }
 0x139   :  { %3211 = vmatprep.subr.mxu1 %v3869_v0  ;;  %3179 = vmatpush3.msra.mxu0 %v3952_v8 }
 0x13a   :  { %3212 = vmatpush3.msra.mxu1 %v3945_v5  ;;  %3180 = vmatprep.subr.mxu0 %v3869_v0 }
 0x13b   :  { %3213 = vmatprep.subr.mxu1 %v3869_v0  ;;  %3181 = vmatpush3.msra.mxu0 %v3959_v11 }
 0x13c   :  { %3214 = vmatpush3.msra.mxu1 %v3952_v8  ;;  %3182 = vmatprep.subr.mxu0 %v3869_v0 }
 0x13d   :  { %3215 = vmatprep.subr.mxu1 %v3869_v0  ;;  %3183 = vmatpush3.msra.mxu0 %v3967_v13  ;;  %v674_v42 = vpop.f32.mrf.mxu1 }
 0x13e   :  { %3216 = vmatpush3.msra.mxu1 %v3959_v11  ;;  %3184 = vmatprep.subr.mxu0 %v3869_v0 }
 0x13f   :  { %3217 = vmatprep.subr.mxu1 %v3869_v0  ;;  %3185 = vmatpush3.msra.mxu0 %v3975_v14  ;;  %v676_v44 = vpop.f32.mrf.mxu1 }
 0x140   :  { %3218 = vmatpush3.msra.mxu1 %v3967_v13  ;;  %3186 = vmatprep.subr.mxu0 %v3869_v0 }
 0x141   :  { %3219 = vmatprep.subr.mxu1 %v3869_v0  ;;  %3187 = vmatpush3.msra.mxu0 %v3984_v15 }
 0x142   :  { %3220 = vmatpush3.msra.mxu1 %v3975_v14  ;;  %3188 = vmatprep.subr.mxu0 %v3869_v0 }
 0x143   :  { %3221 = vmatprep.subr.mxu1 %v3869_v0  ;;  %3189 = vmatpush3.msra.mxu0 %v3993_v55 }
 0x144   :  { %3222 = vmatpush3.msra.mxu1 %v3984_v15  ;;  %3190 = vmatprep.subr.mxu0 %v3869_v0 }
 0x145   :  { %3223 = vmatprep.subr.mxu1 %v3869_v0  ;;  %3191 = vmatpush3.msra.mxu0 %v4002_v16 }
 0x146   :  { %3224 = vmatpush3.msra.mxu1 %v3993_v55  ;;  %3192 = vmatprep.subr.mxu0 %v3869_v0 }
 0x147   :  { %3225 = vmatprep.subr.mxu1 %v3869_v0  ;;  %3193 = vmatpush3.msra.mxu0 %v4011_v18 }
 0x148   :  { %3226 = vmatpush3.msra.mxu1 %v4002_v16  ;;  %3194 = vmatprep.subr.mxu0 %v3869_v0 }
 0x149   :  { %3227 = vmatprep.subr.mxu1 %v3869_v0  ;;  %3195 = vmatpush3.msra.mxu0 %v4020_v19 }
 0x14a   :  { %3228 = vmatpush3.msra.mxu1 %v4011_v18  ;;  %3196 = vmatprep.subr.mxu0 %v3869_v0 }
 0x14b   :  { %3229 = vmatprep.subr.mxu1 %v3869_v0  ;;  %3197 = vmatpush3.msra.mxu0 %v4029_v20 }
 0x14c   :  { %3230 = vmatpush3.msra.mxu1 %v4020_v19  ;;  %3198 = vmatprep.subr.mxu0 %v3869_v0 }
 0x14d   :  { %3231 = vmatprep.subr.mxu1 %v3869_v0  ;;  %3199 = vmatpush3.msra.mxu0 %v4038_v21 }
 0x14e   :  { %3232 = vmatpush3.msra.mxu1 %v4029_v20  ;;  %3200 = vmatprep.subr.mxu0 %v3869_v0 }
 0x14f   :  { %3233 = vmatprep.subr.mxu1 %v3869_v0  ;;  %3201 = vmatpush3.msra.mxu0 %v4051_v22 }
 0x150   :  { %3234 = vmatpush3.msra.mxu1 %v4038_v21  ;;  %3202 = vmatprep.subr.mxu0 %v3869_v0 }
 0x151   :  { %3235 = vmatprep.subr.mxu1 %v3869_v0  ;;  %3203 = vmatpush3.msra.mxu0 %v4060_v23  ;;  %v4528_v54 = vpop.f32.mrf.mxu0 }
 0x152   :  { %3236 = vmatpush3.msra.mxu1 %v4051_v22  ;;  %3204 = vmatprep.subr.mxu0 %v3869_v0 }
 0x153   :  { %3237 = vmatprep.subr.mxu1 %v3869_v0  ;;  %3205 = vmatpush3.msra.mxu0 %v4073_v24  ;;  %v4550_v59 = vpop.f32.mrf.mxu0 }
 0x154   :  { %3206 = vmatprep.mubr.msk.f32.mxu0 %vm3870_vm0, %v3869_v0  ;;  %3238 = vmatpush3.msra.mxu1 %v4060_v23 }
 0x155   :  { %3207 = vmatmul.mubr.f32.vlgmr.msra.gmra.mxu0 %v520_v34  ;;  %3239 = vmatprep.subr.mxu1 %v3869_v0 }
 0x156   :  { %3244 = vmatprep.subr.mxu0 %v3869_v0  ;;  %3240 = vmatpush3.msra.mxu1 %v4073_v24 }
 0x157   :  { %3241 = vmatprep.mubr.msk.f32.mxu1 %vm3870_vm0, %v3869_v0  ;;  %3245 = vmatpush3.msra.mxu0 %v3938_v2  ;;  %v4530_v56 = vpop.f32.mrf.mxu1 }
 0x158   :  { %3242 = vmatmul.mubr.f32.vlgmr.msra.gmra.mxu1 %v522_v35  ;;  %3246 = vmatprep.subr.mxu0 %v3869_v0 }
 0x159   :  { %3279 = vmatprep.subr.mxu1 %v3869_v0  ;;  %3247 = vmatpush3.msra.mxu0 %v3945_v5  ;;  %v4552_v60 = vpop.f32.mrf.mxu1 }
 0x15a   :  { %3280 = vmatpush3.msra.mxu1 %v3938_v2  ;;  %3248 = vmatprep.subr.mxu0 %v3869_v0 }
 0x15b   :  { %3281 = vmatprep.subr.mxu1 %v3869_v0  ;;  %3249 = vmatpush3.msra.mxu0 %v3952_v8 }
 0x15c   :  { %3282 = vmatpush3.msra.mxu1 %v3945_v5  ;;  %3250 = vmatprep.subr.mxu0 %v3869_v0 }
 0x15d   :  { %3283 = vmatprep.subr.mxu1 %v3869_v0  ;;  %3251 = vmatpush3.msra.mxu0 %v3959_v11 }
 0x15e   :  { %3284 = vmatpush3.msra.mxu1 %v3952_v8  ;;  %3252 = vmatprep.subr.mxu0 %v3869_v0 }
 0x15f   :  { %3285 = vmatprep.subr.mxu1 %v3869_v0  ;;  %3253 = vmatpush3.msra.mxu0 %v3967_v13 }
 0x160   :  { %3286 = vmatpush3.msra.mxu1 %v3959_v11  ;;  %3254 = vmatprep.subr.mxu0 %v3869_v0 }
 0x161   :  { %3287 = vmatprep.subr.mxu1 %v3869_v0  ;;  %3255 = vmatpush3.msra.mxu0 %v3975_v14 }
 0x162   :  { %3288 = vmatpush3.msra.mxu1 %v3967_v13  ;;  %3256 = vmatprep.subr.mxu0 %v3869_v0 }
 0x163   :  { %3289 = vmatprep.subr.mxu1 %v3869_v0  ;;  %3257 = vmatpush3.msra.mxu0 %v3984_v15 }
 0x164   :  { %3290 = vmatpush3.msra.mxu1 %v3975_v14  ;;  %3258 = vmatprep.subr.mxu0 %v3869_v0 }
 0x165   :  { %3291 = vmatprep.subr.mxu1 %v3869_v0  ;;  %3259 = vmatpush3.msra.mxu0 %v3993_v55 }
 0x166   :  { %3292 = vmatpush3.msra.mxu1 %v3984_v15  ;;  %3260 = vmatprep.subr.mxu0 %v3869_v0 }
 0x167   :  { %3293 = vmatprep.subr.mxu1 %v3869_v0  ;;  %3261 = vmatpush3.msra.mxu0 %v4002_v16 }
 0x168   :  { %3294 = vmatpush3.msra.mxu1 %v3993_v55  ;;  %3262 = vmatprep.subr.mxu0 %v3869_v0 }
 0x169   :  { %3295 = vmatprep.subr.mxu1 %v3869_v0  ;;  %3263 = vmatpush3.msra.mxu0 %v4011_v18 }
 0x16a   :  { %3296 = vmatpush3.msra.mxu1 %v4002_v16  ;;  %3264 = vmatprep.subr.mxu0 %v3869_v0 }
 0x16b   :  { %3297 = vmatprep.subr.mxu1 %v3869_v0  ;;  %3265 = vmatpush3.msra.mxu0 %v4020_v19 }
 0x16c   :  { %3298 = vmatpush3.msra.mxu1 %v4011_v18  ;;  %3266 = vmatprep.subr.mxu0 %v3869_v0 }
 0x16d   :  { %3299 = vmatprep.subr.mxu1 %v3869_v0  ;;  %3267 = vmatpush3.msra.mxu0 %v4029_v20 }
 0x16e   :  { %3300 = vmatpush3.msra.mxu1 %v4020_v19  ;;  %3268 = vmatprep.subr.mxu0 %v3869_v0 }
 0x16f   :  { %3301 = vmatprep.subr.mxu1 %v3869_v0  ;;  %3269 = vmatpush3.msra.mxu0 %v4038_v21 }
 0x170   :  { %3302 = vmatpush3.msra.mxu1 %v4029_v20  ;;  %3270 = vmatprep.subr.mxu0 %v3869_v0 }
 0x171   :  { %3303 = vmatprep.subr.mxu1 %v3869_v0  ;;  %3271 = vmatpush3.msra.mxu0 %v4051_v22 }
 0x172   :  { %3304 = vmatpush3.msra.mxu1 %v4038_v21  ;;  %3272 = vmatprep.subr.mxu0 %v3869_v0 }
 0x173   :  { %3305 = vmatprep.subr.mxu1 %v3869_v0  ;;  %3273 = vmatpush3.msra.mxu0 %v4060_v23 }
 0x174   :  { %3306 = vmatpush3.msra.mxu1 %v4051_v22  ;;  %3274 = vmatprep.subr.mxu0 %v3869_v0 }
 0x175   :  { %3307 = vmatprep.subr.mxu1 %v3869_v0  ;;  %3275 = vmatpush3.msra.mxu0 %v4073_v24 }
 0x176   :  { %3276 = vmatprep.mubr.msk.f32.mxu0 %vm3870_vm0, %v3869_v0  ;;  %3308 = vmatpush3.msra.mxu1 %v4060_v23 }
 0x177   :  { %3277 = vmatmul.mubr.f32.vlgmr.msra.gmra.mxu0 %v597_v38  ;;  %3309 = vmatprep.subr.mxu1 %v3869_v0 }
 0x178   :  { %3314 = vmatprep.subr.mxu0 %v3869_v0  ;;  %3310 = vmatpush3.msra.mxu1 %v4073_v24 }
 0x179   :  { %3311 = vmatprep.mubr.msk.f32.mxu1 %vm3870_vm0, %v3869_v0  ;;  %3315 = vmatpush3.msra.mxu0 %v3938_v2 }
 0x17a   :  { %3312 = vmatmul.mubr.f32.vlgmr.msra.gmra.mxu1 %v599_v39  ;;  %3316 = vmatprep.subr.mxu0 %v3869_v0 }
 0x17b   :  { %3349 = vmatprep.subr.mxu1 %v3869_v0  ;;  %3317 = vmatpush3.msra.mxu0 %v3945_v5 }
 0x17c   :  { %3350 = vmatpush3.msra.mxu1 %v3938_v2  ;;  %3318 = vmatprep.subr.mxu0 %v3869_v0 }
 0x17d   :  { %3351 = vmatprep.subr.mxu1 %v3869_v0  ;;  %3319 = vmatpush3.msra.mxu0 %v3952_v8 }
 0x17e   :  { %3352 = vmatpush3.msra.mxu1 %v3945_v5  ;;  %3320 = vmatprep.subr.mxu0 %v3869_v0  ;;  %v4587_v5 = vld [vmem:[%s5007_s1 + $0x80] sm:$0xff]  ;;  %s3871_s1 = smov 8  }
 0x17f   :  { %3353 = vmatprep.subr.mxu1 %v3869_v0  ;;  %3321 = vmatpush3.msra.mxu0 %v3959_v11 }
 0x180   :  { %3354 = vmatpush3.msra.mxu1 %v3952_v8  ;;  %3322 = vmatprep.subr.mxu0 %v3869_v0 }
 0x181   :  { %3355 = vmatprep.subr.mxu1 %v3869_v0  ;;  %3323 = vmatpush3.msra.mxu0 %v3967_v13 }
 0x182   :  { %3356 = vmatpush3.msra.mxu1 %v3959_v11  ;;  %3324 = vmatprep.subr.mxu0 %v3869_v0 }
 0x183   :  { %3357 = vmatprep.subr.mxu1 %v3869_v0  ;;  %3325 = vmatpush3.msra.mxu0 %v3975_v14 }
 0x184   :  { %3358 = vmatpush3.msra.mxu1 %v3967_v13  ;;  %3326 = vmatprep.subr.mxu0 %v3869_v0 }
 0x185   :  { %3359 = vmatprep.subr.mxu1 %v3869_v0  ;;  %3327 = vmatpush3.msra.mxu0 %v3984_v15 }
 0x186   :  { %3360 = vmatpush3.msra.mxu1 %v3975_v14  ;;  %3328 = vmatprep.subr.mxu0 %v3869_v0 }
 0x187   :  { %3361 = vmatprep.subr.mxu1 %v3869_v0  ;;  %3329 = vmatpush3.msra.mxu0 %v3993_v55 }
 0x188   :  { %3362 = vmatpush3.msra.mxu1 %v3984_v15  ;;  %3330 = vmatprep.subr.mxu0 %v3869_v0 }
 0x189   :  { %3363 = vmatprep.subr.mxu1 %v3869_v0  ;;  %3331 = vmatpush3.msra.mxu0 %v4002_v16 }
 0x18a   :  { %3364 = vmatpush3.msra.mxu1 %v3993_v55  ;;  %3332 = vmatprep.subr.mxu0 %v3869_v0 }
 0x18b   :  { %3365 = vmatprep.subr.mxu1 %v3869_v0  ;;  %3333 = vmatpush3.msra.mxu0 %v4011_v18 }
 0x18c   :  { %3366 = vmatpush3.msra.mxu1 %v4002_v16  ;;  %3334 = vmatprep.subr.mxu0 %v3869_v0 }
 0x18d   :  { %3367 = vmatprep.subr.mxu1 %v3869_v0  ;;  %3335 = vmatpush3.msra.mxu0 %v4020_v19 }
 0x18e   :  { %3368 = vmatpush3.msra.mxu1 %v4011_v18  ;;  %3336 = vmatprep.subr.mxu0 %v3869_v0 }
 0x18f   :  { %3369 = vmatprep.subr.mxu1 %v3869_v0  ;;  %3337 = vmatpush3.msra.mxu0 %v4029_v20 }
 0x190   :  { %3370 = vmatpush3.msra.mxu1 %v4020_v19  ;;  %3338 = vmatprep.subr.mxu0 %v3869_v0 }
 0x191   :  { %3371 = vmatprep.subr.mxu1 %v3869_v0  ;;  %3339 = vmatpush3.msra.mxu0 %v4038_v21 }
 0x192   :  { %3372 = vmatpush3.msra.mxu1 %v4029_v20  ;;  %3340 = vmatprep.subr.mxu0 %v3869_v0 }
 0x193   :  { %3373 = vmatprep.subr.mxu1 %v3869_v0  ;;  %3341 = vmatpush3.msra.mxu0 %v4051_v22 }
 0x194   :  { %3374 = vmatpush3.msra.mxu1 %v4038_v21  ;;  %3342 = vmatprep.subr.mxu0 %v3869_v0 }
 0x195   :  { %3375 = vmatprep.subr.mxu1 %v3869_v0  ;;  %3343 = vmatpush3.msra.mxu0 %v4060_v23 }
 0x196   :  { %3376 = vmatpush3.msra.mxu1 %v4051_v22  ;;  %3344 = vmatprep.subr.mxu0 %v3869_v0 }
 0x197   :  { %3377 = vmatprep.subr.mxu1 %v3869_v0  ;;  %3345 = vmatpush3.msra.mxu0 %v4073_v24 }
 0x198   :  { %3346 = vmatprep.mubr.msk.f32.mxu0 %vm3870_vm0, %v3869_v0  ;;  %3378 = vmatpush3.msra.mxu1 %v4060_v23 }
 0x199   :  { %3347 = vmatmul.mubr.f32.vlgmr.msra.gmra.mxu0 %v674_v42  ;;  %3379 = vmatprep.subr.mxu1 %v3869_v0 }
 0x19a   :  { %3384 = vmatprep.subr.mxu0 %v3869_v0  ;;  %3380 = vmatpush3.msra.mxu1 %v4073_v24 }
 0x19b   :  { %3381 = vmatprep.mubr.msk.f32.mxu1 %vm3870_vm0, %v3869_v0  ;;  %3385 = vmatpush3.msra.mxu0 %v4444_v43 }
 0x19c   :  { %3382 = vmatmul.mubr.f32.vlgmr.msra.gmra.mxu1 %v676_v44  ;;  %3386 = vmatprep.subr.mxu0 %v3869_v0 }
 0x19d   :  { %3419 = vmatprep.subr.mxu1 %v3869_v0  ;;  %3387 = vmatpush3.msra.mxu0 %v4452_v45 }
 0x19e   :  { %3420 = vmatpush3.msra.mxu1 %v4444_v43  ;;  %3388 = vmatprep.subr.mxu0 %v3869_v0 }
 0x19f   :  { %3421 = vmatprep.subr.mxu1 %v3869_v0  ;;  %3389 = vmatpush3.msra.mxu0 %v4461_v46 }
 0x1a0   :  { %3422 = vmatpush3.msra.mxu1 %v4452_v45  ;;  %3390 = vmatprep.subr.mxu0 %v3869_v0 }
 0x1a1   :  { %3423 = vmatprep.subr.mxu1 %v3869_v0  ;;  %3391 = vmatpush3.msra.mxu0 %v4470_v47 }
 0x1a2   :  { %3424 = vmatpush3.msra.mxu1 %v4461_v46  ;;  %3392 = vmatprep.subr.mxu0 %v3869_v0 }
 0x1a3   :  { %3425 = vmatprep.subr.mxu1 %v3869_v0  ;;  %3393 = vmatpush3.msra.mxu0 %v4479_v48 }
 0x1a4   :  { %3426 = vmatpush3.msra.mxu1 %v4470_v47  ;;  %3394 = vmatprep.subr.mxu0 %v3869_v0 }
 0x1a5   :  { %3427 = vmatprep.subr.mxu1 %v3869_v0  ;;  %3395 = vmatpush3.msra.mxu0 %v4488_v49 }
 0x1a6   :  { %3428 = vmatpush3.msra.mxu1 %v4479_v48  ;;  %3396 = vmatprep.subr.mxu0 %v3869_v0 }
 0x1a7   :  { %3429 = vmatprep.subr.mxu1 %v3869_v0  ;;  %3397 = vmatpush3.msra.mxu0 %v4497_v50 }
 0x1a8   :  { %3430 = vmatpush3.msra.mxu1 %v4488_v49  ;;  %3398 = vmatprep.subr.mxu0 %v3869_v0 }
 0x1a9   :  { %3431 = vmatprep.subr.mxu1 %v3869_v0  ;;  %3399 = vmatpush3.msra.mxu0 %v4506_v51 }
 0x1aa   :  { %3432 = vmatpush3.msra.mxu1 %v4497_v50  ;;  %3400 = vmatprep.subr.mxu0 %v3869_v0 }
 0x1ab   :  { %3433 = vmatprep.subr.mxu1 %v3869_v0  ;;  %3401 = vmatpush3.msra.mxu0 %v4515_v52 }
 0x1ac   :  { %3434 = vmatpush3.msra.mxu1 %v4506_v51  ;;  %3402 = vmatprep.subr.mxu0 %v3869_v0 }
 0x1ad   :  { %3435 = vmatprep.subr.mxu1 %v3869_v0  ;;  %3403 = vmatpush3.msra.mxu0 %v4524_v53 }
 0x1ae   :  { %3436 = vmatpush3.msra.mxu1 %v4515_v52  ;;  %3404 = vmatprep.subr.mxu0 %v3869_v0 }
 0x1af   :  { %3437 = vmatprep.subr.mxu1 %v3869_v0  ;;  %3405 = vmatpush3.msra.mxu0 %v4537_v57 }
 0x1b0   :  { %3438 = vmatpush3.msra.mxu1 %v4524_v53  ;;  %3406 = vmatprep.subr.mxu0 %v3869_v0 }
 0x1b1   :  { %3439 = vmatprep.subr.mxu1 %v3869_v0  ;;  %3407 = vmatpush3.msra.mxu0 %v4546_v58  ;;  %v767_v62 = vpop.f32.mrf.mxu0 }
 0x1b2   :  { %3440 = vmatpush3.msra.mxu1 %v4537_v57  ;;  %3408 = vmatprep.subr.mxu0 %v3869_v0  ;;  %772 = vst.msk [vmem:[#allocation5] sm:$0xff] %vm771_vm1, %v767_v62 }
 0x1b3   :  { %3441 = vmatprep.subr.mxu1 %v3869_v0  ;;  %3409 = vmatpush3.msra.mxu0 %v4559_v61  ;;  %v2998_v1 = vpop.f32.mrf.mxu0  ;;  %v839_v2 = vpop.f32.mrf.mxu1 }
 0x1b4   :  { %3442 = vmatpush3.msra.mxu1 %v4546_v58  ;;  %3410 = vmatprep.subr.mxu0 %v3869_v0 }
 0x1b5   :  { %3443 = vmatprep.subr.mxu1 %v3869_v0  ;;  %3411 = vmatpush3.msra.mxu0 %v4568_v63  ;;  %v3033_v4 = vpop.f32.mrf.mxu1 }
 0x1b6   :  { %3444 = vmatpush3.msra.mxu1 %v4559_v61  ;;  %3412 = vmatprep.subr.mxu0 %v3869_v0 }
 0x1b7   :  { %3445 = vmatprep.subr.mxu1 %v3869_v0  ;;  %3413 = vmatpush3.msra.mxu0 %v4578_v3 }
 0x1b8   :  { %3446 = vmatpush3.msra.mxu1 %v4568_v63  ;;  %3414 = vmatprep.subr.mxu0 %v3869_v0 }
 0x1b9   :  { %3447 = vmatprep.subr.mxu1 %v3869_v0  ;;  %3415 = vmatpush3.msra.mxu0 %v4587_v5 }
 0x1ba   :  { %3416 = vmatprep.mubr.msk.f32.mxu0 %vm3870_vm0, %v3869_v0  ;;  %3448 = vmatpush3.msra.mxu1 %v4578_v3 }
 0x1bb   :  { %3417 = vmatmul.mubr.f32.vlgmr.msra.gmra.mxu0 %v4198_v28  ;;  %3449 = vmatprep.subr.mxu1 %v3869_v0 }
 0x1bc   :  { %3454 = vmatprep.subr.mxu0 %v3869_v0  ;;  %3450 = vmatpush3.msra.mxu1 %v4587_v5 }
 0x1bd   :  { %3451 = vmatprep.mubr.msk.f32.mxu1 %vm3870_vm0, %v3869_v0  ;;  %3455 = vmatpush3.msra.mxu0 %v4444_v43 }
 0x1be   :  { %3452 = vmatmul.mubr.f32.vlgmr.msra.gmra.mxu1 %v4208_v29  ;;  %3456 = vmatprep.subr.mxu0 %v3869_v0 }
 0x1bf   :  { %3489 = vmatprep.subr.mxu1 %v3869_v0  ;;  %3457 = vmatpush3.msra.mxu0 %v4452_v45 }
 0x1c0   :  { %3490 = vmatpush3.msra.mxu1 %v4444_v43  ;;  %844 = vrot.lane.b32.xlu0 %v839_v2, %s3871_s1 }
 0x1c1   :  { %3458 = vmatprep.subr.mxu0 %v3869_v0  ;;  %3491 = vmatprep.subr.mxu1 %v3869_v0 }
 0x1c2   :  { %3459 = vmatpush3.msra.mxu0 %v4461_v46  ;;  %3492 = vmatpush3.msra.mxu1 %v4452_v45 }
 0x1c3   :  { %3460 = vmatprep.subr.mxu0 %v3869_v0  ;;  %3493 = vmatprep.subr.mxu1 %v3869_v0 }
 0x1c4   :  { %3461 = vmatpush3.msra.mxu0 %v4470_v47  ;;  %3494 = vmatpush3.msra.mxu1 %v4461_v46 }
 0x1c5   :  { %3462 = vmatprep.subr.mxu0 %v3869_v0  ;;  %3495 = vmatprep.subr.mxu1 %v3869_v0 }
 0x1c6   :  { %3463 = vmatpush3.msra.mxu0 %v4479_v48  ;;  %3496 = vmatpush3.msra.mxu1 %v4470_v47 }
 0x1c7   :  { %3464 = vmatprep.subr.mxu0 %v3869_v0  ;;  %3497 = vmatprep.subr.mxu1 %v3869_v0 }
 0x1c8   :  { %3465 = vmatpush3.msra.mxu0 %v4488_v49  ;;  %3498 = vmatpush3.msra.mxu1 %v4479_v48 }
 0x1c9   :  { %3466 = vmatprep.subr.mxu0 %v3869_v0  ;;  %3499 = vmatprep.subr.mxu1 %v3869_v0 }
 0x1ca   :  { %3467 = vmatpush3.msra.mxu0 %v4497_v50  ;;  %3500 = vmatpush3.msra.mxu1 %v4488_v49 }
 0x1cb   :  { %3468 = vmatprep.subr.mxu0 %v3869_v0  ;;  %3501 = vmatprep.subr.mxu1 %v3869_v0 }
 0x1cc   :  { %3469 = vmatpush3.msra.mxu0 %v4506_v51  ;;  %3502 = vmatpush3.msra.mxu1 %v4497_v50 }
 0x1cd   :  { %3470 = vmatprep.subr.mxu0 %v3869_v0  ;;  %3503 = vmatprep.subr.mxu1 %v3869_v0 }
 0x1ce   :  { %3471 = vmatpush3.msra.mxu0 %v4515_v52  ;;  %3504 = vmatpush3.msra.mxu1 %v4506_v51 }
 0x1cf   :  { %3472 = vmatprep.subr.mxu0 %v3869_v0  ;;  %3505 = vmatprep.subr.mxu1 %v3869_v0 }
 0x1d0   :  { %3473 = vmatpush3.msra.mxu0 %v4524_v53  ;;  %3506 = vmatpush3.msra.mxu1 %v4515_v52 }
 0x1d1   :  { %3474 = vmatprep.subr.mxu0 %v3869_v0  ;;  %3507 = vmatprep.subr.mxu1 %v3869_v0  ;;  %v915_v6 = vpop.f32.mrf.mxu0 }
 0x1d2   :  { %3475 = vmatpush3.msra.mxu0 %v4537_v57  ;;  %3508 = vmatpush3.msra.mxu1 %v4524_v53 }
 0x1d3   :  { %3476 = vmatprep.subr.mxu0 %v3869_v0  ;;  %3509 = vmatprep.subr.mxu1 %v3869_v0  ;;  %v3068_v7 = vpop.f32.mrf.mxu0 }
 0x1d4   :  { %3477 = vmatpush3.msra.mxu0 %v4546_v58  ;;  %3510 = vmatpush3.msra.mxu1 %v4537_v57  ;;  %v991_v8 = vpop.f32.mrf.mxu1 }
 0x1d5   :  { %3478 = vmatprep.subr.mxu0 %v3869_v0  ;;  %3511 = vmatprep.subr.mxu1 %v3869_v0 }
 0x1d6   :  { %3479 = vmatpush3.msra.mxu0 %v4559_v61  ;;  %3512 = vmatpush3.msra.mxu1 %v4546_v58  ;;  %v3103_v9 = vpop.f32.mrf.mxu1 }
 0x1d7   :  { %3480 = vmatprep.subr.mxu0 %v3869_v0  ;;  %3513 = vmatprep.subr.mxu1 %v3869_v0 }
 0x1d8   :  { %3481 = vmatpush3.msra.mxu0 %v4568_v63  ;;  %3514 = vmatpush3.msra.mxu1 %v4559_v61 }
 0x1d9   :  { %3482 = vmatprep.subr.mxu0 %v3869_v0  ;;  %3515 = vmatprep.subr.mxu1 %v3869_v0 }
 0x1da   :  { %3483 = vmatpush3.msra.mxu0 %v4578_v3  ;;  %3516 = vmatpush3.msra.mxu1 %v4568_v63 }
 0x1db   :  { %3484 = vmatprep.subr.mxu0 %v3869_v0  ;;  %3517 = vmatprep.subr.mxu1 %v3869_v0 }
 0x1dc   :  { %3485 = vmatpush3.msra.mxu0 %v4587_v5  ;;  %3486 = vmatprep.mubr.msk.f32.mxu0 %vm3870_vm0, %v3869_v0 }
 0x1dd   :  { %3518 = vmatpush3.msra.mxu1 %v4578_v3  ;;  %3487 = vmatmul.mubr.f32.vlgmr.msra.gmra.mxu0 %v4270_v32 }
 0x1de   :  { %3519 = vmatprep.subr.mxu1 %v3869_v0  ;;  %3524 = vmatprep.subr.mxu0 %v3869_v0 }
 0x1df   :  { %3520 = vmatpush3.msra.mxu1 %v4587_v5  ;;  %3521 = vmatprep.mubr.msk.f32.mxu1 %vm3870_vm0, %v3869_v0 }
 0x1e0   :  { %3525 = vmatpush3.msra.mxu0 %v4444_v43  ;;  %3522 = vmatmul.mubr.f32.vlgmr.msra.gmra.mxu1 %v4280_v33 }
 0x1e1   :  { %3526 = vmatprep.subr.mxu0 %v3869_v0  ;;  %3559 = vmatprep.subr.mxu1 %v3869_v0 }
 0x1e2   :  { %920 = vrot.lane.b32.xlu1 %v915_v6, %s3872_s27  ;;  %996 = vrot.lane.b32.xlu0 %v991_v8, %s3873_s28 }
 0x1e3   :  { %3527 = vmatpush3.msra.mxu0 %v4452_v45  ;;  %3560 = vmatpush3.msra.mxu1 %v4444_v43 }
 0x1e4   :  { %3528 = vmatprep.subr.mxu0 %v3869_v0  ;;  %3561 = vmatprep.subr.mxu1 %v3869_v0 }
 0x1e5   :  { %3529 = vmatpush3.msra.mxu0 %v4461_v46  ;;  %3562 = vmatpush3.msra.mxu1 %v4452_v45 }
 0x1e6   :  { %3530 = vmatprep.subr.mxu0 %v3869_v0  ;;  %3563 = vmatprep.subr.mxu1 %v3869_v0 }
 0x1e7   :  { %3531 = vmatpush3.msra.mxu0 %v4470_v47  ;;  %3564 = vmatpush3.msra.mxu1 %v4461_v46 }
 0x1e8   :  { %3532 = vmatprep.subr.mxu0 %v3869_v0  ;;  %3565 = vmatprep.subr.mxu1 %v3869_v0 }
 0x1e9   :  { %3533 = vmatpush3.msra.mxu0 %v4479_v48  ;;  %3566 = vmatpush3.msra.mxu1 %v4470_v47 }
 0x1ea   :  { %3534 = vmatprep.subr.mxu0 %v3869_v0  ;;  %3567 = vmatprep.subr.mxu1 %v3869_v0 }
 0x1eb   :  { %3535 = vmatpush3.msra.mxu0 %v4488_v49  ;;  %3568 = vmatpush3.msra.mxu1 %v4479_v48 }
 0x1ec   :  { %3536 = vmatprep.subr.mxu0 %v3869_v0  ;;  %3569 = vmatprep.subr.mxu1 %v3869_v0 }
 0x1ed   :  { %3537 = vmatpush3.msra.mxu0 %v4497_v50  ;;  %3570 = vmatpush3.msra.mxu1 %v4488_v49 }
 0x1ee   :  { %3538 = vmatprep.subr.mxu0 %v3869_v0  ;;  %3571 = vmatprep.subr.mxu1 %v3869_v0 }
 0x1ef   :  { %3539 = vmatpush3.msra.mxu0 %v4506_v51  ;;  %3572 = vmatpush3.msra.mxu1 %v4497_v50 }
 0x1f0   :  { %3540 = vmatprep.subr.mxu0 %v3869_v0  ;;  %3573 = vmatprep.subr.mxu1 %v3869_v0 }
 0x1f1   :  { %3541 = vmatpush3.msra.mxu0 %v4515_v52  ;;  %3574 = vmatpush3.msra.mxu1 %v4506_v51 }
 0x1f2   :  { %3542 = vmatprep.subr.mxu0 %v3869_v0  ;;  %3575 = vmatprep.subr.mxu1 %v3869_v0 }
 0x1f3   :  { %3543 = vmatpush3.msra.mxu0 %v4524_v53  ;;  %3576 = vmatpush3.msra.mxu1 %v4515_v52  ;;  %v1067_v10 = vpop.f32.mrf.mxu0 }
 0x1f4   :  { %3544 = vmatprep.subr.mxu0 %v3869_v0  ;;  %3577 = vmatprep.subr.mxu1 %v3869_v0 }
 0x1f5   :  { %3545 = vmatpush3.msra.mxu0 %v4537_v57  ;;  %3578 = vmatpush3.msra.mxu1 %v4524_v53  ;;  %v3138_v11 = vpop.f32.mrf.mxu0 }
 0x1f6   :  { %3546 = vmatprep.subr.mxu0 %v3869_v0  ;;  %3579 = vmatprep.subr.mxu1 %v3869_v0  ;;  %v1143_v12 = vpop.f32.mrf.mxu1 }
 0x1f7   :  { %3547 = vmatpush3.msra.mxu0 %v4546_v58  ;;  %3580 = vmatpush3.msra.mxu1 %v4537_v57 }
 0x1f8   :  { %3548 = vmatprep.subr.mxu0 %v3869_v0  ;;  %3581 = vmatprep.subr.mxu1 %v3869_v0  ;;  %v3173_v13 = vpop.f32.mrf.mxu1 }
 0x1f9   :  { %3549 = vmatpush3.msra.mxu0 %v4559_v61  ;;  %3582 = vmatpush3.msra.mxu1 %v4546_v58 }
 0x1fa   :  { %3550 = vmatprep.subr.mxu0 %v3869_v0  ;;  %3583 = vmatprep.subr.mxu1 %v3869_v0 }
 0x1fb   :  { %3551 = vmatpush3.msra.mxu0 %v4568_v63  ;;  %3584 = vmatpush3.msra.mxu1 %v4559_v61 }
 0x1fc   :  { %3552 = vmatprep.subr.mxu0 %v3869_v0  ;;  %3585 = vmatprep.subr.mxu1 %v3869_v0 }
 0x1fd   :  { %3553 = vmatpush3.msra.mxu0 %v4578_v3  ;;  %3586 = vmatpush3.msra.mxu1 %v4568_v63 }
 0x1fe   :  { %3554 = vmatprep.subr.mxu0 %v3869_v0  ;;  %3587 = vmatprep.subr.mxu1 %v3869_v0 }
 0x1ff   :  { %3555 = vmatpush3.msra.mxu0 %v4587_v5  ;;  %3556 = vmatprep.mubr.msk.f32.mxu0 %vm3870_vm0, %v3869_v0 }
 0x200   :  { %3588 = vmatpush3.msra.mxu1 %v4578_v3  ;;  %3557 = vmatmul.mubr.f32.vlgmr.msra.gmra.mxu0 %v4342_v36 }
 0x201   :  { %3589 = vmatprep.subr.mxu1 %v3869_v0  ;;  %3594 = vmatprep.subr.mxu0 %v3869_v0 }
 0x202   :  { %3590 = vmatpush3.msra.mxu1 %v4587_v5  ;;  %3591 = vmatprep.mubr.msk.f32.mxu1 %vm3870_vm0, %v3869_v0 }
 0x203   :  { %3595 = vmatpush3.msra.mxu0 %v4444_v43  ;;  %1072 = vrot.lane.b32.xlu0 %v1067_v10, %s3874_s29 }
 0x204   :  { %3592 = vmatmul.mubr.f32.vlgmr.msra.gmra.mxu1 %v4352_v37  ;;  %3596 = vmatprep.subr.mxu0 %v3869_v0 }
 0x205   :  { %3629 = vmatprep.subr.mxu1 %v3869_v0  ;;  %3597 = vmatpush3.msra.mxu0 %v4452_v45 }
 0x206   :  { %3630 = vmatpush3.msra.mxu1 %v4444_v43  ;;  %3598 = vmatprep.subr.mxu0 %v3869_v0 }
 0x207   :  { %3631 = vmatprep.subr.mxu1 %v3869_v0  ;;  %3599 = vmatpush3.msra.mxu0 %v4461_v46 }
 0x208   :  { %3632 = vmatpush3.msra.mxu1 %v4452_v45  ;;  %1148 = vrot.lane.b32.xlu0 %v1143_v12, %s3875_s30 }
 0x209   :  { %3600 = vmatprep.subr.mxu0 %v3869_v0  ;;  %3633 = vmatprep.subr.mxu1 %v3869_v0 }
 0x20a   :  { %3601 = vmatpush3.msra.mxu0 %v4470_v47  ;;  %3634 = vmatpush3.msra.mxu1 %v4461_v46 }
 0x20b   :  { %3602 = vmatprep.subr.mxu0 %v3869_v0  ;;  %3635 = vmatprep.subr.mxu1 %v3869_v0 }
 0x20c   :  { %3603 = vmatpush3.msra.mxu0 %v4479_v48  ;;  %3636 = vmatpush3.msra.mxu1 %v4470_v47 }
 0x20d   :  { %3604 = vmatprep.subr.mxu0 %v3869_v0  ;;  %3637 = vmatprep.subr.mxu1 %v3869_v0 }
 0x20e   :  { %3605 = vmatpush3.msra.mxu0 %v4488_v49  ;;  %3638 = vmatpush3.msra.mxu1 %v4479_v48 }
 0x20f   :  { %3606 = vmatprep.subr.mxu0 %v3869_v0  ;;  %3639 = vmatprep.subr.mxu1 %v3869_v0 }
 0x210   :  { %3607 = vmatpush3.msra.mxu0 %v4497_v50  ;;  %3640 = vmatpush3.msra.mxu1 %v4488_v49 }
 0x211   :  { %3608 = vmatprep.subr.mxu0 %v3869_v0  ;;  %3641 = vmatprep.subr.mxu1 %v3869_v0 }
 0x212   :  { %3609 = vmatpush3.msra.mxu0 %v4506_v51  ;;  %3642 = vmatpush3.msra.mxu1 %v4497_v50 }
 0x213   :  { %3610 = vmatprep.subr.mxu0 %v3869_v0  ;;  %3643 = vmatprep.subr.mxu1 %v3869_v0 }
 0x214   :  { %3611 = vmatpush3.msra.mxu0 %v4515_v52  ;;  %3644 = vmatpush3.msra.mxu1 %v4506_v51 }
 0x215   :  { %3612 = vmatprep.subr.mxu0 %v3869_v0  ;;  %3645 = vmatprep.subr.mxu1 %v3869_v0  ;;  %v1219_v14 = vpop.f32.mrf.mxu0 }
 0x216   :  { %3613 = vmatpush3.msra.mxu0 %v4524_v53  ;;  %3646 = vmatpush3.msra.mxu1 %v4515_v52 }
 0x217   :  { %3614 = vmatprep.subr.mxu0 %v3869_v0  ;;  %3647 = vmatprep.subr.mxu1 %v3869_v0  ;;  %v3208_v15 = vpop.f32.mrf.mxu0 }
 0x218   :  { %3615 = vmatpush3.msra.mxu0 %v4537_v57  ;;  %3648 = vmatpush3.msra.mxu1 %v4524_v53  ;;  %v1295_v55 = vpop.f32.mrf.mxu1 }
 0x219   :  { %3616 = vmatprep.subr.mxu0 %v3869_v0  ;;  %3649 = vmatprep.subr.mxu1 %v3869_v0 }
 0x21a   :  { %3617 = vmatpush3.msra.mxu0 %v4546_v58  ;;  %3650 = vmatpush3.msra.mxu1 %v4537_v57  ;;  %v3243_v16 = vpop.f32.mrf.mxu1 }
 0x21b   :  { %3618 = vmatprep.subr.mxu0 %v3869_v0  ;;  %3651 = vmatprep.subr.mxu1 %v3869_v0 }
 0x21c   :  { %3619 = vmatpush3.msra.mxu0 %v4559_v61  ;;  %3652 = vmatpush3.msra.mxu1 %v4546_v58 }
 0x21d   :  { %3620 = vmatprep.subr.mxu0 %v3869_v0  ;;  %3653 = vmatprep.subr.mxu1 %v3869_v0 }
 0x21e   :  { %3621 = vmatpush3.msra.mxu0 %v4568_v63  ;;  %3654 = vmatpush3.msra.mxu1 %v4559_v61 }
 0x21f   :  { %3622 = vmatprep.subr.mxu0 %v3869_v0  ;;  %3655 = vmatprep.subr.mxu1 %v3869_v0 }
 0x220   :  { %3623 = vmatpush3.msra.mxu0 %v4578_v3  ;;  %3656 = vmatpush3.msra.mxu1 %v4568_v63 }
 0x221   :  { %3624 = vmatprep.subr.mxu0 %v3869_v0  ;;  %3657 = vmatprep.subr.mxu1 %v3869_v0 }
 0x222   :  { %3625 = vmatpush3.msra.mxu0 %v4587_v5  ;;  %3626 = vmatprep.mubr.msk.f32.mxu0 %vm3870_vm0, %v3869_v0 }
 0x223   :  { %3658 = vmatpush3.msra.mxu1 %v4578_v3  ;;  %3627 = vmatmul.mubr.f32.vlgmr.msra.gmra.mxu0 %v4414_v40 }
 0x224   :  { %3659 = vmatprep.subr.mxu1 %v3869_v0  ;;  %3664 = vmatprep.subr.mxu0 %v3869_v0 }
 0x225   :  { %3660 = vmatpush3.msra.mxu1 %v4587_v5  ;;  %3661 = vmatprep.mubr.msk.f32.mxu1 %vm3870_vm0, %v3869_v0 }
 0x226   :  { %3665 = vmatpush3.msra.mxu0 %v4444_v43  ;;  %1224 = vrot.lane.b32.xlu0 %v1219_v14, %s3876_s4 }
 0x227   :  { %3662 = vmatmul.mubr.f32.vlgmr.msra.gmra.mxu1 %v4424_v41  ;;  %3666 = vmatprep.subr.mxu0 %v3869_v0 }
 0x228   :  { %3699 = vmatprep.subr.mxu1 %v3869_v0  ;;  %3667 = vmatpush3.msra.mxu0 %v4452_v45 }
 0x229   :  { %3700 = vmatpush3.msra.mxu1 %v4444_v43  ;;  %3668 = vmatprep.subr.mxu0 %v3869_v0 }
 0x22a   :  { %3701 = vmatprep.subr.mxu1 %v3869_v0  ;;  %3669 = vmatpush3.msra.mxu0 %v4461_v46 }
 0x22b   :  { %3702 = vmatpush3.msra.mxu1 %v4452_v45  ;;  %1300 = vrot.lane.b32.xlu0 %v1295_v55, %s3877_s5 }
 0x22c   :  { %3670 = vmatprep.subr.mxu0 %v3869_v0  ;;  %3703 = vmatprep.subr.mxu1 %v3869_v0 }
 0x22d   :  { %3671 = vmatpush3.msra.mxu0 %v4470_v47  ;;  %3704 = vmatpush3.msra.mxu1 %v4461_v46 }
 0x22e   :  { %3672 = vmatprep.subr.mxu0 %v3869_v0  ;;  %3705 = vmatprep.subr.mxu1 %v3869_v0 }
 0x22f   :  { %3673 = vmatpush3.msra.mxu0 %v4479_v48  ;;  %3706 = vmatpush3.msra.mxu1 %v4470_v47 }
 0x230   :  { %3674 = vmatprep.subr.mxu0 %v3869_v0  ;;  %3707 = vmatprep.subr.mxu1 %v3869_v0 }
 0x231   :  { %3675 = vmatpush3.msra.mxu0 %v4488_v49  ;;  %3708 = vmatpush3.msra.mxu1 %v4479_v48 }
 0x232   :  { %3676 = vmatprep.subr.mxu0 %v3869_v0  ;;  %3709 = vmatprep.subr.mxu1 %v3869_v0  ;;  %v845_v18 = vpop.permute.xlu0 %844 }
 0x233   :  { %3677 = vmatpush3.msra.mxu0 %v4497_v50  ;;  %3710 = vmatpush3.msra.mxu1 %v4488_v49  ;;  %848 = vst.msk [vmem:[#allocation5] sm:$0xff] %vm847_vm2, %v845_v18 }
 0x234   :  { %3678 = vmatprep.subr.mxu0 %v3869_v0  ;;  %3711 = vmatprep.subr.mxu1 %v3869_v0 }
 0x235   :  { %3679 = vmatpush3.msra.mxu0 %v4506_v51  ;;  %3712 = vmatpush3.msra.mxu1 %v4497_v50 }
 0x236   :  { %3680 = vmatprep.subr.mxu0 %v3869_v0  ;;  %3713 = vmatprep.subr.mxu1 %v3869_v0 }
 0x237   :  { %3681 = vmatpush3.msra.mxu0 %v4515_v52  ;;  %3714 = vmatpush3.msra.mxu1 %v4506_v51  ;;  %v1371_v19 = vpop.f32.mrf.mxu0 }
 0x238   :  { %3682 = vmatprep.subr.mxu0 %v3869_v0  ;;  %3715 = vmatprep.subr.mxu1 %v3869_v0 }
 0x239   :  { %3683 = vmatpush3.msra.mxu0 %v4524_v53  ;;  %3716 = vmatpush3.msra.mxu1 %v4515_v52  ;;  %v3278_v20 = vpop.f32.mrf.mxu0 }
 0x23a   :  { %3684 = vmatprep.subr.mxu0 %v3869_v0  ;;  %3717 = vmatprep.subr.mxu1 %v3869_v0  ;;  %v4862_v21 = vpop.f32.mrf.mxu1 }
 0x23b   :  { %3685 = vmatpush3.msra.mxu0 %v4537_v57  ;;  %3718 = vmatpush3.msra.mxu1 %v4524_v53 }
 0x23c   :  { %3686 = vmatprep.subr.mxu0 %v3869_v0  ;;  %3719 = vmatprep.subr.mxu1 %v3869_v0  ;;  %v3313_v22 = vpop.f32.mrf.mxu1 }
 0x23d   :  { %3687 = vmatpush3.msra.mxu0 %v4546_v58  ;;  %3720 = vmatpush3.msra.mxu1 %v4537_v57 }
 0x23e   :  { %3688 = vmatprep.subr.mxu0 %v3869_v0  ;;  %3721 = vmatprep.subr.mxu1 %v3869_v0 }
 0x23f   :  { %3689 = vmatpush3.msra.mxu0 %v4559_v61  ;;  %3722 = vmatpush3.msra.mxu1 %v4546_v58 }
 0x240   :  { %3690 = vmatprep.subr.mxu0 %v3869_v0  ;;  %3723 = vmatprep.subr.mxu1 %v3869_v0 }
 0x241   :  { %3691 = vmatpush3.msra.mxu0 %v4568_v63  ;;  %3724 = vmatpush3.msra.mxu1 %v4559_v61 }
 0x242   :  { %3692 = vmatprep.subr.mxu0 %v3869_v0  ;;  %3725 = vmatprep.subr.mxu1 %v3869_v0 }
 0x243   :  { %3693 = vmatpush3.msra.mxu0 %v4578_v3  ;;  %3726 = vmatpush3.msra.mxu1 %v4568_v63 }
 0x244   :  { %3694 = vmatprep.subr.mxu0 %v3869_v0  ;;  %3727 = vmatprep.subr.mxu1 %v3869_v0 }
 0x245   :  { %3695 = vmatpush3.msra.mxu0 %v4587_v5  ;;  %3696 = vmatprep.mubr.msk.f32.mxu0 %vm3870_vm0, %v3869_v0 }
 0x246   :  { %3728 = vmatpush3.msra.mxu1 %v4578_v3  ;;  %3697 = vmatmul.mubr.f32.vlgmr.msra.gmra.mxu0 %v4528_v54 }
 0x247   :  { %3729 = vmatprep.subr.mxu1 %v3869_v0  ;;  %3734 = vmatprep.subr.mxu0 %v3869_v0 }
 0x248   :  { %3730 = vmatpush3.msra.mxu1 %v4587_v5  ;;  %3731 = vmatprep.mubr.msk.f32.mxu1 %vm3870_vm0, %v3869_v0 }
 0x249   :  { %3735 = vmatpush3.msra.mxu0 %v4444_v43  ;;  %3732 = vmatmul.mubr.f32.vlgmr.msra.gmra.mxu1 %v4550_v59 }
 0x24a   :  { %3736 = vmatprep.subr.mxu0 %v3869_v0  ;;  %3769 = vmatprep.subr.mxu1 %v3869_v0 }
 0x24b   :  { %1376 = vrot.lane.b32.xlu0 %v1371_v19, %s3878_s6  ;;  %3737 = vmatpush3.msra.mxu0 %v4452_v45 }
 0x24c   :  { %3770 = vmatpush3.msra.mxu1 %v4444_v43  ;;  %3738 = vmatprep.subr.mxu0 %v3869_v0 }
 0x24d   :  { %3771 = vmatprep.subr.mxu1 %v3869_v0  ;;  %3739 = vmatpush3.msra.mxu0 %v4461_v46 }
 0x24e   :  { %3772 = vmatpush3.msra.mxu1 %v4452_v45  ;;  %3740 = vmatprep.subr.mxu0 %v3869_v0 }
 0x24f   :  { %3773 = vmatprep.subr.mxu1 %v3869_v0  ;;  %3741 = vmatpush3.msra.mxu0 %v4470_v47 }
 0x250   :  { %3774 = vmatpush3.msra.mxu1 %v4461_v46  ;;  %3742 = vmatprep.subr.mxu0 %v3869_v0 }
 0x251   :  { %3775 = vmatprep.subr.mxu1 %v3869_v0  ;;  %3743 = vmatpush3.msra.mxu0 %v4479_v48 }
 0x252   :  { %3776 = vmatpush3.msra.mxu1 %v4470_v47  ;;  %3744 = vmatprep.subr.mxu0 %v3869_v0 }
 0x253   :  { %3777 = vmatprep.subr.mxu1 %v3869_v0  ;;  %3745 = vmatpush3.msra.mxu0 %v4488_v49 }
 0x254   :  { %3778 = vmatpush3.msra.mxu1 %v4479_v48  ;;  %3746 = vmatprep.subr.mxu0 %v3869_v0  ;;  %v921_v23 = vpop.permute.xlu1 %920  ;;  %v997_v24 = vpop.permute.xlu0 %996 }
 0x255   :  { %3779 = vmatprep.subr.mxu1 %v3869_v0  ;;  %3747 = vmatpush3.msra.mxu0 %v4497_v50  ;;  %924 = vst.msk [vmem:[#allocation5] sm:$0xff] %vm923_vm3, %v921_v23 }
 0x256   :  { %3780 = vmatpush3.msra.mxu1 %v4488_v49  ;;  %3748 = vmatprep.subr.mxu0 %v3869_v0  ;;  %1000 = vst.msk [vmem:[#allocation5] sm:$0xff] %vm999_vm4, %v997_v24 }
 0x257   :  { %3781 = vmatprep.subr.mxu1 %v3869_v0  ;;  %3749 = vmatpush3.msra.mxu0 %v4506_v51 }
 0x258   :  { %3782 = vmatpush3.msra.mxu1 %v4497_v50  ;;  %3750 = vmatprep.subr.mxu0 %v3869_v0 }
 0x259   :  { %3783 = vmatprep.subr.mxu1 %v3869_v0  ;;  %3751 = vmatpush3.msra.mxu0 %v4515_v52  ;;  %v1523_v17 = vpop.f32.mrf.mxu0 }
 0x25a   :  { %3784 = vmatpush3.msra.mxu1 %v4506_v51  ;;  %3752 = vmatprep.subr.mxu0 %v3869_v0 }
 0x25b   :  { %3785 = vmatprep.subr.mxu1 %v3869_v0  ;;  %3753 = vmatpush3.msra.mxu0 %v4524_v53  ;;  %v3348_v25 = vpop.f32.mrf.mxu0 }
 0x25c   :  { %3786 = vmatpush3.msra.mxu1 %v4515_v52  ;;  %3754 = vmatprep.subr.mxu0 %v3869_v0  ;;  %v1599_v26 = vpop.f32.mrf.mxu1 }
 0x25d   :  { %3787 = vmatprep.subr.mxu1 %v3869_v0  ;;  %3755 = vmatpush3.msra.mxu0 %v4537_v57 }
 0x25e   :  { %3788 = vmatpush3.msra.mxu1 %v4524_v53  ;;  %3756 = vmatprep.subr.mxu0 %v3869_v0  ;;  %v3383_v27 = vpop.f32.mrf.mxu1 }
 0x25f   :  { %3789 = vmatprep.subr.mxu1 %v3869_v0  ;;  %3757 = vmatpush3.msra.mxu0 %v4546_v58 }
 0x260   :  { %3790 = vmatpush3.msra.mxu1 %v4537_v57  ;;  %3758 = vmatprep.subr.mxu0 %v3869_v0 }
 0x261   :  { %3791 = vmatprep.subr.mxu1 %v3869_v0  ;;  %3759 = vmatpush3.msra.mxu0 %v4559_v61 }
 0x262   :  { %3792 = vmatpush3.msra.mxu1 %v4546_v58  ;;  %3760 = vmatprep.subr.mxu0 %v3869_v0 }
 0x263   :  { %3793 = vmatprep.subr.mxu1 %v3869_v0  ;;  %3761 = vmatpush3.msra.mxu0 %v4568_v63 }
 0x264   :  { %3794 = vmatpush3.msra.mxu1 %v4559_v61  ;;  %3762 = vmatprep.subr.mxu0 %v3869_v0 }
 0x265   :  { %3795 = vmatprep.subr.mxu1 %v3869_v0  ;;  %3763 = vmatpush3.msra.mxu0 %v4578_v3 }
 0x266   :  { %3796 = vmatpush3.msra.mxu1 %v4568_v63  ;;  %3764 = vmatprep.subr.mxu0 %v3869_v0 }
 0x267   :  { %3797 = vmatprep.subr.mxu1 %v3869_v0  ;;  %3765 = vmatpush3.msra.mxu0 %v4587_v5 }
 0x268   :  { %3766 = vmatprep.mubr.msk.f32.mxu0 %vm3870_vm0, %v3869_v0  ;;  %3798 = vmatpush3.msra.mxu1 %v4578_v3 }
 0x269   :  { %3767 = vmatmul.mubr.f32.vlgmr.msra.gmra.mxu0 %v4530_v56  ;;  %3799 = vmatprep.subr.mxu1 %v3869_v0 }
 0x26a   :  { %3800 = vmatpush3.msra.mxu1 %v4587_v5  ;;  %3801 = vmatprep.mubr.msk.f32.mxu1 %vm3870_vm0, %v3869_v0 }
 0x26b   :  { %3802 = vmatmul.mubr.f32.vlgmr.msra.gmra.mxu1 %v4552_v60 }
 0x275   :  { %v1073_v28 = vpop.permute.xlu0 %1072 }
 0x276   :  { %1076 = vst.msk [vmem:[#allocation5] sm:$0xff] %vm1075_vm5, %v1073_v28 }
 0x27a   :  { %v1149_v29 = vpop.permute.xlu0 %1148 }
 0x27b   :  { %1152 = vst.msk [vmem:[#allocation5] sm:$0xff] %vm1151_vm6, %v1149_v29  ;;  %v1692_v30 = vpop.f32.mrf.mxu0 }
 0x27c   :  { %1697 = vst.msk [vmem:[#allocation5 + $0x8] sm:$0xff] %vm771_vm1, %v1692_v30 }
 0x27d   :  { %v3418_v31 = vpop.f32.mrf.mxu0 }
 0x27e   :  { %v1764_v32 = vpop.f32.mrf.mxu1 }
 0x27f   :  { %1769 = vrot.lane.b32.xlu0 %v1764_v32, %s3871_s1 }
 0x280   :  { %v3453_v33 = vpop.f32.mrf.mxu1 }
 0x283   :  { %1452 = vrot.lane.b32.xlu0 %v4862_v21, %s3879_s7 }
 0x287   :  { %1528 = vrot.lane.b32.xlu0 %v1523_v17, %s3880_s8 }
 0x28b   :  { %1604 = vrot.lane.b32.xlu0 %v1599_v26, %s3881_s9 }
 0x298   :  { %v1225_v0 = vpop.permute.xlu0 %1224 }
 0x299   :  { %1228 = vst.msk [vmem:[#allocation5] sm:$0xff] %vm1227_vm7, %v1225_v0 }
 0x29d   :  { %v1301_v34 = vpop.permute.xlu0 %1300  ;;  %v1839_v35 = vpop.f32.mrf.mxu0 }
 0x29e   :  { %1304 = vst.msk [vmem:[#allocation5] sm:$0xff] %vm1303_vm8, %v1301_v34  ;;  %1844 = vrot.lane.b32.xlu1 %v1839_v35, %s3872_s27 }
 0x29f   :  { %v3488_v36 = vpop.f32.mrf.mxu0 }
 0x2a0   :  { %v1914_v37 = vpop.f32.mrf.mxu1 }
 0x2a2   :  { %v3523_v38 = vpop.f32.mrf.mxu1  ;;  %1919 = vrot.lane.b32.xlu1 %v1914_v37, %s3873_s28 }
 0x2bd   :  { %v1377_v39 = vpop.permute.xlu0 %1376 }
 0x2be   :  { %1380 = vst.msk [vmem:[#allocation5] sm:$0xff] %vm1379_vm9, %v1377_v39 }
 0x2c0   :  { %v1989_v40 = vpop.f32.mrf.mxu0 }
 0x2c1   :  { %1994 = vrot.lane.b32.xlu1 %v1989_v40, %s3874_s29 }
 0x2c2   :  { %v3558_v41 = vpop.f32.mrf.mxu0 }
 0x2c4   :  { %v2064_v42 = vpop.f32.mrf.mxu1 }
 0x2c5   :  { %2069 = vrot.lane.b32.xlu1 %v2064_v42, %s3875_s30 }
 0x2c6   :  { %v3593_v43 = vpop.f32.mrf.mxu1 }
 0x2e3   :  { %v2139_v44 = vpop.f32.mrf.mxu0 }
 0x2e4   :  { %2144 = vrot.lane.b32.xlu1 %v2139_v44, %s3876_s4 }
 0x2e5   :  { %v3628_v45 = vpop.f32.mrf.mxu0 }
 0x2e7   :  { %v2214_v46 = vpop.f32.mrf.mxu1 }
 0x2e8   :  { %2219 = vrot.lane.b32.xlu1 %v2214_v46, %s3877_s5 }
 0x2e9   :  { %v3663_v47 = vpop.f32.mrf.mxu1 }
 0x2f1   :  { %v1770_v48 = vpop.permute.xlu0 %1769 }
 0x2f2   :  { %1772 = vst.msk [vmem:[#allocation5 + $0x8] sm:$0xff] %vm847_vm2, %v1770_v48 }
 0x2f5   :  { %v1453_v49 = vpop.permute.xlu0 %1452 }
 0x2f6   :  { %1456 = vst.msk [vmem:[#allocation5] sm:$0xff] %vm1455_vm10, %v1453_v49 }
 0x2f9   :  { %v1529_v50 = vpop.permute.xlu0 %1528 }
 0x2fa   :  { %1532 = vst.msk [vmem:[#allocation5] sm:$0xff] %vm1531_vm11, %v1529_v50 }
 0x2fd   :  { %v1605_v51 = vpop.permute.xlu0 %1604 }
 0x2fe   :  { %1608 = vst.msk [vmem:[#allocation5] sm:$0xff] %vm1607_vm12, %v1605_v51 }
 0x306   :  { %v2289_v52 = vpop.f32.mrf.mxu0 }
 0x307   :  { %2294 = vrot.lane.b32.xlu1 %v2289_v52, %s3878_s6 }
 0x308   :  { %v3698_v53 = vpop.f32.mrf.mxu0 }
 0x309   :  { %v2364_v54 = vpop.f32.mrf.mxu1 }
 0x30b   :  { %v3733_v56 = vpop.f32.mrf.mxu1  ;;  %2369 = vrot.lane.b32.xlu1 %v2364_v54, %s3879_s7 }
 0x310   :  { %v1845_v57 = vpop.permute.xlu1 %1844 }
 0x311   :  { %1847 = vst.msk [vmem:[#allocation5 + $0x8] sm:$0xff] %vm923_vm3, %v1845_v57 }
 0x314   :  { %v1920_v58 = vpop.permute.xlu1 %1919 }
 0x315   :  { %1922 = vst.msk [vmem:[#allocation5 + $0x8] sm:$0xff] %vm999_vm4, %v1920_v58 }
 0x329   :  { %v2439_v59 = vpop.f32.mrf.mxu0 }
 0x32a   :  { %2444 = vrot.lane.b32.xlu1 %v2439_v59, %s3880_s8 }
 0x32b   :  { %v3768_v60 = vpop.f32.mrf.mxu0  ;;  %v2514_v61 = vpop.f32.mrf.mxu1 }
 0x32d   :  { %v3803_v62 = vpop.f32.mrf.mxu1 }
 0x32e   :  { %2519 = vrot.lane.b32.xlu1 %v2514_v61, %s3881_s9 }
 0x333   :  { %v1995_v63 = vpop.permute.xlu1 %1994 }
 0x334   :  { %1997 = vst.msk [vmem:[#allocation5 + $0x8] sm:$0xff] %vm1075_vm5, %v1995_v63 }
 0x337   :  { %v2070_v1 = vpop.permute.xlu1 %2069 }
 0x338   :  { %2072 = vst.msk [vmem:[#allocation5 + $0x8] sm:$0xff] %vm1151_vm6, %v2070_v1 }
 0x356   :  { %v2145_v2 = vpop.permute.xlu1 %2144 }
 0x357   :  { %2147 = vst.msk [vmem:[#allocation5 + $0x8] sm:$0xff] %vm1227_vm7, %v2145_v2 }
 0x35a   :  { %v2220_v3 = vpop.permute.xlu1 %2219 }
 0x35b   :  { %2222 = vst.msk [vmem:[#allocation5 + $0x8] sm:$0xff] %vm1303_vm8, %v2220_v3 }
 0x379   :  { %v2295_v4 = vpop.permute.xlu1 %2294 }
 0x37a   :  { %2297 = vst.msk [vmem:[#allocation5 + $0x8] sm:$0xff] %vm1379_vm9, %v2295_v4 }
 0x37d   :  { %v2370_v5 = vpop.permute.xlu1 %2369 }
 0x37e   :  { %2372 = vst.msk [vmem:[#allocation5 + $0x8] sm:$0xff] %vm1455_vm10, %v2370_v5 }
 0x39c   :  { %v2445_v6 = vpop.permute.xlu1 %2444 }
 0x39d   :  { %2447 = vst.msk [vmem:[#allocation5 + $0x8] sm:$0xff] %vm1531_vm11, %v2445_v6 }
 0x3a0   :  { %v2520_v7 = vpop.permute.xlu1 %2519 }
 0x3a1   :  { %2522 = vst.msk [vmem:[#allocation5 + $0x8] sm:$0xff] %vm1607_vm12, %v2520_v7 }
 0x3a2   :  { %3853 = shalt.err (!%p3850_p9)
}
 0x3a3   :  { %s3883_s13 = smov 128  }
 0x3a4   :  { %2534 = dma.vmem_to_hbm [thread:$0]  %s2529_s11, 256, %s5009_s3, [#allocation4], %s3883_s13, %s3883_s13, %s3871_s1  }
 0x3a5   :  { %3864 = dma.done.wait [#allocation4], 256  }
 0x3a6   :  { %3865 = vsyncadd [#allocation4], 4294967040 }
 0x3a7   :  { %2538 = vsyncpa [#allocation3], 1 }
 0x3a8   :  { %2539 = vsyncpa [#allocation4], 1 }

</bundles_post_ra>
